<compile_context>
chip_gen: v7x
topology: tpu7x:2x2x1
jax: 0.10.0
libtpu: 0.0.40
codegen_flags: <defaults>
</compile_context>

<pallas_src>
import jax
import jax.numpy as jnp
import numpy as np
from jax import lax
from jax.experimental import pallas as pl
from jax.experimental.pallas import tpu as pltpu


# ----------------------------- fused Pallas kernel -------------------------

def _full_spec(shape):
    """Full-array block (block_shape == array shape) for grid=(1,)."""
    rank = len(shape)
    return pl.BlockSpec(shape, lambda *_: (0,) * rank)


def _make_net2_kernel(batch):
    n = batch
    s = 2 * n            # row stride per height step; rows within a step are
                         # ordered (branch k, image i) -> b = k*n + i
    rows_in = 14 * s     # input rows:        row = h   * s + b, h  in [0,14)
    rows1 = 12 * s       # conv1-output rows: row = oh1 * s + b, oh1 in [0,12)
    rows2 = 10 * s       # conv2-output rows: row = oh2 * s + b, oh2 in [0,10)

    def kernel(img_ref, w1_ref, b1_ref, w2_ref, b2_ref,
               wf1_ref, bf1_ref, wf2_ref, bf2_ref,
               wf3_ref, bf3_ref, wf4_ref, bf4_ref,
               out_ref, h1_ref, hp_ref):
        f32 = jnp.float32

        # ---- conv1 (1->16, k=3, valid) + ReLU: lanes = (w_out, cout) --------
        # out[row] = sum_di img[row + di*s] @ W1_di   (3 shifted matmuls)
        acc1 = jnp.dot(img_ref[0:rows1, :], w1_ref[0],
                       preferred_element_type=f32)
        for di in (1, 2):
            acc1 = acc1 + jnp.dot(img_ref[di * s:di * s + rows1, :], w1_ref[di],
                                  preferred_element_type=f32)
        h1_ref[...] = jnp.maximum(acc1 + b1_ref[...], 0.0)       # (rows1, 192)

        # ---- conv2 (16->32, k=3, valid) + ReLU: lanes = (w_out, cout) -------
        acc2 = jnp.dot(h1_ref[0:rows2, :], w2_ref[0],
                       preferred_element_type=f32)
        for di in (1, 2):
            acc2 = acc2 + jnp.dot(h1_ref[di * s:di * s + rows2, :], w2_ref[di],
                                  preferred_element_type=f32)
        h2 = jnp.maximum(acc2 + b2_ref[...], 0.0)                 # (rows2, 320)

        # ---- 2x2/2 max-pool, width direction (lane pairs of 32 channels) ----
        hp_ref[...] = jnp.concatenate(
            [jnp.maximum(h2[:, 64 * pw:64 * pw + 32],
                         h2[:, 64 * pw + 32:64 * pw + 64]) for pw in range(5)],
            axis=1)                                               # (rows2, 160)

        # ---- fc1, fused with the height-direction pool ----------------------
        # For a fixed (branch k, pooled row ph) the n images sit in CONTIGUOUS
        # rows of hp; wf1 was pre-permuted so lanes are ordered (pw, cout).
        accf = jnp.zeros((n, 32), f32)
        for k in range(2):
            for ph in range(5):
                top = hp_ref[2 * ph * s + k * n:
                             2 * ph * s + k * n + n, :]           # (n, 160)
                bot = hp_ref[(2 * ph + 1) * s + k * n:
                             (2 * ph + 1) * s + k * n + n, :]
                accf = accf + jnp.dot(jnp.maximum(top, bot),
                                      wf1_ref[k * 5 + ph],
                                      preferred_element_type=f32)
        z = jnp.maximum(accf + bf1_ref[...], 0.0)                 # (n, 32)

        # ---- fc2 / fc3 / fc4 + sigmoid --------------------------------------
        z = jnp.maximum(jnp.dot(z, wf2_ref[...], preferred_element_type=f32)
                        + bf2_ref[...], 0.0)                      # (n, 64)
        z = jnp.maximum(jnp.dot(z, wf3_ref[...], preferred_element_type=f32)
                        + bf3_ref[...], 0.0)                      # (n, 128)
        z = jnp.dot(z, wf4_ref[...], preferred_element_type=f32) + bf4_ref[...]
        out_ref[...] = jax.nn.sigmoid(z).astype(out_ref.dtype)    # (n, 1)

    return kernel, rows_in, rows1, rows2


def net2_pallas(x, prep):
    """x: (N, 2, 14, 14) -> (N, 1); prep: host-prepacked weights."""
    n = x.shape[0]
    kernel, rows_in, rows1, rows2 = _make_net2_kernel(n)

    # Layout plumbing (wrapper side, tiny): stack the two branches on the
    # (branch, image) axis, then go height-major: row = h * 2n + (k*n + i).
    imgs = jnp.concatenate([x[:, 0], x[:, 1]], axis=0)            # (2n, 14, 14)
    img2d = jnp.transpose(imgs, (1, 0, 2)).reshape(rows_in, 14)   # (14*2n, 14)

    operands = (img2d, prep["w1"], prep["b1"], prep["w2"], prep["b2"],
                prep["wf1"], prep["bf1"], prep["wf2"], prep["bf2"],
                prep["wf3"], prep["bf3"], prep["wf4"], prep["bf4"])

    return pl.pallas_call(
        kernel,
        out_shape=jax.ShapeDtypeStruct((n, 1), jnp.float32),
        grid=(1,),
        in_specs=[_full_spec(op.shape) for op in operands],
        out_specs=_full_spec((n, 1)),
        scratch_shapes=[pltpu.VMEM((rows1, 192), jnp.float32),    # conv1 out
                        pltpu.VMEM((rows2, 160), jnp.float32)],   # width-pooled
        compiler_params=pltpu.CompilerParams(
            dimension_semantics=("arbitrary",)),
    )(*operands)


# ----------------------------- host-side weight repack ---------------------

def prepare_params(params):
    """One-time repack of the torch-layout weights into the kernel layout."""
    c1w = np.asarray(params["conv1_w"], np.float32)   # (16, 1, 3, 3)  OIHW
    c1b = np.asarray(params["conv1_b"], np.float32)
    c2w = np.asarray(params["conv2_w"], np.float32)   # (32, 16, 3, 3) OIHW
    c2b = np.asarray(params["conv2_b"], np.float32)

    # conv1 tap weights: w1[di, w_in, ow*16 + cout] = c1w[cout, 0, di, w_in-ow]
    w1 = np.zeros((3, 14, 12 * 16), np.float32)
    for di in range(3):
        for ow in range(12):
            for dj in range(3):
                w1[di, ow + dj, ow * 16:(ow + 1) * 16] = c1w[:, 0, di, dj]
    b1 = np.tile(c1b, 12).reshape(1, 192)

    # conv2 tap weights: w2[di, w*16+cin, ow*32+cout] = c2w[cout, cin, di, w-ow]
    w2 = np.zeros((3, 12 * 16, 10 * 32), np.float32)
    for di in range(3):
        for ow in range(10):
            for dj in range(3):
                w = ow + dj
                w2[di, w * 16:(w + 1) * 16, ow * 32:(ow + 1) * 32] = \
                    c2w[:, :, di, dj].T
    b2 = np.tile(c2b, 10).reshape(1, 320)

    # fc1: torch row order is (branch k, cout, ph, pw); kernel consumes rows
    # grouped by (k, ph) with lanes ordered (pw, cout)  ->  (10, 160, 32).
    f1 = np.asarray(params["fc1_w"], np.float32)                   # (1600, 32)
    wf1 = (f1.reshape(2, 32, 5, 5, 32)
             .transpose(0, 2, 3, 1, 4)
             .reshape(10, 160, 32))

    return {
        "w1": jnp.asarray(w1), "b1": jnp.asarray(b1),
        "w2": jnp.asarray(w2), "b2": jnp.asarray(b2),
        "wf1": jnp.asarray(np.ascontiguousarray(wf1)),
        "bf1": params["fc1_b"].reshape(1, 32),
        "wf2": params["fc2_w"], "bf2": params["fc2_b"].reshape(1, 64),
        "wf3": params["fc3_w"], "bf3": params["fc3_b"].reshape(1, 128),
        "wf4": params["fc4_w"], "bf4": params["fc4_b"].reshape(1, 1),
    }


# ----------------------------- params & pure-JAX reference -----------------

def init_params(key):
    ks = jax.random.split(key, 12)
    nrm = lambda k, s, sc: sc * jax.random.normal(k, s, jnp.float32)
    return {
        "conv1_w": nrm(ks[0], (16, 1, 3, 3), 0.2),    # OIHW like torch
        "conv1_b": nrm(ks[1], (16,), 0.1),
        "conv2_w": nrm(ks[2], (32, 16, 3, 3), 0.1),
        "conv2_b": nrm(ks[3], (32,), 0.1),
        "fc1_w": nrm(ks[4], (1600, 32), 0.03),        # stored (in, out)
        "fc1_b": nrm(ks[5], (32,), 0.1),
        "fc2_w": nrm(ks[6], (32, 64), 0.1),
        "fc2_b": nrm(ks[7], (64,), 0.1),
        "fc3_w": nrm(ks[8], (64, 128), 0.1),
        "fc3_b": nrm(ks[9], (128,), 0.1),
        "fc4_w": nrm(ks[10], (128, 1), 0.1),
        "fc4_b": nrm(ks[11], (1,), 0.1),
    }


def net2_reference(x, params):
    """Straightforward JAX mirror of the PyTorch forward (sanity check)."""
    def conv(a, w, b):
        y = lax.conv_general_dilated(a, w, (1, 1), "VALID",
                                     dimension_numbers=("NCHW", "OIHW", "NCHW"))
        return jax.nn.relu(y + b.reshape(1, -1, 1, 1))

    def branch(img):
        h = conv(img, params["conv1_w"], params["conv1_b"])
        h = conv(h, params["conv2_w"], params["conv2_b"])
        h = lax.reduce_window(h, -jnp.inf, lax.max,
                              (1, 1, 2, 2), (1, 1, 2, 2), "VALID")
        return h.reshape(h.shape[0], -1)

    z = jnp.concatenate([branch(x[:, 0:1]), branch(x[:, 1:2])], axis=1)
    z = jax.nn.relu(z @ params["fc1_w"] + params["fc1_b"])
    z = jax.nn.relu(z @ params["fc2_w"] + params["fc2_b"])
    z = jax.nn.relu(z @ params["fc3_w"] + params["fc3_b"])
    return jax.nn.sigmoid(z @ params["fc4_w"] + params["fc4_b"])


if __name__ == "__main__":
    key = jax.random.PRNGKey(0)
    k_in, k_par = jax.random.split(key)
    N = 4
    x = jax.random.normal(k_in, (N, 2, 14, 14), jnp.float32)
    params = init_params(k_par)
    prep = prepare_params(params)          # one-time host-side repack

    fwd = jax.jit(net2_pallas)
    out = jax.block_until_ready(fwd(x, prep))

    ref = net2_reference(x, params)
    assert out.shape == (N, 1)
    assert bool(jnp.all(jnp.isfinite(out)))
    # Margin left for default-precision MXU matmuls (both paths use DEFAULT
    # precision on f32 inputs).
    assert np.allclose(np.asarray(out), np.asarray(ref), atol=2e-3, rtol=2e-3), \
        float(jnp.max(jnp.abs(out - ref)))
    print("KERNEL_OK")
</pallas_src>

<mosaic_0001>
module attributes {stable_mosaic.version = 11 : i64} {
  func.func @kernel(%arg0: i32, %arg1: memref<112x14xf32, #tpu.memory_space<vmem>>, %arg2: memref<3x14x192xf32, #tpu.memory_space<vmem>>, %arg3: memref<1x192xf32, #tpu.memory_space<vmem>>, %arg4: memref<3x192x320xf32, #tpu.memory_space<vmem>>, %arg5: memref<1x320xf32, #tpu.memory_space<vmem>>, %arg6: memref<10x160x32xf32, #tpu.memory_space<vmem>>, %arg7: memref<1x32xf32, #tpu.memory_space<vmem>>, %arg8: memref<32x64xf32, #tpu.memory_space<vmem>>, %arg9: memref<1x64xf32, #tpu.memory_space<vmem>>, %arg10: memref<64x128xf32, #tpu.memory_space<vmem>>, %arg11: memref<1x128xf32, #tpu.memory_space<vmem>>, %arg12: memref<128x1xf32, #tpu.memory_space<vmem>>, %arg13: memref<1x1xf32, #tpu.memory_space<vmem>>, %arg14: memref<4x1xf32, #tpu.memory_space<vmem>>, %arg15: memref<96x192xf32, #tpu.memory_space<vmem>>, %arg16: memref<80x160xf32, #tpu.memory_space<vmem>>) attributes {dimension_semantics = [#tpu.dimension_semantics<arbitrary>], iteration_bounds = array<i64: 1>, scalar_prefetch = 0 : i64, scratch_operands = 2 : i64, tpu.core_type = #tpu.core_type<tc>, window_params = [{pipeline_mode = #tpu.pipeline_mode<synchronous>, transform_indices = @transform_0, window_bounds = array<i64: 112, 14>}, {pipeline_mode = #tpu.pipeline_mode<synchronous>, transform_indices = @transform_1, window_bounds = array<i64: 3, 14, 192>}, {pipeline_mode = #tpu.pipeline_mode<synchronous>, transform_indices = @transform_2, window_bounds = array<i64: 1, 192>}, {pipeline_mode = #tpu.pipeline_mode<synchronous>, transform_indices = @transform_3, window_bounds = array<i64: 3, 192, 320>}, {pipeline_mode = #tpu.pipeline_mode<synchronous>, transform_indices = @transform_4, window_bounds = array<i64: 1, 320>}, {pipeline_mode = #tpu.pipeline_mode<synchronous>, transform_indices = @transform_5, window_bounds = array<i64: 10, 160, 32>}, {pipeline_mode = #tpu.pipeline_mode<synchronous>, transform_indices = @transform_6, window_bounds = array<i64: 1, 32>}, {pipeline_mode = #tpu.pipeline_mode<synchronous>, transform_indices = @transform_7, window_bounds = array<i64: 32, 64>}, {pipeline_mode = #tpu.pipeline_mode<synchronous>, transform_indices = @transform_8, window_bounds = array<i64: 1, 64>}, {pipeline_mode = #tpu.pipeline_mode<synchronous>, transform_indices = @transform_9, window_bounds = array<i64: 64, 128>}, {pipeline_mode = #tpu.pipeline_mode<synchronous>, transform_indices = @transform_10, window_bounds = array<i64: 1, 128>}, {pipeline_mode = #tpu.pipeline_mode<synchronous>, transform_indices = @transform_11, window_bounds = array<i64: 128, 1>}, {pipeline_mode = #tpu.pipeline_mode<synchronous>, transform_indices = @transform_12, window_bounds = array<i64: 1, 1>}, {pipeline_mode = #tpu.pipeline_mode<synchronous>, transform_indices = @transform_13, window_bounds = array<i64: 4, 1>}]} {
    %c0 = arith.constant 0 : index
    %c0_0 = arith.constant 0 : index
    %0 = vector.load %arg1[%c0, %c0_0] : memref<112x14xf32, #tpu.memory_space<vmem>>, vector<96x14xf32>
    %c0_1 = arith.constant 0 : index
    %c0_2 = arith.constant 0 : index
    %c0_3 = arith.constant 0 : index
    %1 = vector.load %arg2[%c0_1, %c0_2, %c0_3] : memref<3x14x192xf32, #tpu.memory_space<vmem>>, vector<1x14x192xf32>
    %2 = vector.shape_cast %1 : vector<1x14x192xf32> to vector<14x192xf32>
    %cst = arith.constant dense<0.000000e+00> : vector<96x192xf32>
    %3 = tpu.matmul %0, %2, %cst {dimension_numbers = #tpu.dot_dimension_numbers<[1], [0], [0], [1], [0, 0, 1, 1], [], []>} : vector<96x14xf32>, vector<14x192xf32>, vector<96x192xf32> -> vector<96x192xf32>
    %c8 = arith.constant 8 : index
    %c0_4 = arith.constant 0 : index
    %4 = vector.load %arg1[%c8, %c0_4] : memref<112x14xf32, #tpu.memory_space<vmem>>, vector<96x14xf32>
    %c1 = arith.constant 1 : index
    %c0_5 = arith.constant 0 : index
    %c0_6 = arith.constant 0 : index
    %5 = vector.load %arg2[%c1, %c0_5, %c0_6] : memref<3x14x192xf32, #tpu.memory_space<vmem>>, vector<1x14x192xf32>
    %6 = vector.shape_cast %5 : vector<1x14x192xf32> to vector<14x192xf32>
    %cst_7 = arith.constant dense<0.000000e+00> : vector<96x192xf32>
    %7 = tpu.matmul %4, %6, %cst_7 {dimension_numbers = #tpu.dot_dimension_numbers<[1], [0], [0], [1], [0, 0, 1, 1], [], []>} : vector<96x14xf32>, vector<14x192xf32>, vector<96x192xf32> -> vector<96x192xf32>
    %8 = arith.addf %3, %7 : vector<96x192xf32>
    %c16 = arith.constant 16 : index
    %c0_8 = arith.constant 0 : index
    %9 = vector.load %arg1[%c16, %c0_8] : memref<112x14xf32, #tpu.memory_space<vmem>>, vector<96x14xf32>
    %c2 = arith.constant 2 : index
    %c0_9 = arith.constant 0 : index
    %c0_10 = arith.constant 0 : index
    %10 = vector.load %arg2[%c2, %c0_9, %c0_10] : memref<3x14x192xf32, #tpu.memory_space<vmem>>, vector<1x14x192xf32>
    %11 = vector.shape_cast %10 : vector<1x14x192xf32> to vector<14x192xf32>
    %cst_11 = arith.constant dense<0.000000e+00> : vector<96x192xf32>
    %12 = tpu.matmul %9, %11, %cst_11 {dimension_numbers = #tpu.dot_dimension_numbers<[1], [0], [0], [1], [0, 0, 1, 1], [], []>} : vector<96x14xf32>, vector<14x192xf32>, vector<96x192xf32> -> vector<96x192xf32>
    %13 = arith.addf %8, %12 : vector<96x192xf32>
    %c0_12 = arith.constant 0 : index
    %c0_13 = arith.constant 0 : index
    %14 = vector.load %arg3[%c0_12, %c0_13] : memref<1x192xf32, #tpu.memory_space<vmem>>, vector<1x192xf32>
    %15 = vector.broadcast %14 : vector<1x192xf32> to vector<96x192xf32>
    %16 = arith.addf %13, %15 : vector<96x192xf32>
    %cst_14 = arith.constant 0.000000e+00 : f32
    %17 = vector.broadcast %cst_14 : f32 to vector<96x192xf32>
    %18 = arith.maximumf %16, %17 : vector<96x192xf32>
    %c0_15 = arith.constant 0 : index
    %c0_16 = arith.constant 0 : index
    %19 = vector.load %arg15[%c0_15, %c0_16] : memref<96x192xf32, #tpu.memory_space<vmem>>, vector<96x192xf32>
    tpu.vector_store %arg15[%c0_15, %c0_16], %18 {strides = array<i32>} : memref<96x192xf32, #tpu.memory_space<vmem>>, vector<96x192xf32>,
    %c0_17 = arith.constant 0 : index
    %c0_18 = arith.constant 0 : index
    %20 = vector.load %arg15[%c0_17, %c0_18] : memref<96x192xf32, #tpu.memory_space<vmem>>, vector<80x192xf32>
    %c0_19 = arith.constant 0 : index
    %c0_20 = arith.constant 0 : index
    %c0_21 = arith.constant 0 : index
    %21 = vector.load %arg4[%c0_19, %c0_20, %c0_21] : memref<3x192x320xf32, #tpu.memory_space<vmem>>, vector<1x192x320xf32>
    %22 = vector.shape_cast %21 : vector<1x192x320xf32> to vector<192x320xf32>
    %cst_22 = arith.constant dense<0.000000e+00> : vector<80x320xf32>
    %23 = tpu.matmul %20, %22, %cst_22 {dimension_numbers = #tpu.dot_dimension_numbers<[1], [0], [0], [1], [0, 0, 1, 1], [], []>} : vector<80x192xf32>, vector<192x320xf32>, vector<80x320xf32> -> vector<80x320xf32>
    %c8_23 = arith.constant 8 : index
    %c0_24 = arith.constant 0 : index
    %24 = vector.load %arg15[%c8_23, %c0_24] : memref<96x192xf32, #tpu.memory_space<vmem>>, vector<80x192xf32>
    %c1_25 = arith.constant 1 : index
    %c0_26 = arith.constant 0 : index
    %c0_27 = arith.constant 0 : index
    %25 = vector.load %arg4[%c1_25, %c0_26, %c0_27] : memref<3x192x320xf32, #tpu.memory_space<vmem>>, vector<1x192x320xf32>
    %26 = vector.shape_cast %25 : vector<1x192x320xf32> to vector<192x320xf32>
    %cst_28 = arith.constant dense<0.000000e+00> : vector<80x320xf32>
    %27 = tpu.matmul %24, %26, %cst_28 {dimension_numbers = #tpu.dot_dimension_numbers<[1], [0], [0], [1], [0, 0, 1, 1], [], []>} : vector<80x192xf32>, vector<192x320xf32>, vector<80x320xf32> -> vector<80x320xf32>
    %28 = arith.addf %23, %27 : vector<80x320xf32>
    %c16_29 = arith.constant 16 : index
    %c0_30 = arith.constant 0 : index
    %29 = vector.load %arg15[%c16_29, %c0_30] : memref<96x192xf32, #tpu.memory_space<vmem>>, vector<80x192xf32>
    %c2_31 = arith.constant 2 : index
    %c0_32 = arith.constant 0 : index
    %c0_33 = arith.constant 0 : index
    %30 = vector.load %arg4[%c2_31, %c0_32, %c0_33] : memref<3x192x320xf32, #tpu.memory_space<vmem>>, vector<1x192x320xf32>
    %31 = vector.shape_cast %30 : vector<1x192x320xf32> to vector<192x320xf32>
    %cst_34 = arith.constant dense<0.000000e+00> : vector<80x320xf32>
    %32 = tpu.matmul %29, %31, %cst_34 {dimension_numbers = #tpu.dot_dimension_numbers<[1], [0], [0], [1], [0, 0, 1, 1], [], []>} : vector<80x192xf32>, vector<192x320xf32>, vector<80x320xf32> -> vector<80x320xf32>
    %33 = arith.addf %28, %32 : vector<80x320xf32>
    %c0_35 = arith.constant 0 : index
    %c0_36 = arith.constant 0 : index
    %34 = vector.load %arg5[%c0_35, %c0_36] : memref<1x320xf32, #tpu.memory_space<vmem>>, vector<1x320xf32>
    %35 = vector.broadcast %34 : vector<1x320xf32> to vector<80x320xf32>
    %36 = arith.addf %33, %35 : vector<80x320xf32>
    %cst_37 = arith.constant 0.000000e+00 : f32
    %37 = vector.broadcast %cst_37 : f32 to vector<80x320xf32>
    %38 = arith.maximumf %36, %37 : vector<80x320xf32>
    %39 = vector.extract_strided_slice %38 {offsets = [0, 0], sizes = [80, 32], strides = [1, 1]} : vector<80x320xf32> to vector<80x32xf32>
    %40 = vector.extract_strided_slice %38 {offsets = [0, 32], sizes = [80, 32], strides = [1, 1]} : vector<80x320xf32> to vector<80x32xf32>
    %41 = arith.maximumf %39, %40 : vector<80x32xf32>
    %42 = vector.extract_strided_slice %38 {offsets = [0, 64], sizes = [80, 32], strides = [1, 1]} : vector<80x320xf32> to vector<80x32xf32>
    %43 = vector.extract_strided_slice %38 {offsets = [0, 96], sizes = [80, 32], strides = [1, 1]} : vector<80x320xf32> to vector<80x32xf32>
    %44 = arith.maximumf %42, %43 : vector<80x32xf32>
    %45 = vector.extract_strided_slice %38 {offsets = [0, 128], sizes = [80, 32], strides = [1, 1]} : vector<80x320xf32> to vector<80x32xf32>
    %46 = vector.extract_strided_slice %38 {offsets = [0, 160], sizes = [80, 32], strides = [1, 1]} : vector<80x320xf32> to vector<80x32xf32>
    %47 = arith.maximumf %45, %46 : vector<80x32xf32>
    %48 = vector.extract_strided_slice %38 {offsets = [0, 192], sizes = [80, 32], strides = [1, 1]} : vector<80x320xf32> to vector<80x32xf32>
    %49 = vector.extract_strided_slice %38 {offsets = [0, 224], sizes = [80, 32], strides = [1, 1]} : vector<80x320xf32> to vector<80x32xf32>
    %50 = arith.maximumf %48, %49 : vector<80x32xf32>
    %51 = vector.extract_strided_slice %38 {offsets = [0, 256], sizes = [80, 32], strides = [1, 1]} : vector<80x320xf32> to vector<80x32xf32>
    %52 = vector.extract_strided_slice %38 {offsets = [0, 288], sizes = [80, 32], strides = [1, 1]} : vector<80x320xf32> to vector<80x32xf32>
    %53 = arith.maximumf %51, %52 : vector<80x32xf32>
    %54 = tpu.concatenate %41, %44, %47, %50, %53 in 1 : vector<80x32xf32>, vector<80x32xf32>, vector<80x32xf32>, vector<80x32xf32>, vector<80x32xf32> -> vector<80x160xf32>
    %c0_38 = arith.constant 0 : index
    %c0_39 = arith.constant 0 : index
    %55 = vector.load %arg16[%c0_38, %c0_39] : memref<80x160xf32, #tpu.memory_space<vmem>>, vector<80x160xf32>
    tpu.vector_store %arg16[%c0_38, %c0_39], %54 {strides = array<i32>} : memref<80x160xf32, #tpu.memory_space<vmem>>, vector<80x160xf32>,
    %cst_40 = arith.constant 0.000000e+00 : f32
    %56 = vector.broadcast %cst_40 : f32 to vector<4x32xf32>
    %c0_41 = arith.constant 0 : index
    %c0_42 = arith.constant 0 : index
    %57 = vector.load %arg16[%c0_41, %c0_42] : memref<80x160xf32, #tpu.memory_space<vmem>>, vector<4x160xf32>
    %c8_43 = arith.constant 8 : index
    %c0_44 = arith.constant 0 : index
    %58 = vector.load %arg16[%c8_43, %c0_44] : memref<80x160xf32, #tpu.memory_space<vmem>>, vector<4x160xf32>
    %59 = arith.maximumf %57, %58 : vector<4x160xf32>
    %c0_45 = arith.constant 0 : index
    %c0_46 = arith.constant 0 : index
    %c0_47 = arith.constant 0 : index
    %60 = vector.load %arg6[%c0_45, %c0_46, %c0_47] : memref<10x160x32xf32, #tpu.memory_space<vmem>>, vector<1x160x32xf32>
    %61 = vector.shape_cast %60 : vector<1x160x32xf32> to vector<160x32xf32>
    %cst_48 = arith.constant dense<0.000000e+00> : vector<4x32xf32>
    %62 = tpu.matmul %59, %61, %cst_48 {dimension_numbers = #tpu.dot_dimension_numbers<[1], [0], [0], [1], [0, 0, 1, 1], [], []>} : vector<4x160xf32>, vector<160x32xf32>, vector<4x32xf32> -> vector<4x32xf32>
    %63 = arith.addf %56, %62 : vector<4x32xf32>
    %c16_49 = arith.constant 16 : index
    %c0_50 = arith.constant 0 : index
    %64 = vector.load %arg16[%c16_49, %c0_50] : memref<80x160xf32, #tpu.memory_space<vmem>>, vector<4x160xf32>
    %c24 = arith.constant 24 : index
    %c0_51 = arith.constant 0 : index
    %65 = vector.load %arg16[%c24, %c0_51] : memref<80x160xf32, #tpu.memory_space<vmem>>, vector<4x160xf32>
    %66 = arith.maximumf %64, %65 : vector<4x160xf32>
    %c1_52 = arith.constant 1 : index
    %c0_53 = arith.constant 0 : index
    %c0_54 = arith.constant 0 : index
    %67 = vector.load %arg6[%c1_52, %c0_53, %c0_54] : memref<10x160x32xf32, #tpu.memory_space<vmem>>, vector<1x160x32xf32>
    %68 = vector.shape_cast %67 : vector<1x160x32xf32> to vector<160x32xf32>
    %cst_55 = arith.constant dense<0.000000e+00> : vector<4x32xf32>
    %69 = tpu.matmul %66, %68, %cst_55 {dimension_numbers = #tpu.dot_dimension_numbers<[1], [0], [0], [1], [0, 0, 1, 1], [], []>} : vector<4x160xf32>, vector<160x32xf32>, vector<4x32xf32> -> vector<4x32xf32>
    %70 = arith.addf %63, %69 : vector<4x32xf32>
    %c32 = arith.constant 32 : index
    %c0_56 = arith.constant 0 : index
    %71 = vector.load %arg16[%c32, %c0_56] : memref<80x160xf32, #tpu.memory_space<vmem>>, vector<4x160xf32>
    %c40 = arith.constant 40 : index
    %c0_57 = arith.constant 0 : index
    %72 = vector.load %arg16[%c40, %c0_57] : memref<80x160xf32, #tpu.memory_space<vmem>>, vector<4x160xf32>
    %73 = arith.maximumf %71, %72 : vector<4x160xf32>
    %c2_58 = arith.constant 2 : index
    %c0_59 = arith.constant 0 : index
    %c0_60 = arith.constant 0 : index
    %74 = vector.load %arg6[%c2_58, %c0_59, %c0_60] : memref<10x160x32xf32, #tpu.memory_space<vmem>>, vector<1x160x32xf32>
    %75 = vector.shape_cast %74 : vector<1x160x32xf32> to vector<160x32xf32>
    %cst_61 = arith.constant dense<0.000000e+00> : vector<4x32xf32>
    %76 = tpu.matmul %73, %75, %cst_61 {dimension_numbers = #tpu.dot_dimension_numbers<[1], [0], [0], [1], [0, 0, 1, 1], [], []>} : vector<4x160xf32>, vector<160x32xf32>, vector<4x32xf32> -> vector<4x32xf32>
    %77 = arith.addf %70, %76 : vector<4x32xf32>
    %c48 = arith.constant 48 : index
    %c0_62 = arith.constant 0 : index
    %78 = vector.load %arg16[%c48, %c0_62] : memref<80x160xf32, #tpu.memory_space<vmem>>, vector<4x160xf32>
    %c56 = arith.constant 56 : index
    %c0_63 = arith.constant 0 : index
    %79 = vector.load %arg16[%c56, %c0_63] : memref<80x160xf32, #tpu.memory_space<vmem>>, vector<4x160xf32>
    %80 = arith.maximumf %78, %79 : vector<4x160xf32>
    %c3 = arith.constant 3 : index
    %c0_64 = arith.constant 0 : index
    %c0_65 = arith.constant 0 : index
    %81 = vector.load %arg6[%c3, %c0_64, %c0_65] : memref<10x160x32xf32, #tpu.memory_space<vmem>>, vector<1x160x32xf32>
    %82 = vector.shape_cast %81 : vector<1x160x32xf32> to vector<160x32xf32>
    %cst_66 = arith.constant dense<0.000000e+00> : vector<4x32xf32>
    %83 = tpu.matmul %80, %82, %cst_66 {dimension_numbers = #tpu.dot_dimension_numbers<[1], [0], [0], [1], [0, 0, 1, 1], [], []>} : vector<4x160xf32>, vector<160x32xf32>, vector<4x32xf32> -> vector<4x32xf32>
    %84 = arith.addf %77, %83 : vector<4x32xf32>
    %c64 = arith.constant 64 : index
    %c0_67 = arith.constant 0 : index
    %85 = vector.load %arg16[%c64, %c0_67] : memref<80x160xf32, #tpu.memory_space<vmem>>, vector<4x160xf32>
    %c72 = arith.constant 72 : index
    %c0_68 = arith.constant 0 : index
    %86 = vector.load %arg16[%c72, %c0_68] : memref<80x160xf32, #tpu.memory_space<vmem>>, vector<4x160xf32>
    %87 = arith.maximumf %85, %86 : vector<4x160xf32>
    %c4 = arith.constant 4 : index
    %c0_69 = arith.constant 0 : index
    %c0_70 = arith.constant 0 : index
    %88 = vector.load %arg6[%c4, %c0_69, %c0_70] : memref<10x160x32xf32, #tpu.memory_space<vmem>>, vector<1x160x32xf32>
    %89 = vector.shape_cast %88 : vector<1x160x32xf32> to vector<160x32xf32>
    %cst_71 = arith.constant dense<0.000000e+00> : vector<4x32xf32>
    %90 = tpu.matmul %87, %89, %cst_71 {dimension_numbers = #tpu.dot_dimension_numbers<[1], [0], [0], [1], [0, 0, 1, 1], [], []>} : vector<4x160xf32>, vector<160x32xf32>, vector<4x32xf32> -> vector<4x32xf32>
    %91 = arith.addf %84, %90 : vector<4x32xf32>
    %c4_72 = arith.constant 4 : index
    %c0_73 = arith.constant 0 : index
    %92 = vector.load %arg16[%c4_72, %c0_73] : memref<80x160xf32, #tpu.memory_space<vmem>>, vector<4x160xf32>
    %c12 = arith.constant 12 : index
    %c0_74 = arith.constant 0 : index
    %93 = vector.load %arg16[%c12, %c0_74] : memref<80x160xf32, #tpu.memory_space<vmem>>, vector<4x160xf32>
    %94 = arith.maximumf %92, %93 : vector<4x160xf32>
    %c5 = arith.constant 5 : index
    %c0_75 = arith.constant 0 : index
    %c0_76 = arith.constant 0 : index
    %95 = vector.load %arg6[%c5, %c0_75, %c0_76] : memref<10x160x32xf32, #tpu.memory_space<vmem>>, vector<1x160x32xf32>
    %96 = vector.shape_cast %95 : vector<1x160x32xf32> to vector<160x32xf32>
    %cst_77 = arith.constant dense<0.000000e+00> : vector<4x32xf32>
    %97 = tpu.matmul %94, %96, %cst_77 {dimension_numbers = #tpu.dot_dimension_numbers<[1], [0], [0], [1], [0, 0, 1, 1], [], []>} : vector<4x160xf32>, vector<160x32xf32>, vector<4x32xf32> -> vector<4x32xf32>
    %98 = arith.addf %91, %97 : vector<4x32xf32>
    %c20 = arith.constant 20 : index
    %c0_78 = arith.constant 0 : index
    %99 = vector.load %arg16[%c20, %c0_78] : memref<80x160xf32, #tpu.memory_space<vmem>>, vector<4x160xf32>
    %c28 = arith.constant 28 : index
    %c0_79 = arith.constant 0 : index
    %100 = vector.load %arg16[%c28, %c0_79] : memref<80x160xf32, #tpu.memory_space<vmem>>, vector<4x160xf32>
    %101 = arith.maximumf %99, %100 : vector<4x160xf32>
    %c6 = arith.constant 6 : index
    %c0_80 = arith.constant 0 : index
    %c0_81 = arith.constant 0 : index
    %102 = vector.load %arg6[%c6, %c0_80, %c0_81] : memref<10x160x32xf32, #tpu.memory_space<vmem>>, vector<1x160x32xf32>
    %103 = vector.shape_cast %102 : vector<1x160x32xf32> to vector<160x32xf32>
    %cst_82 = arith.constant dense<0.000000e+00> : vector<4x32xf32>
    %104 = tpu.matmul %101, %103, %cst_82 {dimension_numbers = #tpu.dot_dimension_numbers<[1], [0], [0], [1], [0, 0, 1, 1], [], []>} : vector<4x160xf32>, vector<160x32xf32>, vector<4x32xf32> -> vector<4x32xf32>
    %105 = arith.addf %98, %104 : vector<4x32xf32>
    %c36 = arith.constant 36 : index
    %c0_83 = arith.constant 0 : index
    %106 = vector.load %arg16[%c36, %c0_83] : memref<80x160xf32, #tpu.memory_space<vmem>>, vector<4x160xf32>
    %c44 = arith.constant 44 : index
    %c0_84 = arith.constant 0 : index
    %107 = vector.load %arg16[%c44, %c0_84] : memref<80x160xf32, #tpu.memory_space<vmem>>, vector<4x160xf32>
    %108 = arith.maximumf %106, %107 : vector<4x160xf32>
    %c7 = arith.constant 7 : index
    %c0_85 = arith.constant 0 : index
    %c0_86 = arith.constant 0 : index
    %109 = vector.load %arg6[%c7, %c0_85, %c0_86] : memref<10x160x32xf32, #tpu.memory_space<vmem>>, vector<1x160x32xf32>
    %110 = vector.shape_cast %109 : vector<1x160x32xf32> to vector<160x32xf32>
    %cst_87 = arith.constant dense<0.000000e+00> : vector<4x32xf32>
    %111 = tpu.matmul %108, %110, %cst_87 {dimension_numbers = #tpu.dot_dimension_numbers<[1], [0], [0], [1], [0, 0, 1, 1], [], []>} : vector<4x160xf32>, vector<160x32xf32>, vector<4x32xf32> -> vector<4x32xf32>
    %112 = arith.addf %105, %111 : vector<4x32xf32>
    %c52 = arith.constant 52 : index
    %c0_88 = arith.constant 0 : index
    %113 = vector.load %arg16[%c52, %c0_88] : memref<80x160xf32, #tpu.memory_space<vmem>>, vector<4x160xf32>
    %c60 = arith.constant 60 : index
    %c0_89 = arith.constant 0 : index
    %114 = vector.load %arg16[%c60, %c0_89] : memref<80x160xf32, #tpu.memory_space<vmem>>, vector<4x160xf32>
    %115 = arith.maximumf %113, %114 : vector<4x160xf32>
    %c8_90 = arith.constant 8 : index
    %c0_91 = arith.constant 0 : index
    %c0_92 = arith.constant 0 : index
    %116 = vector.load %arg6[%c8_90, %c0_91, %c0_92] : memref<10x160x32xf32, #tpu.memory_space<vmem>>, vector<1x160x32xf32>
    %117 = vector.shape_cast %116 : vector<1x160x32xf32> to vector<160x32xf32>
    %cst_93 = arith.constant dense<0.000000e+00> : vector<4x32xf32>
    %118 = tpu.matmul %115, %117, %cst_93 {dimension_numbers = #tpu.dot_dimension_numbers<[1], [0], [0], [1], [0, 0, 1, 1], [], []>} : vector<4x160xf32>, vector<160x32xf32>, vector<4x32xf32> -> vector<4x32xf32>
    %119 = arith.addf %112, %118 : vector<4x32xf32>
    %c68 = arith.constant 68 : index
    %c0_94 = arith.constant 0 : index
    %120 = vector.load %arg16[%c68, %c0_94] : memref<80x160xf32, #tpu.memory_space<vmem>>, vector<4x160xf32>
    %c76 = arith.constant 76 : index
    %c0_95 = arith.constant 0 : index
    %121 = vector.load %arg16[%c76, %c0_95] : memref<80x160xf32, #tpu.memory_space<vmem>>, vector<4x160xf32>
    %122 = arith.maximumf %120, %121 : vector<4x160xf32>
    %c9 = arith.constant 9 : index
    %c0_96 = arith.constant 0 : index
    %c0_97 = arith.constant 0 : index
    %123 = vector.load %arg6[%c9, %c0_96, %c0_97] : memref<10x160x32xf32, #tpu.memory_space<vmem>>, vector<1x160x32xf32>
    %124 = vector.shape_cast %123 : vector<1x160x32xf32> to vector<160x32xf32>
    %cst_98 = arith.constant dense<0.000000e+00> : vector<4x32xf32>
    %125 = tpu.matmul %122, %124, %cst_98 {dimension_numbers = #tpu.dot_dimension_numbers<[1], [0], [0], [1], [0, 0, 1, 1], [], []>} : vector<4x160xf32>, vector<160x32xf32>, vector<4x32xf32> -> vector<4x32xf32>
    %126 = arith.addf %119, %125 : vector<4x32xf32>
    %c0_99 = arith.constant 0 : index
    %c0_100 = arith.constant 0 : index
    %127 = vector.load %arg7[%c0_99, %c0_100] : memref<1x32xf32, #tpu.memory_space<vmem>>, vector<1x32xf32>
    %128 = vector.broadcast %127 : vector<1x32xf32> to vector<4x32xf32>
    %129 = arith.addf %126, %128 : vector<4x32xf32>
    %cst_101 = arith.constant 0.000000e+00 : f32
    %130 = vector.broadcast %cst_101 : f32 to vector<4x32xf32>
    %131 = arith.maximumf %129, %130 : vector<4x32xf32>
    %c0_102 = arith.constant 0 : index
    %c0_103 = arith.constant 0 : index
    %132 = vector.load %arg8[%c0_102, %c0_103] : memref<32x64xf32, #tpu.memory_space<vmem>>, vector<32x64xf32>
    %cst_104 = arith.constant dense<0.000000e+00> : vector<4x64xf32>
    %133 = tpu.matmul %131, %132, %cst_104 {dimension_numbers = #tpu.dot_dimension_numbers<[1], [0], [0], [1], [0, 0, 1, 1], [], []>} : vector<4x32xf32>, vector<32x64xf32>, vector<4x64xf32> -> vector<4x64xf32>
    %c0_105 = arith.constant 0 : index
    %c0_106 = arith.constant 0 : index
    %134 = vector.load %arg9[%c0_105, %c0_106] : memref<1x64xf32, #tpu.memory_space<vmem>>, vector<1x64xf32>
    %135 = vector.broadcast %134 : vector<1x64xf32> to vector<4x64xf32>
    %136 = arith.addf %133, %135 : vector<4x64xf32>
    %cst_107 = arith.constant 0.000000e+00 : f32
    %137 = vector.broadcast %cst_107 : f32 to vector<4x64xf32>
    %138 = arith.maximumf %136, %137 : vector<4x64xf32>
    %c0_108 = arith.constant 0 : index
    %c0_109 = arith.constant 0 : index
    %139 = vector.load %arg10[%c0_108, %c0_109] : memref<64x128xf32, #tpu.memory_space<vmem>>, vector<64x128xf32>
    %cst_110 = arith.constant dense<0.000000e+00> : vector<4x128xf32>
    %140 = tpu.matmul %138, %139, %cst_110 {dimension_numbers = #tpu.dot_dimension_numbers<[1], [0], [0], [1], [0, 0, 1, 1], [], []>} : vector<4x64xf32>, vector<64x128xf32>, vector<4x128xf32> -> vector<4x128xf32>
    %c0_111 = arith.constant 0 : index
    %c0_112 = arith.constant 0 : index
    %141 = vector.load %arg11[%c0_111, %c0_112] : memref<1x128xf32, #tpu.memory_space<vmem>>, vector<1x128xf32>
    %142 = vector.broadcast %141 : vector<1x128xf32> to vector<4x128xf32>
    %143 = arith.addf %140, %142 : vector<4x128xf32>
    %cst_113 = arith.constant 0.000000e+00 : f32
    %144 = vector.broadcast %cst_113 : f32 to vector<4x128xf32>
    %145 = arith.maximumf %143, %144 : vector<4x128xf32>
    %c0_114 = arith.constant 0 : index
    %c0_115 = arith.constant 0 : index
    %146 = vector.load %arg12[%c0_114, %c0_115] : memref<128x1xf32, #tpu.memory_space<vmem>>, vector<128x1xf32>
    %cst_116 = arith.constant dense<0.000000e+00> : vector<4x1xf32>
    %147 = tpu.matmul %145, %146, %cst_116 {dimension_numbers = #tpu.dot_dimension_numbers<[1], [0], [0], [1], [0, 0, 1, 1], [], []>} : vector<4x128xf32>, vector<128x1xf32>, vector<4x1xf32> -> vector<4x1xf32>
    %c0_117 = arith.constant 0 : index
    %c0_118 = arith.constant 0 : index
    %148 = vector.load %arg13[%c0_117, %c0_118] : memref<1x1xf32, #tpu.memory_space<vmem>>, vector<1x1xf32>
    %149 = vector.broadcast %148 : vector<1x1xf32> to vector<4x1xf32>
    %150 = arith.addf %147, %149 : vector<4x1xf32>
    %151 = arith.negf %150 : vector<4x1xf32>
    %152 = math.exp %151 : vector<4x1xf32>
    %cst_119 = arith.constant 1.000000e+00 : f32
    %153 = vector.broadcast %cst_119 : f32 to vector<4x1xf32>
    %154 = arith.addf %153, %152 : vector<4x1xf32>
    %155 = arith.divf %153, %154 : vector<4x1xf32>
    %c0_120 = arith.constant 0 : index
    %c0_121 = arith.constant 0 : index
    %156 = vector.load %arg14[%c0_120, %c0_121] : memref<4x1xf32, #tpu.memory_space<vmem>>, vector<4x1xf32>
    tpu.vector_store %arg14[%c0_120, %c0_121], %155 {strides = array<i32>} : memref<4x1xf32, #tpu.memory_space<vmem>>, vector<4x1xf32>,
    return
  }
  func.func @transform_0(%arg0: i32) -> (i32, i32) {
    %c0_i32 = arith.constant 0 : i32
    %c0_i32_0 = arith.constant 0 : i32
    %c0_i32_1 = arith.constant 0 : i32
    return %c0_i32, %c0_i32_0 : i32, i32
  }
  func.func @transform_1(%arg0: i32) -> (i32, i32, i32) {
    %c0_i32 = arith.constant 0 : i32
    %c0_i32_0 = arith.constant 0 : i32
    %c0_i32_1 = arith.constant 0 : i32
    %c0_i32_2 = arith.constant 0 : i32
    return %c0_i32, %c0_i32_0, %c0_i32_1 : i32, i32, i32
  }
  func.func @transform_2(%arg0: i32) -> (i32, i32) {
    %c0_i32 = arith.constant 0 : i32
    %c0_i32_0 = arith.constant 0 : i32
    %c0_i32_1 = arith.constant 0 : i32
    return %c0_i32, %c0_i32_0 : i32, i32
  }
  func.func @transform_3(%arg0: i32) -> (i32, i32, i32) {
    %c0_i32 = arith.constant 0 : i32
    %c0_i32_0 = arith.constant 0 : i32
    %c0_i32_1 = arith.constant 0 : i32
    %c0_i32_2 = arith.constant 0 : i32
    return %c0_i32, %c0_i32_0, %c0_i32_1 : i32, i32, i32
  }
  func.func @transform_4(%arg0: i32) -> (i32, i32) {
    %c0_i32 = arith.constant 0 : i32
    %c0_i32_0 = arith.constant 0 : i32
    %c0_i32_1 = arith.constant 0 : i32
    return %c0_i32, %c0_i32_0 : i32, i32
  }
  func.func @transform_5(%arg0: i32) -> (i32, i32, i32) {
    %c0_i32 = arith.constant 0 : i32
    %c0_i32_0 = arith.constant 0 : i32
    %c0_i32_1 = arith.constant 0 : i32
    %c0_i32_2 = arith.constant 0 : i32
    return %c0_i32, %c0_i32_0, %c0_i32_1 : i32, i32, i32
  }
  func.func @transform_6(%arg0: i32) -> (i32, i32) {
    %c0_i32 = arith.constant 0 : i32
    %c0_i32_0 = arith.constant 0 : i32
    %c0_i32_1 = arith.constant 0 : i32
    return %c0_i32, %c0_i32_0 : i32, i32
  }
  func.func @transform_7(%arg0: i32) -> (i32, i32) {
    %c0_i32 = arith.constant 0 : i32
    %c0_i32_0 = arith.constant 0 : i32
    %c0_i32_1 = arith.constant 0 : i32
    return %c0_i32, %c0_i32_0 : i32, i32
  }
  func.func @transform_8(%arg0: i32) -> (i32, i32) {
    %c0_i32 = arith.constant 0 : i32
    %c0_i32_0 = arith.constant 0 : i32
    %c0_i32_1 = arith.constant 0 : i32
    return %c0_i32, %c0_i32_0 : i32, i32
  }
  func.func @transform_9(%arg0: i32) -> (i32, i32) {
    %c0_i32 = arith.constant 0 : i32
    %c0_i32_0 = arith.constant 0 : i32
    %c0_i32_1 = arith.constant 0 : i32
    return %c0_i32, %c0_i32_0 : i32, i32
  }
  func.func @transform_10(%arg0: i32) -> (i32, i32) {
    %c0_i32 = arith.constant 0 : i32
    %c0_i32_0 = arith.constant 0 : i32
    %c0_i32_1 = arith.constant 0 : i32
    return %c0_i32, %c0_i32_0 : i32, i32
  }
  func.func @transform_11(%arg0: i32) -> (i32, i32) {
    %c0_i32 = arith.constant 0 : i32
    %c0_i32_0 = arith.constant 0 : i32
    %c0_i32_1 = arith.constant 0 : i32
    return %c0_i32, %c0_i32_0 : i32, i32
  }
  func.func @transform_12(%arg0: i32) -> (i32, i32) {
    %c0_i32 = arith.constant 0 : i32
    %c0_i32_0 = arith.constant 0 : i32
    %c0_i32_1 = arith.constant 0 : i32
    return %c0_i32, %c0_i32_0 : i32, i32
  }
  func.func @transform_13(%arg0: i32) -> (i32, i32) {
    %c0_i32 = arith.constant 0 : i32
    %c0_i32_0 = arith.constant 0 : i32
    %c0_i32_1 = arith.constant 0 : i32
    return %c0_i32, %c0_i32_0 : i32, i32
  }
}

</mosaic_0001>

<bundles_post_ra>
// kernel: net2_pallas.1
= control target key start
LH: loop header
LB: loop body
LE: loop exit
PB: predicated region body
PF: predicated region fallthrough
CT: control target
= control target key end

     0   :  { %vm105_vm0 = vcmask 1045504   ;;  %vm4735_vm1 = vmmov 1   ;;  %v4736_v3 = vmov 0.0   ;;  %vm68_vm3 = vcmask 113664   ;;  %s4739_s17 = smov 64   ;;  %s7256_s1 = inlined_call_operand.vmem [shape: f32[3,14,192], index: 1, kind: input, shape index: {}]   ;;  %s7257_s0 = inlined_call_operand.vmem [shape: f32[112,14], index: 0, kind: input, shape index: {}]   ;;  %s7258_s3 = inlined_call_operand.vmem [shape: f32[3,192,320], index: 3, kind: input, shape index: {}]   ;;  %s7259_s2 = inlined_call_operand.vmem [shape: f32[1,192], index: 2, kind: input, shape index: {}]   ;;  %s7260_s4 = inlined_call_operand.vmem [shape: f32[1,320], index: 4, kind: input, shape index: {}]   ;;  %s7261_s5 = inlined_call_operand.vmem [shape: f32[10,160,32], index: 5, kind: input, shape index: {}]   ;;  %s7262_s7 = inlined_call_operand.vmem [shape: f32[32,64], index: 7, kind: input, shape index: {}]   ;;  %s7263_s6 = inlined_call_operand.vmem [shape: f32[1,32], index: 6, kind: input, shape index: {}]   ;;  %s7264_s9 = inlined_call_operand.vmem [shape: f32[64,128], index: 9, kind: input, shape index: {}]   ;;  %s7265_s11 = inlined_call_operand.vmem [shape: f32[128,1], index: 11, kind: input, shape index: {}]   ;;  %s7266_s8 = inlined_call_operand.vmem [shape: f32[1,64], index: 8, kind: input, shape index: {}]   ;;  %s7267_s12 = inlined_call_operand.<no memory space> [shape: f32[1,1], index: 12, kind: input, shape index: {}]   ;;  %s7268_s10 = inlined_call_operand.vmem [shape: f32[1,128], index: 10, kind: input, shape index: {}]   ;;  %s7269_s13 = inlined_call_operand.vmem [shape: f32[4,1], index: 13, kind: output, shape index: {}]  }
   0x1   :  { %v3478_v0 = vld [vmem:[%s7256_s1 + $0x28] sm:$0xff]  ;;  %v3480_v1 = vld [vmem:[%s7256_s1 + $0x38] sm:$0x3f]  ;;  %vm4818_vm2 = vmpackc.low %vm105_vm0, %vm4735_vm1  ;;  %176 = vmatprep.mubr.f32.mxu0 %v4736_v3  ;;  %vm676_vm4 = vcmask 523264   ;;  %vm2110_vm5 = vcmask 261120   ;;  %vm2131_vm6 = vcmask 785408  }
   0x2   :  { %v4024_v4 = vpack.c.bf16 %v3480_v1, %v3478_v0  ;;  %v3477_v5 = vld [vmem:[%s7256_s1 + $0x20] sm:$0xff]  ;;  %v3479_v6 = vld [vmem:[%s7256_s1 + $0x30] sm:$0x3f]  ;;  %v59_v8 = vld [vmem:[%s7256_s1 + $0x8] sm:$0xff]  ;;  %vm4741_vm7 = vmmov 0   ;;  %vm3471_vm8 = vcmask 3072  }
   0x3   :  { %v4027_v7 = vpack.c.bf16 %v3479_v6, %v3477_v5  ;;  %v61_v9 = vld [vmem:[%s7256_s1 + $0x18] sm:$0x3f]  ;;  %v58_v10 = vld [vmem:[%s7256_s1] sm:$0xff]  ;;  %v60_v12 = vld [vmem:[%s7256_s1 + $0x10] sm:$0x3f] }
   0x4   :  { %4026 = vmatprep.subr.msk.bf16.mxu0 %vm4818_vm2, %v4024_v4  ;;  %v4030_v11 = vpack.c.bf16 %v61_v9, %v59_v8  ;;  %v4848_v13 = vld [vmem:[%s7257_s0 + $0x8] sm:$0xff]  ;;  %v4033_v14 = vpack.c.bf16 %v60_v12, %v58_v10  ;;  %v3512_v16 = vld [vmem:[%s7256_s1 + $0x58] sm:$0x3f]  ;;  %v4866_v17 = vld [vmem:[%s7257_s0 + $0x10] sm:$0xff] }
   0x5   :  { %4029 = vmatpush1.bf16.msk.msra.mxu0 %vm4818_vm2, %v4027_v7  ;;  %v3510_v15 = vld [vmem:[%s7256_s1 + $0x48] sm:$0xff]  ;;  %v4876_v19 = vld [vmem:[%s7257_s0 + $0x18] sm:$0xff]  ;;  %v4884_v20 = vld [vmem:[%s7257_s0 + $0x20] sm:$0xff] }
   0x6   :  { %4032 = vmatprep.subr.msk.bf16.mxu0 %vm4818_vm2, %v4030_v11  ;;  %v4036_v18 = vpack.c.bf16 %v3512_v16, %v3510_v15  ;;  %v4892_v21 = vld [vmem:[%s7257_s0 + $0x28] sm:$0xff]  ;;  %v3531_v23 = vld [vmem:[%s7258_s3 + $0x260] sm:$0xff]  ;;  %v3530_v25 = vld [vmem:[%s7258_s3 + $0x258] sm:$0xff] }
   0x7   :  { %v3528_v22 = vld [vmem:[%s7258_s3 + $0x248] sm:$0xff]  ;;  %v3527_v24 = vld [vmem:[%s7258_s3 + $0x240] sm:$0xff]  ;;  %v3534_v28 = vld [vmem:[%s7258_s3 + $0x278] sm:$0xff] }
   0x8   :  { %3483 = vmatmul.mubr.msk.f32.vlgmr.msra.gmra.mrb[0].mxu0 %vm68_vm3, %v4848_v13  ;;  %v4042_v26 = vpack.c.bf16 %v3531_v23, %v3528_v22  ;;  %v4044_v27 = vpack.c.bf16 %v3530_v25, %v3527_v24  ;;  %v3537_v29 = vld [vmem:[%s7258_s3 + $0x290] sm:$0xff]  ;;  %v3536_v31 = vld [vmem:[%s7258_s3 + $0x288] sm:$0xff]  ;;  %v3543_v36 = vld [vmem:[%s7258_s3 + $0x2c0] sm:$0xff]  ;;  %v4737_v24 = vmov 0.0|0.0  }
   0x9   :  { %4035 = vmatpush1.bf16.msk.msra.mxu0 %vm4818_vm2, %v4033_v14  ;;  %182 = vmatprep.mubr.f32.mxu0 %v4736_v3  ;;  %v3533_v30 = vld [vmem:[%s7258_s3 + $0x270] sm:$0xff]  ;;  %v4046_v33 = vpack.c.bf16 %v3537_v29, %v3534_v28  ;;  %v3540_v34 = vld [vmem:[%s7258_s3 + $0x2a8] sm:$0xff]  ;;  %v3539_v38 = vld [vmem:[%s7258_s3 + $0x2a0] sm:$0xff] }
   0xa   :  { %4038 = vmatprep.subr.msk.bf16.mxu0 %vm4818_vm2, %v4036_v18  ;;  %v4924_v32 = vld [vmem:[%s7257_s0 + $0x30] sm:$0xff]  ;;  %4043 = vmatprep.subr.bf16.mxu1 %v4042_v26  ;;  %v4048_v35 = vpack.c.bf16 %v3536_v31, %v3533_v30  ;;  %v4050_v37 = vpack.c.bf16 %v3543_v36, %v3540_v34  ;;  %v3542_v39 = vld [vmem:[%s7258_s3 + $0x2b8] sm:$0xff]  ;;  %v3548_v46 = vld [vmem:[%s7258_s3 + $0x2e8] sm:$0xff] }
   0xb   :  { %4045 = vmatpush1.bf16.msra.mxu1 %v4044_v27  ;;  %v3546_v40 = vld [vmem:[%s7258_s3 + $0x2d8] sm:$0xff]  ;;  %v3549_v41 = vld [vmem:[%s7258_s3 + $0x2f0] sm:$0xff]  ;;  %v4052_v43 = vpack.c.bf16 %v3542_v39, %v3539_v38  ;;  %v3552_v47 = vld [vmem:[%s7258_s3 + $0x308] sm:$0xff] }
   0xc   :  { %3484 = vmatmul.mubr.msk.f32.gmra.mrb[2].mxu0 %vm68_vm3, %v4866_v17  ;;  %4047 = vmatprep.subr.bf16.mxu1 %v4046_v33  ;;  %v4950_v42 = vld [vmem:[%s7257_s0 + $0x38] sm:$0xff]  ;;  %v4054_v44 = vpack.c.bf16 %v3549_v41, %v3546_v40  ;;  %v3545_v45 = vld [vmem:[%s7258_s3 + $0x2d0] sm:$0xff]  ;;  %v3555_v48 = vld [vmem:[%s7258_s3 + $0x320] sm:$0xff] }
   0xd   :  { %188 = vmatprep.mubr.f32.mxu0 %v4736_v3  ;;  %v4970_v49 = vld [vmem:[%s7257_s0 + $0x40] sm:$0xff]  ;;  %v4056_v50 = vpack.c.bf16 %v3548_v46, %v3545_v45  ;;  %v4058_v51 = vpack.c.bf16 %v3555_v48, %v3552_v47  ;;  %v3554_v53 = vld [vmem:[%s7258_s3 + $0x318] sm:$0xff]  ;;  %v3561_v55 = vld [vmem:[%s7258_s3 + $0x350] sm:$0xff] }
   0xe   :  { %v3551_v52 = vld [vmem:[%s7258_s3 + $0x300] sm:$0xff]  ;;  %v3558_v54 = vld [vmem:[%s7258_s3 + $0x338] sm:$0xff]  ;;  %v4990_v56 = vld [vmem:[%s7257_s0 + $0x48] sm:$0xff] }
   0xf   :  { %4049 = vmatpush1.bf16.msra.mxu1 %v4048_v35  ;;  %v4060_v57 = vpack.c.bf16 %v3554_v53, %v3551_v52  ;;  %v4062_v58 = vpack.c.bf16 %v3561_v55, %v3558_v54  ;;  %v3557_v59 = vld [vmem:[%s7258_s3 + $0x330] sm:$0xff]  ;;  %v3560_v60 = vld [vmem:[%s7258_s3 + $0x348] sm:$0xff]  ;;  %v3567_v62 = vld [vmem:[%s7258_s3 + $0x380] sm:$0xff] }
  0x10   :  { %3485 = vmatmul.mubr.msk.f32.gmra.mrb[4].mxu0 %vm68_vm3, %v4876_v19  ;;  %4051 = vmatprep.subr.bf16.mxu1 %v4050_v37  ;;  %v3564_v61 = vld [vmem:[%s7258_s3 + $0x368] sm:$0xff]  ;;  %v5010_v63 = vld [vmem:[%s7257_s0 + $0x50] sm:$0xff]  ;;  %v4064_v0 = vpack.c.bf16 %v3560_v60, %v3557_v59  ;;  %v3563_v4 = vld [vmem:[%s7258_s3 + $0x360] sm:$0xff] }
  0x11   :  { %194 = vmatprep.mubr.f32.mxu0 %v4736_v3  ;;  %v4066_v1 = vpack.c.bf16 %v3567_v62, %v3564_v61  ;;  %v3566_v5 = vld [vmem:[%s7258_s3 + $0x378] sm:$0xff]  ;;  %v3573_v7 = vld [vmem:[%s7258_s3 + $0x3b0] sm:$0xff]  ;;  %v3572_v12 = vld [vmem:[%s7258_s3 + $0x3a8] sm:$0xff] }
  0x12   :  { %v3570_v6 = vld [vmem:[%s7258_s3 + $0x398] sm:$0xff]  ;;  %v4068_v9 = vpack.c.bf16 %v3566_v5, %v3563_v4  ;;  %v3569_v11 = vld [vmem:[%s7258_s3 + $0x390] sm:$0xff]  ;;  %v5044_v14 = vld [vmem:[%s7257_s0 + $0x60] sm:$0xff] }
  0x13   :  { %4053 = vmatpush1.bf16.msra.mxu1 %v4052_v43  ;;  %v5030_v8 = vld [vmem:[%s7257_s0 + $0x58] sm:$0xff]  ;;  %v4070_v10 = vpack.c.bf16 %v3573_v7, %v3570_v6  ;;  %v3509_v15 = vld [vmem:[%s7256_s1 + $0x40] sm:$0xff]  ;;  %v3511_v16 = vld [vmem:[%s7256_s1 + $0x50] sm:$0x3f]  ;;  %v4072_v18 = vpack.c.bf16 %v3572_v12, %v3569_v11 }
  0x14   :  { %3486 = vmatmul.mubr.msk.f32.gmra.mrb[6].mxu0 %vm68_vm3, %v4884_v20  ;;  %4055 = vmatprep.subr.bf16.mxu1 %v4054_v44  ;;  %v46_v22 = vld [vmem:[%s7257_s0] sm:$0xff]  ;;  %v4039_v23 = vpack.c.bf16 %v3511_v16, %v3509_v15  ;;  %v722_v2 = vld [vmem:[%s7258_s3 + $0x10] sm:$0xff]  ;;  %v731_v27 = vld [vmem:[%s7258_s3 + $0x58] sm:$0xff] }
  0x15   :  { %200 = vmatprep.mubr.f32.mxu0 %v4736_v3  ;;  %v728_v26 = vld [vmem:[%s7258_s3 + $0x40] sm:$0xff]  ;;  %v734_v29 = vld [vmem:[%s7258_s3 + $0x70] sm:$0xff]  ;;  %v737_v30 = vld [vmem:[%s7258_s3 + $0x88] sm:$0xff] }
  0x16   :  { %v4178_v28 = vpack.c.bf16 %v731_v27, %v728_v26  ;;  %v740_v31 = vld [vmem:[%s7258_s3 + $0xa0] sm:$0xff]  ;;  %v743_v33 = vld [vmem:[%s7258_s3 + $0xb8] sm:$0xff]  ;;  %v746_v34 = vld [vmem:[%s7258_s3 + $0xd0] sm:$0xff] }
  0x17   :  { %4057 = vmatpush1.bf16.msra.mxu1 %v4056_v50  ;;  %v749_v35 = vld [vmem:[%s7258_s3 + $0xe8] sm:$0xff]  ;;  %v752_v36 = vld [vmem:[%s7258_s3 + $0x100] sm:$0xff]  ;;  %v755_v37 = vld [vmem:[%s7258_s3 + $0x118] sm:$0xff] }
  0x18   :  { %3487 = vmatmul.mubr.msk.f32.gmra.mrb[8].mxu0 %vm68_vm3, %v4892_v21  ;;  %4059 = vmatprep.subr.bf16.mxu1 %v4058_v51  ;;  %v758_v38 = vld [vmem:[%s7258_s3 + $0x130] sm:$0xff]  ;;  %v761_v39 = vld [vmem:[%s7258_s3 + $0x148] sm:$0xff]  ;;  %v764_v40 = vld [vmem:[%s7258_s3 + $0x160] sm:$0xff] }
  0x19   :  { %206 = vmatprep.mubr.f32.mxu0 %v4736_v3  ;;  %v767_v41 = vld [vmem:[%s7258_s3 + $0x178] sm:$0xff]  ;;  %v770_v43 = vld [vmem:[%s7258_s3 + $0x190] sm:$0xff]  ;;  %v773_v44 = vld [vmem:[%s7258_s3 + $0x1a8] sm:$0xff] }
  0x1a   :  { %v4199_v45 = vpack.c.bf16 %v773_v44, %v770_v43  ;;  %v406_v46 = vld [vmem:[%s7257_s0 + $0x68] sm:$0xff]  ;;  %v3579_v48 = vld [vmem:[%s7258_s3 + $0x3e0] sm:$0xff]  ;;  %v3578_v51 = vld [vmem:[%s7258_s3 + $0x3d8] sm:$0xff] }
  0x1b   :  { %4061 = vmatpush1.bf16.msra.mxu1 %v4060_v57  ;;  %v3576_v47 = vld [vmem:[%s7258_s3 + $0x3c8] sm:$0xff]  ;;  %v3575_v50 = vld [vmem:[%s7258_s3 + $0x3c0] sm:$0xff]  ;;  %v779_v54 = vld [vmem:[%s7258_s3 + $0x1d8] sm:$0xff] }
  0x1c   :  { %3488 = vmatmul.mubr.msk.f32.gmra.mrb[10].mxu0 %vm68_vm3, %v4924_v32  ;;  %4063 = vmatprep.subr.bf16.mxu1 %v4062_v58  ;;  %v776_v52 = vld [vmem:[%s7258_s3 + $0x1c0] sm:$0xff]  ;;  %v4076_v53 = vpack.c.bf16 %v3578_v51, %v3575_v50  ;;  %v3585_v57 = vld [vmem:[%s7258_s3 + $0x410] sm:$0xff]  ;;  %v3584_v60 = vld [vmem:[%s7258_s3 + $0x408] sm:$0xff] }
  0x1d   :  { %212 = vmatprep.mubr.f32.mxu0 %v4736_v3  ;;  %v4202_v55 = vpack.c.bf16 %v779_v54, %v776_v52  ;;  %v3581_v59 = vld [vmem:[%s7258_s3 + $0x3f0] sm:$0xff]  ;;  %v3591_v4 = vld [vmem:[%s7258_s3 + $0x440] sm:$0xff]  ;;  %v3590_v7 = vld [vmem:[%s7258_s3 + $0x438] sm:$0xff] }
  0x1e   :  { %v782_v61 = vld [vmem:[%s7258_s3 + $0x1f0] sm:$0xff]  ;;  %v4080_v62 = vpack.c.bf16 %v3584_v60, %v3581_v59  ;;  %v3587_v6 = vld [vmem:[%s7258_s3 + $0x420] sm:$0xff]  ;;  %v3594_v12 = vld [vmem:[%s7258_s3 + $0x458] sm:$0xff] }
  0x1f   :  { %4065 = vmatpush1.bf16.msra.mxu1 %v4064_v0  ;;  %v3593_v16 = vld [vmem:[%s7258_s3 + $0x450] sm:$0xff]  ;;  %v3647_v52 = vld [vmem:[%s7258_s3 + $0x4c0] sm:$0xff] }
  0x20   :  { %3489 = vmatmul.mubr.msk.f32.gmra.mrb[12].mxu0 %vm68_vm3, %v4950_v42  ;;  %4067 = vmatprep.subr.bf16.mxu1 %v4066_v1  ;;  %v3588_v1 = vld [vmem:[%s7258_s3 + $0x428] sm:$0xff]  ;;  %v3535_v60 = vld [vmem:[%s7258_s3 + $0x280] sm:$0xff] }
  0x21   :  { %218 = vmatprep.mubr.f32.mxu0 %v4736_v3  ;;  %v4082_v5 = vpack.c.bf16 %v3591_v4, %v3588_v1  ;;  %v3653_v1 = vld [vmem:[%s7258_s3 + $0x4f0] sm:$0xff]  ;;  %v3656_v4 = vld [vmem:[%s7258_s3 + $0x508] sm:$0xff] }
  0x23   :  { %4069 = vmatpush1.bf16.msra.mxu1 %v4068_v9  ;;  %v4084_v9 = vpack.c.bf16 %v3590_v7, %v3587_v6 }
  0x24   :  { %3490 = vmatmul.mubr.msk.f32.gmra.mrb[14].mxu0 %vm68_vm3, %v4970_v49  ;;  %4071 = vmatprep.subr.bf16.mxu1 %v4070_v10  ;;  %v791_v10 = vld [vmem:[%s7258_s3 + $0x238] sm:$0xff] }
  0x25   :  { %224 = vmatprep.mubr.f32.mxu0 %v4736_v3 }
  0x27   :  { %4073 = vmatpush1.bf16.msra.mxu1 %v4072_v18  ;;  %v3596_v18 = vld [vmem:[%s7258_s3 + $0x468] sm:$0xff] }
  0x28   :  { %3491 = vmatmul.mubr.msk.f32.gmra.mrb[16].mxu0 %vm68_vm3, %v4990_v56 }
  0x29   :  { %230 = vmatprep.mubr.f32.mxu0 %v4736_v3 }
  0x2c   :  { %3492 = vmatmul.mubr.msk.f32.gmra.mrb[18].mxu0 %vm68_vm3, %v5010_v63 }
  0x2d   :  { %236 = vmatprep.mubr.f32.mxu0 %v4736_v3 }
  0x30   :  { %3493 = vmatmul.mubr.msk.f32.gmra.mrb[20].mxu0 %vm68_vm3, %v5030_v8 }
  0x31   :  { %242 = vmatprep.mubr.f32.mxu0 %v4736_v3 }
  0x34   :  { %3494 = vmatmul.mubr.msk.f32.gmra.mrb[22].mxu0 %vm68_vm3, %v5044_v14 }
  0x35   :  { %322 = vmatprep.mubr.f32.mxu0 %v4736_v3 }
  0x38   :  { %3497 = vmatmul.mubr.msk.f32.vlgmr.msra.gmra.mrb[0].mxu0 %vm68_vm3, %v46_v22  ;;  %v4088_v22 = vpack.c.bf16 %v3596_v18, %v3593_v16  ;;  %v3659_v18 = vld [vmem:[%s7258_s3 + $0x520] sm:$0xff] }
  0x39   :  { %4041 = vmatpush1.bf16.msk.msra.mxu0 %vm4818_vm2, %v4039_v23  ;;  %328 = vmatprep.mubr.f32.mxu0 %v4736_v3  ;;  %v617_v23 = vlaneseq }
  0x3a   :  { %4174 = vmatprep.subr.bf16.mxu0 %v4737_v24 }
  0x3c   :  { %3498 = vmatmul.mubr.msk.f32.gmra.mrb[2].mxu0 %vm68_vm3, %v4848_v13  ;;  %v725_v13 = vld [vmem:[%s7258_s3 + $0x28] sm:$0xff] }
  0x3d   :  { %334 = vmatprep.mubr.f32.mxu0 %v4736_v3  ;;  %v4175_v25 = vpack.c.bf16 %v725_v13, %v722_v2  ;;  %v5266_v2 = vshrl.u32 %v617_v23, 7 }
  0x3f   :  { %v619_v13 = vsub.s32 0, %v5266_v2  ;;  %v623_v26 = vsub.s32 1, %v5266_v2 }
  0x40   :  { %3499 = vmatmul.mubr.msk.f32.gmra.mrb[4].mxu0 %vm68_vm3, %v4866_v17 }
  0x41   :  { %340 = vmatprep.mubr.f32.mxu0 %v4736_v3 }
  0x44   :  { %3500 = vmatmul.mubr.msk.f32.gmra.mrb[6].mxu0 %vm68_vm3, %v4876_v19 }
  0x45   :  { %346 = vmatprep.mubr.f32.mxu0 %v4736_v3 }
  0x48   :  { %3501 = vmatmul.mubr.msk.f32.gmra.mrb[8].mxu0 %vm68_vm3, %v4884_v20 }
  0x49   :  { %352 = vmatprep.mubr.f32.mxu0 %v4736_v3 }
  0x4c   :  { %3502 = vmatmul.mubr.msk.f32.gmra.mrb[10].mxu0 %vm68_vm3, %v4892_v21 }
  0x4d   :  { %358 = vmatprep.mubr.f32.mxu0 %v4736_v3 }
  0x50   :  { %3503 = vmatmul.mubr.msk.f32.gmra.mrb[12].mxu0 %vm68_vm3, %v4924_v32 }
  0x51   :  { %364 = vmatprep.mubr.f32.mxu0 %v4736_v3 }
  0x54   :  { %3504 = vmatmul.mubr.msk.f32.gmra.mrb[14].mxu0 %vm68_vm3, %v4950_v42 }
  0x55   :  { %370 = vmatprep.mubr.f32.mxu0 %v4736_v3 }
  0x58   :  { %3505 = vmatmul.mubr.msk.f32.gmra.mrb[16].mxu0 %vm68_vm3, %v4970_v49 }
  0x59   :  { %376 = vmatprep.mubr.f32.mxu0 %v4736_v3 }
  0x5c   :  { %3506 = vmatmul.mubr.msk.f32.gmra.mrb[18].mxu0 %vm68_vm3, %v4990_v56 }
  0x5d   :  { %382 = vmatprep.mubr.f32.mxu0 %v4736_v3 }
  0x60   :  { %3507 = vmatmul.mubr.msk.f32.gmra.mrb[20].mxu0 %vm68_vm3, %v5010_v63 }
  0x61   :  { %388 = vmatprep.mubr.f32.mxu0 %v4736_v3 }
  0x64   :  { %3508 = vmatmul.mubr.msk.f32.gmra.mrb[22].mxu0 %vm68_vm3, %v5030_v8 }
  0x65   :  { %518 = vmatprep.mubr.f32.mxu0 %v4736_v3 }
  0x68   :  { %3515 = vmatmul.mubr.msk.f32.vlgmr.msra.gmra.mrb[0].mxu0 %vm68_vm3, %v4866_v17  ;;  %v4181_v17 = vpack.c.bf16 %v737_v30, %v734_v29 }
  0x69   :  { %524 = vmatprep.mubr.f32.mxu0 %v4736_v3  ;;  %4176 = vmatpush1.bf16.msra.mxu0 %v4175_v25  ;;  %v615_v25 = vld [vmem:[%s7259_s2] sm:$0x3] }
  0x6a   :  { %4177 = vmatprep.subr.bf16.mxu0 %v4737_v24  ;;  %v5275_v27 = vrot.slane %v615_v25, %v619_v13 }
  0x6c   :  { %3516 = vmatmul.mubr.msk.f32.gmra.mrb[2].mxu0 %vm68_vm3, %v4876_v19  ;;  %v4184_v19 = vpack.c.bf16 %v743_v33, %v740_v31 }
  0x6d   :  { %530 = vmatprep.mubr.f32.mxu0 %v4736_v3  ;;  %4179 = vmatpush1.bf16.msra.mxu0 %v4178_v28  ;;  %v5279_v28 = vrot.slane %v615_v25, %v623_v26 }
  0x6e   :  { %4180 = vmatprep.subr.bf16.mxu0 %v4737_v24 }
  0x70   :  { %3517 = vmatmul.mubr.msk.f32.gmra.mrb[4].mxu0 %vm68_vm3, %v4884_v20  ;;  %v4187_v20 = vpack.c.bf16 %v749_v35, %v746_v34 }
  0x71   :  { %536 = vmatprep.mubr.f32.mxu0 %v4736_v3  ;;  %4182 = vmatpush1.bf16.msra.mxu0 %v4181_v17 }
  0x72   :  { %4183 = vmatprep.subr.bf16.mxu0 %v4737_v24 }
  0x74   :  { %3518 = vmatmul.mubr.msk.f32.gmra.mrb[6].mxu0 %vm68_vm3, %v4892_v21  ;;  %v4190_v21 = vpack.c.bf16 %v755_v37, %v752_v36 }
  0x75   :  { %542 = vmatprep.mubr.f32.mxu0 %v4736_v3  ;;  %4185 = vmatpush1.bf16.msra.mxu0 %v4184_v19 }
  0x76   :  { %4186 = vmatprep.subr.bf16.mxu0 %v4737_v24 }
  0x78   :  { %3519 = vmatmul.mubr.msk.f32.gmra.mrb[8].mxu0 %vm68_vm3, %v4924_v32  ;;  %v4193_v32 = vpack.c.bf16 %v761_v39, %v758_v38 }
  0x79   :  { %548 = vmatprep.mubr.f32.mxu0 %v4736_v3  ;;  %4188 = vmatpush1.bf16.msra.mxu0 %v4187_v20 }
  0x7a   :  { %4189 = vmatprep.subr.bf16.mxu0 %v4737_v24 }
  0x7c   :  { %3520 = vmatmul.mubr.msk.f32.gmra.mrb[10].mxu0 %vm68_vm3, %v4950_v42  ;;  %v4196_v42 = vpack.c.bf16 %v767_v41, %v764_v40  ;;  %v3641_v40 = vld [vmem:[%s7258_s3 + $0x490] sm:$0xff]  ;;  %v3644_v41 = vld [vmem:[%s7258_s3 + $0x4a8] sm:$0xff] }
  0x7d   :  { %554 = vmatprep.mubr.f32.mxu0 %v4736_v3  ;;  %4191 = vmatpush1.bf16.msra.mxu0 %v4190_v21 }
  0x7e   :  { %4192 = vmatprep.subr.bf16.mxu0 %v4737_v24 }
  0x80   :  { %3521 = vmatmul.mubr.msk.f32.gmra.mrb[12].mxu0 %vm68_vm3, %v4970_v49  ;;  %v4074_v49 = vpack.c.bf16 %v3579_v48, %v3576_v47  ;;  %v3529_v47 = vld [vmem:[%s7258_s3 + $0x250] sm:$0xff]  ;;  %v3532_v48 = vld [vmem:[%s7258_s3 + $0x268] sm:$0xff] }
  0x81   :  { %560 = vmatprep.mubr.f32.mxu0 %v4736_v3  ;;  %4194 = vmatpush1.bf16.msra.mxu0 %v4193_v32 }
  0x82   :  { %4195 = vmatprep.subr.bf16.mxu0 %v4737_v24  ;;  %4075 = vmatprep.subr.bf16.mxu1 %v4074_v49 }
  0x83   :  { %4077 = vmatpush1.bf16.msra.mxu1 %v4076_v53  ;;  %v3650_v53 = vld [vmem:[%s7258_s3 + $0x4d8] sm:$0xff] }
  0x84   :  { %3522 = vmatmul.mubr.msk.f32.gmra.mrb[14].mxu0 %vm68_vm3, %v4990_v56  ;;  %v3582_v56 = vld [vmem:[%s7258_s3 + $0x3f8] sm:$0xff]  ;;  %v4262_v59 = vpack.c.bf16 %v3650_v53, %v3647_v52  ;;  %v3671_v52 = vld [vmem:[%s7258_s3 + $0x580] sm:$0xff] }
  0x85   :  { %566 = vmatprep.mubr.f32.mxu0 %v4736_v3  ;;  %4197 = vmatpush1.bf16.msra.mxu0 %v4196_v42  ;;  %v4078_v58 = vpack.c.bf16 %v3585_v57, %v3582_v56  ;;  %v3674_v53 = vld [vmem:[%s7258_s3 + $0x598] sm:$0xff] }
  0x86   :  { %4198 = vmatprep.subr.bf16.mxu0 %v4737_v24 }
  0x87   :  { %4079 = vmatprep.subr.bf16.mxu1 %v4078_v58  ;;  %v4091_v58 = vpack.c.bf16 %v3532_v48, %v3529_v47  ;;  %v3556_v47 = vld [vmem:[%s7258_s3 + $0x328] sm:$0xff] }
  0x88   :  { %3523 = vmatmul.mubr.msk.f32.gmra.mrb[16].mxu0 %vm68_vm3, %v5010_v63  ;;  %v785_v63 = vld [vmem:[%s7258_s3 + $0x208] sm:$0xff]  ;;  %4081 = vmatpush1.bf16.msra.mxu1 %v4080_v62 }
  0x89   :  { %572 = vmatprep.mubr.f32.mxu0 %v4736_v3  ;;  %4200 = vmatpush1.bf16.msra.mxu0 %v4199_v45  ;;  %v4205_v0 = vpack.c.bf16 %v785_v63, %v782_v61  ;;  %v3538_v61 = vld [vmem:[%s7258_s3 + $0x298] sm:$0xff] }
  0x8a   :  { %4201 = vmatprep.subr.bf16.mxu0 %v4737_v24  ;;  %4083 = vmatprep.subr.bf16.mxu1 %v4082_v5 }
  0x8c   :  { %3524 = vmatmul.mubr.msk.f32.gmra.mrb[18].mxu0 %vm68_vm3, %v5030_v8  ;;  %v788_v8 = vld [vmem:[%s7258_s3 + $0x220] sm:$0xff]  ;;  %4085 = vmatpush1.bf16.msra.mxu1 %v4084_v9  ;;  %v4094_v9 = vpack.c.bf16 %v3538_v61, %v3535_v60  ;;  %v4274_v60 = vpack.c.bf16 %v3674_v53, %v3671_v52 }
  0x8d   :  { %578 = vmatprep.mubr.f32.mxu0 %v4736_v3  ;;  %4203 = vmatpush1.bf16.msra.mxu0 %v4202_v55  ;;  %v4208_v11 = vpack.c.bf16 %v791_v10, %v788_v8  ;;  %v4265_v10 = vpack.c.bf16 %v3656_v4, %v3653_v1  ;;  %v3559_v61 = vld [vmem:[%s7258_s3 + $0x340] sm:$0xff] }
  0x8e   :  { %4204 = vmatprep.subr.bf16.mxu0 %v4737_v24 }
  0x90   :  { %3525 = vmatmul.mubr.msk.f32.gmra.mrb[20].mxu0 %vm68_vm3, %v5044_v14  ;;  %v3597_v14 = vld [vmem:[%s7258_s3 + $0x470] sm:$0xff] }
  0x91   :  { %584 = vmatprep.mubr.f32.mxu0 %v4736_v3  ;;  %4206 = vmatpush1.bf16.msra.mxu0 %v4205_v0  ;;  %v4086_v15 = vpack.c.bf16 %v3597_v14, %v3594_v12  ;;  %v3544_v12 = vld [vmem:[%s7258_s3 + $0x2c8] sm:$0xff] }
  0x92   :  { %4207 = vmatprep.subr.bf16.mxu0 %v4737_v24 }
  0x93   :  { %4087 = vmatprep.subr.bf16.mxu1 %v4086_v15 }
  0x94   :  { %3526 = vmatmul.mubr.msk.f32.gmra.mrb[22].mxu0 %vm68_vm3, %v406_v46  ;;  %4089 = vmatpush1.bf16.msra.mxu1 %v4088_v22  ;;  %v4259_v46 = vpack.c.bf16 %v3644_v41, %v3641_v40  ;;  %v3662_v22 = vld [vmem:[%s7258_s3 + $0x538] sm:$0xff] }
  0x95   :  { %4209 = vmatpush1.bf16.msra.mxu0 %v4208_v11  ;;  %4090 = vmatprep.subr.bf16.mxu1 %v4737_v24  ;;  %v3541_v11 = vld [vmem:[%s7258_s3 + $0x2b0] sm:$0xff] }
  0x96   :  { %4258 = vmatprep.subr.bf16.mxu0 %v4737_v24 }
 0x13b   :  { %v520_v29 = vpop.f32.mrb[0].mxu0 }
 0x13c   :  { %v5282_v30 = vadd.f32 %v5275_v27, %v520_v29  ;;  %v522_v17 = vpop.f32.mrb[1].mxu0 }
 0x13d   :  { %v628_v31 = vadd.f32 %v5279_v28, %v522_v17 }
 0x13e   :  { %v651_v33 = vmax.f32 %v5282_v30, 0.0  ;;  %v3658_v30 = vld [vmem:[%s7258_s3 + $0x518] sm:$0xff] }
 0x13f   :  { %v652_v19 = vmax.f32 %v628_v31, 0.0  ;;  %v526_v34 = vpop.f32.mrb[2].mxu0  ;;  %v4097_v31 = vpack.c.bf16 %v3544_v12, %v3541_v11 }
 0x140   :  { %v629_v35 = vadd.f32 %v5275_v27, %v526_v34  ;;  %v528_v20 = vpop.f32.mrb[3].mxu0  ;;  %v3547_v34 = vld [vmem:[%s7258_s3 + $0x2e0] sm:$0xff] }
 0x141   :  { %677 = vst.msk [vmem:[#allocation2 + $0x8] sm:$0xff] %vm676_vm4, %v652_v19  ;;  %v630_v36 = vadd.f32 %v5279_v28, %v528_v20  ;;  %v4268_v19 = vpack.c.bf16 %v3662_v22, %v3659_v18  ;;  %v3568_v18 = vld [vmem:[%s7258_s3 + $0x388] sm:$0xff] }
 0x142   :  { %v5289_v37 = vmax.f32 %v629_v35, 0.0  ;;  %v3550_v35 = vld [vmem:[%s7258_s3 + $0x2f8] sm:$0xff] }
 0x143   :  { %v654_v21 = vmax.f32 %v630_v36, 0.0  ;;  %v532_v38 = vpop.f32.mrb[4].mxu0 }
 0x144   :  { %v631_v39 = vadd.f32 %v5275_v27, %v532_v38  ;;  %v534_v32 = vpop.f32.mrb[5].mxu0  ;;  %v3665_v38 = vld [vmem:[%s7258_s3 + $0x550] sm:$0xff] }
 0x145   :  { %679 = vst.msk [vmem:[#allocation2 + $0x18] sm:$0xff] %vm676_vm4, %v654_v21  ;;  %v632_v42 = vadd.f32 %v5279_v28, %v534_v32 }
 0x146   :  { %v5300_v43 = vmax.f32 %v631_v39, 0.0  ;;  %v3668_v39 = vld [vmem:[%s7258_s3 + $0x568] sm:$0xff] }
 0x147   :  { %v656_v44 = vmax.f32 %v632_v42, 0.0  ;;  %v538_v45 = vpop.f32.mrb[6].mxu0 }
 0x148   :  { %v633_v49 = vadd.f32 %v5275_v27, %v538_v45  ;;  %v540_v50 = vpop.f32.mrb[7].mxu0  ;;  %v5309_v51 = vld [vmem:[#allocation2 + $0x8] sm:$0xff]  ;;  %v4271_v45 = vpack.c.bf16 %v3668_v39, %v3665_v38  ;;  %v3571_v39 = vld [vmem:[%s7258_s3 + $0x3a0] sm:$0xff] }
 0x149   :  { %681 = vst.msk [vmem:[#allocation2 + $0x28] sm:$0xff] %vm676_vm4, %v656_v44  ;;  %v634_v54 = vadd.f32 %v5279_v28, %v540_v50  ;;  %3629 = vmatprep.mubr.msk.f32.mxu0 %vm676_vm4, %v5309_v51  ;;  %v4100_v44 = vpack.c.bf16 %v3550_v35, %v3547_v34 }
 0x14a   :  { %v5321_v55 = vmax.f32 %v633_v49, 0.0  ;;  %1330 = vmatmul.mubr.f32.vlgmr.msra.gmra.mrb[24].mxu0 %v651_v33 }
 0x14b   :  { %v658_v56 = vmax.f32 %v634_v54, 0.0  ;;  %4260 = vmatpush1.bf16.msra.mxu0 %v4259_v46  ;;  %v544_v57 = vpop.f32.mrb[8].mxu0  ;;  %v3553_v46 = vld [vmem:[%s7258_s3 + $0x310] sm:$0xff] }
 0x14c   :  { %v635_v62 = vadd.f32 %v5275_v27, %v544_v57  ;;  %v546_v63 = vpop.f32.mrb[9].mxu0  ;;  %v5332_v0 = vld [vmem:[#allocation2 + $0x18] sm:$0xff]  ;;  %4261 = vmatprep.subr.bf16.mxu0 %v4737_v24 }
 0x14d   :  { %683 = vst.msk [vmem:[#allocation2 + $0x38] sm:$0xff] %vm676_vm4, %v658_v56  ;;  %v636_v5 = vadd.f32 %v5279_v28, %v546_v63  ;;  %3599 = vmatprep.mubr.msk.f32.mxu1 %vm676_vm4, %v5332_v0  ;;  %3630 = vmatprep.mubr.msk.f32.mxu0 %vm676_vm4, %v5332_v0 }
 0x14e   :  { %v5347_v6 = vmax.f32 %v635_v62, 0.0  ;;  %962 = vmatmul.mubr.f32.vlgmr.msra.gmra.mrb[0].mxu1 %v5289_v37  ;;  %1335 = vmatmul.mubr.f32.gmra.mrb[26].mxu0 %v5289_v37  ;;  %v3562_v62 = vld [vmem:[%s7258_s3 + $0x358] sm:$0xff] }
 0x14f   :  { %v660_v7 = vmax.f32 %v636_v5, 0.0  ;;  %4092 = vmatpush1.bf16.msra.mxu1 %v4091_v58  ;;  %4263 = vmatpush1.bf16.msra.mxu0 %v4262_v59  ;;  %v550_v8 = vpop.f32.mrb[10].mxu0  ;;  %v4103_v59 = vpack.c.bf16 %v3556_v47, %v3553_v46  ;;  %v3677_v5 = vld [vmem:[%s7258_s3 + $0x5b0] sm:$0xff]  ;;  %v4106_v12 = vpack.c.bf16 %v3562_v62, %v3559_v61  ;;  %v3692_v46 = vld [vmem:[%s7258_s3 + $0x628] sm:$0xff]  ;;  %v3695_v62 = vld [vmem:[%s7258_s3 + $0x640] sm:$0xff] }
 0x150   :  { %v637_v14 = vadd.f32 %v5275_v27, %v550_v8  ;;  %v552_v15 = vpop.f32.mrb[11].mxu0  ;;  %v5358_v16 = vld [vmem:[#allocation2 + $0x28] sm:$0xff]  ;;  %4093 = vmatprep.subr.bf16.mxu1 %v4737_v24  ;;  %4264 = vmatprep.subr.bf16.mxu0 %v4737_v24 }
 0x151   :  { %685 = vst.msk [vmem:[#allocation2 + $0x48] sm:$0xff] %vm676_vm4, %v660_v7  ;;  %v638_v23 = vadd.f32 %v5279_v28, %v552_v15  ;;  %3600 = vmatprep.mubr.msk.f32.mxu1 %vm676_vm4, %v5358_v16  ;;  %3631 = vmatprep.mubr.msk.f32.mxu0 %vm676_vm4, %v5358_v16  ;;  %v3680_v7 = vld [vmem:[%s7258_s3 + $0x5c8] sm:$0xff]  ;;  %v3565_v15 = vld [vmem:[%s7258_s3 + $0x370] sm:$0xff] }
 0x152   :  { %v5374_v25 = vmax.f32 %v637_v14, 0.0  ;;  %968 = vmatmul.mubr.f32.gmra.mrb[2].mxu1 %v5300_v43  ;;  %1340 = vmatmul.mubr.f32.gmra.mrb[28].mxu0 %v5300_v43  ;;  %v4277_v14 = vpack.c.bf16 %v3680_v7, %v3677_v5 }
 0x153   :  { %v662_v29 = vmax.f32 %v638_v23, 0.0  ;;  %4095 = vmatpush1.bf16.msra.mxu1 %v4094_v9  ;;  %4266 = vmatpush1.bf16.msra.mxu0 %v4265_v10  ;;  %v556_v17 = vpop.f32.mrb[12].mxu0 }
 0x154   :  { %v639_v20 = vadd.f32 %v5275_v27, %v556_v17  ;;  %v558_v36 = vpop.f32.mrb[13].mxu0  ;;  %v5385_v21 = vld [vmem:[#allocation2 + $0x38] sm:$0xff]  ;;  %4096 = vmatprep.subr.bf16.mxu1 %v4737_v24  ;;  %4267 = vmatprep.subr.bf16.mxu0 %v4737_v24  ;;  %v3683_v17 = vld [vmem:[%s7258_s3 + $0x5e0] sm:$0xff] }
 0x155   :  { %687 = vst.msk [vmem:[#allocation2 + $0x58] sm:$0xff] %vm676_vm4, %v662_v29  ;;  %v640_v32 = vadd.f32 %v5279_v28, %v558_v36  ;;  %3601 = vmatprep.mubr.msk.f32.mxu1 %vm676_vm4, %v5385_v21  ;;  %3632 = vmatprep.mubr.msk.f32.mxu0 %vm676_vm4, %v5385_v21  ;;  %v4109_v36 = vpack.c.bf16 %v3568_v18, %v3565_v15 }
 0x156   :  { %v5401_v40 = vmax.f32 %v639_v20, 0.0  ;;  %974 = vmatmul.mubr.f32.gmra.mrb[4].mxu1 %v5321_v55  ;;  %1345 = vmatmul.mubr.f32.gmra.mrb[30].mxu0 %v5321_v55 }
 0x157   :  { %v664_v41 = vmax.f32 %v640_v32, 0.0  ;;  %4098 = vmatpush1.bf16.msra.mxu1 %v4097_v31  ;;  %4269 = vmatpush1.bf16.msra.mxu0 %v4268_v19  ;;  %v562_v42 = vpop.f32.mrb[14].mxu0  ;;  %v3686_v31 = vld [vmem:[%s7258_s3 + $0x5f8] sm:$0xff] }
 0x158   :  { %v641_v48 = vadd.f32 %v5275_v27, %v562_v42  ;;  %v564_v49 = vpop.f32.mrb[15].mxu0  ;;  %v5412_v50 = vld [vmem:[#allocation2 + $0x48] sm:$0xff]  ;;  %4099 = vmatprep.subr.bf16.mxu1 %v4737_v24  ;;  %4270 = vmatprep.subr.bf16.mxu0 %v4737_v24  ;;  %v4280_v38 = vpack.c.bf16 %v3686_v31, %v3683_v17  ;;  %v3574_v32 = vld [vmem:[%s7258_s3 + $0x3b8] sm:$0xff]  ;;  %v3707_v31 = vld [vmem:[%s7258_s3 + $0x6a0] sm:$0xff] }
 0x159   :  { %689 = vst.msk [vmem:[#allocation2 + $0x68] sm:$0xff] %vm676_vm4, %v664_v41  ;;  %v642_v54 = vadd.f32 %v5279_v28, %v564_v49  ;;  %3602 = vmatprep.mubr.msk.f32.mxu1 %vm676_vm4, %v5412_v50  ;;  %3633 = vmatprep.mubr.msk.f32.mxu0 %vm676_vm4, %v5412_v50  ;;  %v4112_v53 = vpack.c.bf16 %v3574_v32, %v3571_v39  ;;  %v721_v39 = vld [vmem:[%s7258_s3 + $0x8] sm:$0xff]  ;;  %v724_v32 = vld [vmem:[%s7258_s3 + $0x20] sm:$0xff] }
 0x15a   :  { %v5428_v56 = vmax.f32 %v641_v48, 0.0  ;;  %980 = vmatmul.mubr.f32.gmra.mrb[6].mxu1 %v5347_v6  ;;  %1350 = vmatmul.mubr.f32.gmra.mrb[32].mxu0 %v5347_v6 }
 0x15b   :  { %v666_v57 = vmax.f32 %v642_v54, 0.0  ;;  %4101 = vmatpush1.bf16.msra.mxu1 %v4100_v44  ;;  %4272 = vmatpush1.bf16.msra.mxu0 %v4271_v45  ;;  %v568_v58 = vpop.f32.mrb[16].mxu0  ;;  %v3689_v45 = vld [vmem:[%s7258_s3 + $0x610] sm:$0xff] }
 0x15c   :  { %v643_v63 = vadd.f32 %v5275_v27, %v568_v58  ;;  %v570_v1 = vpop.f32.mrb[17].mxu0  ;;  %v5439_v4 = vld [vmem:[#allocation2 + $0x58] sm:$0xff]  ;;  %4102 = vmatprep.subr.bf16.mxu1 %v4737_v24  ;;  %4273 = vmatprep.subr.bf16.mxu0 %v4737_v24  ;;  %v4283_v54 = vpack.c.bf16 %v3692_v46, %v3689_v45  ;;  %v3580_v58 = vld [vmem:[%s7258_s3 + $0x3e8] sm:$0xff]  ;;  %v720_v45 = vld [vmem:[%s7258_s3] sm:$0xff] }
 0x15d   :  { %691 = vst.msk [vmem:[#allocation2 + $0x78] sm:$0xff] %vm676_vm4, %v666_v57  ;;  %v644_v8 = vadd.f32 %v5279_v28, %v570_v1  ;;  %3603 = vmatprep.mubr.msk.f32.mxu1 %vm676_vm4, %v5439_v4  ;;  %3634 = vmatprep.mubr.msk.f32.mxu0 %vm676_vm4, %v5439_v4  ;;  %v3577_v57 = vld [vmem:[%s7258_s3 + $0x3d0] sm:$0xff]  ;;  %v723_v46 = vld [vmem:[%s7258_s3 + $0x18] sm:$0xff] }
 0x15e   :  { %v5455_v9 = vmax.f32 %v643_v63, 0.0  ;;  %986 = vmatmul.mubr.f32.gmra.mrb[8].mxu1 %v5374_v25  ;;  %1355 = vmatmul.mubr.f32.gmra.mrb[34].mxu0 %v5374_v25  ;;  %v3698_v63 = vld [vmem:[%s7258_s3 + $0x658] sm:$0xff]  ;;  %v4115_v7 = vpack.c.bf16 %v3580_v58, %v3577_v57  ;;  %v729_v57 = vld [vmem:[%s7258_s3 + $0x48] sm:$0xff] }
 0x15f   :  { %v668_v10 = vmax.f32 %v644_v8, 0.0  ;;  %4104 = vmatpush1.bf16.msra.mxu1 %v4103_v59  ;;  %4275 = vmatpush1.bf16.msra.mxu0 %v4274_v60  ;;  %v574_v11 = vpop.f32.mrb[18].mxu0  ;;  %v4286_v8 = vpack.c.bf16 %v3698_v63, %v3695_v62  ;;  %v733_v58 = vld [vmem:[%s7258_s3 + $0x68] sm:$0xff] }
 0x160   :  { %v645_v22 = vadd.f32 %v5275_v27, %v574_v11  ;;  %v576_v23 = vpop.f32.mrb[19].mxu0  ;;  %v5466_v29 = vld [vmem:[#allocation2 + $0x68] sm:$0xff]  ;;  %4105 = vmatprep.subr.bf16.mxu1 %v4737_v24  ;;  %4276 = vmatprep.subr.bf16.mxu0 %v4737_v24 }
 0x161   :  { %693 = vst.msk [vmem:[#allocation2 + $0x88] sm:$0xff] %vm676_vm4, %v668_v10  ;;  %v646_v19 = vadd.f32 %v5279_v28, %v576_v23  ;;  %3604 = vmatprep.mubr.msk.f32.mxu1 %vm676_vm4, %v5466_v29  ;;  %3635 = vmatprep.mubr.msk.f32.mxu0 %vm676_vm4, %v5466_v29  ;;  %v3586_v10 = vld [vmem:[%s7258_s3 + $0x418] sm:$0xff]  ;;  %v3592_v23 = vld [vmem:[%s7258_s3 + $0x448] sm:$0xff] }
 0x162   :  { %v5482_v34 = vmax.f32 %v645_v22, 0.0  ;;  %992 = vmatmul.mubr.f32.gmra.mrb[10].mxu1 %v5401_v40  ;;  %1360 = vmatmul.mubr.f32.gmra.mrb[36].mxu0 %v5401_v40  ;;  %v3589_v22 = vld [vmem:[%s7258_s3 + $0x430] sm:$0xff] }
 0x163   :  { %v670_v35 = vmax.f32 %v646_v19, 0.0  ;;  %4107 = vmatpush1.bf16.msra.mxu1 %v4106_v12  ;;  %4278 = vmatpush1.bf16.msra.mxu0 %v4277_v14  ;;  %v580_v20 = vpop.f32.mrb[20].mxu0  ;;  %v3701_v12 = vld [vmem:[%s7258_s3 + $0x670] sm:$0xff]  ;;  %v3704_v14 = vld [vmem:[%s7258_s3 + $0x688] sm:$0xff]  ;;  %v3710_v19 = vld [vmem:[%s7258_s3 + $0x6b8] sm:$0xff] }
 0x164   :  { %v647_v41 = vadd.f32 %v5275_v27, %v580_v20  ;;  %v582_v42 = vpop.f32.mrb[21].mxu0  ;;  %v5493_v44 = vld [vmem:[#allocation2 + $0x78] sm:$0xff]  ;;  %4108 = vmatprep.subr.bf16.mxu1 %v4737_v24  ;;  %4279 = vmatprep.subr.bf16.mxu0 %v4737_v24  ;;  %v4289_v18 = vpack.c.bf16 %v3704_v14, %v3701_v12  ;;  %v4292_v20 = vpack.c.bf16 %v3710_v19, %v3707_v31  ;;  %v738_v12 = vld [vmem:[%s7258_s3 + $0x90] sm:$0xff]  ;;  %v741_v14 = vld [vmem:[%s7258_s3 + $0xa8] sm:$0xff] }
 0x165   :  { %695 = vst.msk [vmem:[#allocation2 + $0x98] sm:$0xff] %vm676_vm4, %v670_v35  ;;  %v648_v47 = vadd.f32 %v5279_v28, %v582_v42  ;;  %3605 = vmatprep.mubr.msk.f32.mxu1 %vm676_vm4, %v5493_v44  ;;  %3636 = vmatprep.mubr.msk.f32.mxu0 %vm676_vm4, %v5493_v44  ;;  %v4121_v35 = vpack.c.bf16 %v3592_v23, %v3589_v22  ;;  %v744_v31 = vld [vmem:[%s7258_s3 + $0xc0] sm:$0xff]  ;;  %v747_v19 = vld [vmem:[%s7258_s3 + $0xd8] sm:$0xff] }
 0x166   :  { %v5509_v48 = vmax.f32 %v647_v41, 0.0  ;;  %998 = vmatmul.mubr.f32.gmra.mrb[12].mxu1 %v5428_v56  ;;  %1365 = vmatmul.mubr.f32.gmra.mrb[38].mxu0 %v5428_v56  ;;  %v4126_v42 = vpack.c.bf16 %v724_v32, %v721_v39  ;;  %v4140_v22 = vpack.c.bf16 %v741_v14, %v738_v12  ;;  %v750_v39 = vld [vmem:[%s7258_s3 + $0xf0] sm:$0xff]  ;;  %v753_v32 = vld [vmem:[%s7258_s3 + $0x108] sm:$0xff] }
 0x167   :  { %v672_v49 = vmax.f32 %v648_v47, 0.0  ;;  %4110 = vmatpush1.bf16.msra.mxu1 %v4109_v36  ;;  %4281 = vmatpush1.bf16.msra.mxu0 %v4280_v38  ;;  %v586_v52 = vpop.f32.mrb[22].mxu0  ;;  %v3595_v36 = vld [vmem:[%s7258_s3 + $0x460] sm:$0xff]  ;;  %v3598_v38 = vld [vmem:[%s7258_s3 + $0x478] sm:$0xff] }
 0x168   :  { %v5520_v59 = vadd.f32 %v5275_v27, %v586_v52  ;;  %v588_v60 = vpop.f32.mrb[23].mxu0  ;;  %v5522_v61 = vld [vmem:[#allocation2 + $0x88] sm:$0xff]  ;;  %4111 = vmatprep.subr.bf16.mxu1 %v4737_v24  ;;  %4282 = vmatprep.subr.bf16.mxu0 %v4737_v24  ;;  %v4124_v41 = vpack.c.bf16 %v3598_v38, %v3595_v36  ;;  %v727_v47 = vld [vmem:[%s7258_s3 + $0x38] sm:$0xff]  ;;  %v4128_v52 = vpack.c.bf16 %v723_v46, %v720_v45 }
 0x169   :  { %697 = vst.msk [vmem:[#allocation2 + $0xa8] sm:$0xff] %vm676_vm4, %v672_v49  ;;  %v650_v27 = vadd.f32 %v5279_v28, %v588_v60  ;;  %3606 = vmatprep.mubr.msk.f32.mxu1 %vm676_vm4, %v5522_v61  ;;  %3637 = vmatprep.mubr.msk.f32.mxu0 %vm676_vm4, %v5522_v61  ;;  %v3583_v28 = vld [vmem:[%s7258_s3 + $0x400] sm:$0xff]  ;;  %v730_v49 = vld [vmem:[%s7258_s3 + $0x50] sm:$0xff]  ;;  %v4144_v36 = vpack.c.bf16 %v747_v19, %v744_v31 }
 0x16a   :  { %v673_v1 = vmax.f32 %v5520_v59, 0.0  ;;  %1004 = vmatmul.mubr.f32.gmra.mrb[14].mxu1 %v5455_v9  ;;  %1370 = vmatmul.mubr.f32.gmra.mrb[40].mxu0 %v5455_v9  ;;  %v4118_v15 = vpack.c.bf16 %v3586_v10, %v3583_v28  ;;  %v736_v60 = vld [vmem:[%s7258_s3 + $0x80] sm:$0xff]  ;;  %v4148_v45 = vpack.c.bf16 %v753_v32, %v750_v39  ;;  %v790_v39 = vld [vmem:[%s7258_s3 + $0x230] sm:$0xff] }
 0x16b   :  { %v674_v5 = vmax.f32 %v650_v27, 0.0  ;;  %4113 = vmatpush1.bf16.msra.mxu1 %v4112_v53  ;;  %4284 = vmatpush1.bf16.msra.mxu0 %v4283_v54  ;;  %v4130_v53 = vpack.c.bf16 %v730_v49, %v727_v47  ;;  %v726_v54 = vld [vmem:[%s7258_s3 + $0x30] sm:$0xff]  ;;  %v4134_v63 = vpack.c.bf16 %v736_v60, %v733_v58  ;;  %v732_v27 = vld [vmem:[%s7258_s3 + $0x60] sm:$0xff]  ;;  %v759_v49 = vld [vmem:[%s7258_s3 + $0x138] sm:$0xff] }
 0x16c   :  { %v5547_v11 = vld [vmem:[#allocation2 + $0x98] sm:$0xff]  ;;  %4114 = vmatprep.subr.bf16.mxu1 %v4737_v24  ;;  %4285 = vmatprep.subr.bf16.mxu0 %v4737_v24  ;;  %v4132_v62 = vpack.c.bf16 %v729_v57, %v726_v54  ;;  %v756_v47 = vld [vmem:[%s7258_s3 + $0x120] sm:$0xff]  ;;  %v762_v58 = vld [vmem:[%s7258_s3 + $0x150] sm:$0xff] }
 0x16d   :  { %699 = vst.msk [vmem:[#allocation2 + $0xb8] sm:$0xff] %vm676_vm4, %v674_v5  ;;  %3607 = vmatprep.mubr.msk.f32.mxu1 %vm676_vm4, %v5547_v11  ;;  %3638 = vmatprep.mubr.msk.f32.mxu0 %vm676_vm4, %v5547_v11  ;;  %v735_v5 = vld [vmem:[%s7258_s3 + $0x78] sm:$0xff]  ;;  %v4152_v54 = vpack.c.bf16 %v759_v49, %v756_v47  ;;  %v765_v60 = vld [vmem:[%s7258_s3 + $0x168] sm:$0xff]  ;;  %v784_v31 = vld [vmem:[%s7258_s3 + $0x200] sm:$0xff] }
 0x16e   :  { %1010 = vmatmul.mubr.f32.gmra.mrb[16].mxu1 %v5482_v34  ;;  %1375 = vmatmul.mubr.f32.gmra.mrb[42].mxu0 %v5482_v34  ;;  %v4136_v28 = vpack.c.bf16 %v735_v5, %v732_v27  ;;  %v4156_v27 = vpack.c.bf16 %v765_v60, %v762_v58  ;;  %v3643_v47 = vld [vmem:[%s7258_s3 + $0x4a0] sm:$0xff] }
 0x16f   :  { %4116 = vmatpush1.bf16.msra.mxu1 %v4115_v7  ;;  %4287 = vmatpush1.bf16.msra.mxu0 %v4286_v8  ;;  %v739_v7 = vld [vmem:[%s7258_s3 + $0x98] sm:$0xff]  ;;  %v742_v8 = vld [vmem:[%s7258_s3 + $0xb0] sm:$0xff] }
 0x170   :  { %3721 = vmatprep.mubr.msk.f32.mxu0 %vm676_vm4, %v5358_v16  ;;  %v5572_v17 = vld [vmem:[#allocation2 + $0xa8] sm:$0xff]  ;;  %4117 = vmatprep.subr.bf16.mxu1 %v4737_v24  ;;  %v4138_v10 = vpack.c.bf16 %v742_v8, %v739_v7  ;;  %v768_v7 = vld [vmem:[%s7258_s3 + $0x180] sm:$0xff]  ;;  %v771_v8 = vld [vmem:[%s7258_s3 + $0x198] sm:$0xff] }
 0x171   :  { %3608 = vmatprep.mubr.msk.f32.mxu1 %vm676_vm4, %v5572_v17  ;;  %4288 = vmatprep.subr.bf16.mxu0 %v4737_v24  ;;  %v4160_v14 = vpack.c.bf16 %v771_v8, %v768_v7 }
 0x172   :  { %1016 = vmatmul.mubr.f32.gmra.mrb[18].mxu1 %v5509_v48 }
 0x173   :  { %4119 = vmatpush1.bf16.msra.mxu1 %v4118_v15  ;;  %4290 = vmatpush1.bf16.msra.mxu0 %v4289_v18  ;;  %v745_v15 = vld [vmem:[%s7258_s3 + $0xc8] sm:$0xff]  ;;  %v748_v18 = vld [vmem:[%s7258_s3 + $0xe0] sm:$0xff] }
 0x174   :  { %3609 = vmatprep.mubr.msk.f32.mxu1 %vm676_vm4, %v5332_v0  ;;  %4120 = vmatprep.subr.bf16.mxu1 %v4737_v24  ;;  %v4142_v23 = vpack.c.bf16 %v748_v18, %v745_v15  ;;  %v5760_v12 = vld [vmem:[#allocation2 + $0xb8] sm:$0xff]  ;;  %v774_v18 = vld [vmem:[%s7258_s3 + $0x1b0] sm:$0xff] }
 0x175   :  { %4291 = vmatprep.subr.bf16.mxu0 %v4737_v24 }
 0x177   :  { %4122 = vmatpush1.bf16.msra.mxu1 %v4121_v35  ;;  %4293 = vmatpush1.bf16.msra.mxu0 %v4292_v20  ;;  %v751_v35 = vld [vmem:[%s7258_s3 + $0xf8] sm:$0xff]  ;;  %v754_v20 = vld [vmem:[%s7258_s3 + $0x110] sm:$0xff] }
 0x178   :  { %4123 = vmatprep.subr.bf16.mxu1 %v4737_v24  ;;  %4324 = vmatprep.subr.bf16.mxu0 %v4737_v24  ;;  %v4146_v38 = vpack.c.bf16 %v754_v20, %v751_v35  ;;  %v780_v20 = vld [vmem:[%s7258_s3 + $0x1e0] sm:$0xff] }
 0x17a   :  { %1693 = vmatmul.mubr.f32.vlgmr.msra.gmra.mrb[44].mxu0 %v5300_v43 }
 0x17b   :  { %4125 = vmatpush1.bf16.msra.mxu1 %v4124_v41  ;;  %3722 = vmatprep.mubr.msk.f32.mxu0 %vm676_vm4, %v5385_v21  ;;  %v757_v41 = vld [vmem:[%s7258_s3 + $0x128] sm:$0xff] }
 0x17c   :  { %4127 = vmatprep.subr.bf16.mxu1 %v4126_v42  ;;  %v760_v42 = vld [vmem:[%s7258_s3 + $0x140] sm:$0xff] }
 0x17d   :  { %v4150_v46 = vpack.c.bf16 %v760_v42, %v757_v41  ;;  %v786_v42 = vld [vmem:[%s7258_s3 + $0x210] sm:$0xff] }
 0x17e   :  { %1087 = vmatmul.mubr.f32.vlgmr.msra.gmra.mrb[20].mxu1 %v5289_v37  ;;  %1698 = vmatmul.mubr.f32.gmra.mrb[46].mxu0 %v5321_v55 }
 0x17f   :  { %3610 = vmatprep.mubr.msk.f32.mxu1 %vm676_vm4, %v5358_v16  ;;  %4129 = vmatpush1.bf16.msra.mxu1 %v4128_v52  ;;  %v763_v52 = vld [vmem:[%s7258_s3 + $0x158] sm:$0xff] }
 0x180   :  { %3723 = vmatprep.mubr.msk.f32.mxu0 %vm676_vm4, %v5412_v50  ;;  %4131 = vmatprep.subr.bf16.mxu1 %v4130_v53  ;;  %v766_v53 = vld [vmem:[%s7258_s3 + $0x170] sm:$0xff] }
 0x181   :  { %v4154_v57 = vpack.c.bf16 %v766_v53, %v763_v52  ;;  %v3639_v52 = vld [vmem:[%s7258_s3 + $0x480] sm:$0xff]  ;;  %v3642_v53 = vld [vmem:[%s7258_s3 + $0x498] sm:$0xff] }
 0x182   :  { %1092 = vmatmul.mubr.f32.gmra.mrb[22].mxu1 %v5300_v43  ;;  %1703 = vmatmul.mubr.f32.gmra.mrb[48].mxu0 %v5347_v6  ;;  %v4212_v58 = vpack.c.bf16 %v3642_v53, %v3639_v52  ;;  %v3682_v52 = vld [vmem:[%s7258_s3 + $0x5d8] sm:$0xff]  ;;  %v3685_v53 = vld [vmem:[%s7258_s3 + $0x5f0] sm:$0xff] }
 0x183   :  { %3611 = vmatprep.mubr.msk.f32.mxu1 %vm676_vm4, %v5385_v21  ;;  %4133 = vmatpush1.bf16.msra.mxu1 %v4132_v62  ;;  %v769_v62 = vld [vmem:[%s7258_s3 + $0x188] sm:$0xff] }
 0x184   :  { %3724 = vmatprep.mubr.msk.f32.mxu0 %vm676_vm4, %v5439_v4  ;;  %4135 = vmatprep.subr.bf16.mxu1 %v4134_v63  ;;  %v772_v63 = vld [vmem:[%s7258_s3 + $0x1a0] sm:$0xff] }
 0x185   :  { %v4158_v5 = vpack.c.bf16 %v772_v63, %v769_v62  ;;  %v3645_v62 = vld [vmem:[%s7258_s3 + $0x4b0] sm:$0xff]  ;;  %v3648_v63 = vld [vmem:[%s7258_s3 + $0x4c8] sm:$0xff] }
 0x186   :  { %1097 = vmatmul.mubr.f32.gmra.mrb[24].mxu1 %v5321_v55  ;;  %1708 = vmatmul.mubr.f32.gmra.mrb[50].mxu0 %v5374_v25  ;;  %v4216_v7 = vpack.c.bf16 %v3648_v63, %v3645_v62  ;;  %v3688_v62 = vld [vmem:[%s7258_s3 + $0x608] sm:$0xff]  ;;  %v3691_v63 = vld [vmem:[%s7258_s3 + $0x620] sm:$0xff] }
 0x187   :  { %3612 = vmatprep.mubr.msk.f32.mxu1 %vm676_vm4, %v5412_v50  ;;  %4137 = vmatpush1.bf16.msra.mxu1 %v4136_v28  ;;  %v775_v28 = vld [vmem:[%s7258_s3 + $0x1b8] sm:$0xff] }
 0x188   :  { %3725 = vmatprep.mubr.msk.f32.mxu0 %vm676_vm4, %v5466_v29  ;;  %4139 = vmatprep.subr.bf16.mxu1 %v4138_v10  ;;  %v778_v10 = vld [vmem:[%s7258_s3 + $0x1d0] sm:$0xff] }
 0x189   :  { %v4162_v15 = vpack.c.bf16 %v778_v10, %v775_v28  ;;  %v3651_v28 = vld [vmem:[%s7258_s3 + $0x4e0] sm:$0xff]  ;;  %v3654_v10 = vld [vmem:[%s7258_s3 + $0x4f8] sm:$0xff] }
 0x18a   :  { %1102 = vmatmul.mubr.f32.gmra.mrb[26].mxu1 %v5347_v6  ;;  %1713 = vmatmul.mubr.f32.gmra.mrb[52].mxu0 %v5401_v40 }
 0x18b   :  { %3613 = vmatprep.mubr.msk.f32.mxu1 %vm676_vm4, %v5439_v4  ;;  %4141 = vmatpush1.bf16.msra.mxu1 %v4140_v22  ;;  %v777_v22 = vld [vmem:[%s7258_s3 + $0x1c8] sm:$0xff] }
 0x18c   :  { %3726 = vmatprep.mubr.msk.f32.mxu0 %vm676_vm4, %v5493_v44  ;;  %4143 = vmatprep.subr.bf16.mxu1 %v4142_v23  ;;  %v781_v23 = vld [vmem:[%s7258_s3 + $0x1e8] sm:$0xff]  ;;  %v4164_v19 = vpack.c.bf16 %v777_v22, %v774_v18 }
 0x18d   :  { %v4166_v35 = vpack.c.bf16 %v784_v31, %v781_v23  ;;  %v3660_v18 = vld [vmem:[%s7258_s3 + $0x528] sm:$0xff] }
 0x18e   :  { %1107 = vmatmul.mubr.f32.gmra.mrb[28].mxu1 %v5374_v25  ;;  %1718 = vmatmul.mubr.f32.gmra.mrb[54].mxu0 %v5428_v56  ;;  %v3664_v22 = vld [vmem:[%s7258_s3 + $0x548] sm:$0xff] }
 0x18f   :  { %3614 = vmatprep.mubr.msk.f32.mxu1 %vm676_vm4, %v5466_v29  ;;  %4145 = vmatpush1.bf16.msra.mxu1 %v4144_v36  ;;  %v783_v36 = vld [vmem:[%s7258_s3 + $0x1f8] sm:$0xff] }
 0x190   :  { %3727 = vmatprep.mubr.msk.f32.mxu0 %vm676_vm4, %v5522_v61  ;;  %4147 = vmatprep.subr.bf16.mxu1 %v4146_v38  ;;  %v787_v38 = vld [vmem:[%s7258_s3 + $0x218] sm:$0xff]  ;;  %v4168_v32 = vpack.c.bf16 %v783_v36, %v780_v20  ;;  %v3673_v36 = vld [vmem:[%s7258_s3 + $0x590] sm:$0xff] }
 0x191   :  { %v4170_v41 = vpack.c.bf16 %v790_v39, %v787_v38  ;;  %v3670_v20 = vld [vmem:[%s7258_s3 + $0x578] sm:$0xff] }
 0x192   :  { %1112 = vmatmul.mubr.f32.gmra.mrb[30].mxu1 %v5401_v40  ;;  %1723 = vmatmul.mubr.f32.gmra.mrb[56].mxu0 %v5455_v9  ;;  %v4230_v39 = vpack.c.bf16 %v3673_v36, %v3670_v20 }
 0x193   :  { %3615 = vmatprep.mubr.msk.f32.mxu1 %vm676_vm4, %v5493_v44  ;;  %4149 = vmatpush1.bf16.msra.mxu1 %v4148_v45  ;;  %v789_v45 = vld [vmem:[%s7258_s3 + $0x228] sm:$0xff] }
 0x194   :  { %3728 = vmatprep.mubr.msk.f32.mxu0 %vm676_vm4, %v5547_v11  ;;  %4151 = vmatprep.subr.bf16.mxu1 %v4150_v46  ;;  %v3640_v46 = vld [vmem:[%s7258_s3 + $0x488] sm:$0xff] }
 0x195   :  { %v4210_v49 = vpack.c.bf16 %v3643_v47, %v3640_v46 }
 0x196   :  { %1117 = vmatmul.mubr.f32.gmra.mrb[32].mxu1 %v5428_v56  ;;  %1728 = vmatmul.mubr.f32.gmra.mrb[58].mxu0 %v5482_v34 }
 0x197   :  { %3616 = vmatprep.mubr.msk.f32.mxu1 %vm676_vm4, %v5522_v61  ;;  %4153 = vmatpush1.bf16.msra.mxu1 %v4152_v54  ;;  %v3646_v54 = vld [vmem:[%s7258_s3 + $0x4b8] sm:$0xff] }
 0x198   :  { %3729 = vmatprep.mubr.msk.f32.mxu0 %vm676_vm4, %v5572_v17  ;;  %4155 = vmatprep.subr.bf16.mxu1 %v4154_v57  ;;  %v3649_v57 = vld [vmem:[%s7258_s3 + $0x4d0] sm:$0xff] }
 0x199   :  { %v4214_v60 = vpack.c.bf16 %v3649_v57, %v3646_v54  ;;  %v4238_v57 = vpack.c.bf16 %v3685_v53, %v3682_v52 }
 0x19a   :  { %1122 = vmatmul.mubr.f32.gmra.mrb[34].mxu1 %v5455_v9  ;;  %1733 = vmatmul.mubr.f32.gmra.mrb[60].mxu0 %v5509_v48 }
 0x19b   :  { %3617 = vmatprep.mubr.msk.f32.mxu1 %vm676_vm4, %v5547_v11  ;;  %4157 = vmatpush1.bf16.msra.mxu1 %v4156_v27  ;;  %v3652_v27 = vld [vmem:[%s7258_s3 + $0x4e8] sm:$0xff] }
 0x19c   :  { %3730 = vmatprep.mubr.msk.f32.mxu0 %vm676_vm4, %v5760_v12  ;;  %4159 = vmatprep.subr.bf16.mxu1 %v4158_v5  ;;  %v3655_v5 = vld [vmem:[%s7258_s3 + $0x500] sm:$0xff] }
 0x19d   :  { %v4218_v8 = vpack.c.bf16 %v3655_v5, %v3652_v27  ;;  %v4242_v5 = vpack.c.bf16 %v3691_v63, %v3688_v62 }
 0x19e   :  { %1127 = vmatmul.mubr.f32.gmra.mrb[36].mxu1 %v5482_v34  ;;  %1738 = vmatmul.mubr.f32.gmra.mrb[62].mxu0 %v673_v1 }
 0x19f   :  { %3618 = vmatprep.mubr.msk.f32.mxu1 %vm676_vm4, %v5572_v17  ;;  %4161 = vmatpush1.bf16.msra.mxu1 %v4160_v14 }
 0x1a0   :  { %4163 = vmatprep.subr.bf16.mxu1 %v4162_v15  ;;  %v3657_v15 = vld [vmem:[%s7258_s3 + $0x510] sm:$0xff] }
 0x1a1   :  { %v4224_v23 = vpack.c.bf16 %v3660_v18, %v3657_v15  ;;  %v3700_v15 = vld [vmem:[%s7258_s3 + $0x668] sm:$0xff]  ;;  %v3703_v18 = vld [vmem:[%s7258_s3 + $0x680] sm:$0xff] }
 0x1a2   :  { %1132 = vmatmul.mubr.f32.gmra.mrb[38].mxu1 %v5509_v48 }
 0x1a3   :  { %4165 = vmatpush1.bf16.msra.mxu1 %v4164_v19  ;;  %3619 = vmatprep.mubr.msk.f32.mxu1 %vm676_vm4, %v5309_v51  ;;  %v4172_v51 = vpack.c.bf16 %v789_v45, %v786_v42  ;;  %v3663_v19 = vld [vmem:[%s7258_s3 + $0x540] sm:$0xff]  ;;  %v3676_v42 = vld [vmem:[%s7258_s3 + $0x5a8] sm:$0xff] }
 0x1a4   :  { %4167 = vmatprep.subr.bf16.mxu1 %v4166_v35  ;;  %v3666_v35 = vld [vmem:[%s7258_s3 + $0x558] sm:$0xff]  ;;  %v3679_v45 = vld [vmem:[%s7258_s3 + $0x5c0] sm:$0xff] }
 0x1a5   :  { %v4228_v38 = vpack.c.bf16 %v3666_v35, %v3663_v19  ;;  %v4234_v47 = vpack.c.bf16 %v3679_v45, %v3676_v42  ;;  %v3706_v19 = vld [vmem:[%s7258_s3 + $0x698] sm:$0xff]  ;;  %v3709_v35 = vld [vmem:[%s7258_s3 + $0x6b0] sm:$0xff] }
 0x1a6   :  { %v4254_v36 = vpack.c.bf16 %v3709_v35, %v3706_v19 }
 0x1a7   :  { %4169 = vmatpush1.bf16.msra.mxu1 %v4168_v32  ;;  %v3669_v32 = vld [vmem:[%s7258_s3 + $0x570] sm:$0xff] }
 0x1a8   :  { %4171 = vmatprep.subr.bf16.mxu1 %v4170_v41  ;;  %v3672_v41 = vld [vmem:[%s7258_s3 + $0x588] sm:$0xff] }
 0x1a9   :  { %v4232_v46 = vpack.c.bf16 %v3672_v41, %v3669_v32 }
 0x1ab   :  { %4173 = vmatpush1.bf16.msra.mxu1 %v4172_v51  ;;  %v3675_v51 = vld [vmem:[%s7258_s3 + $0x5a0] sm:$0xff] }
 0x1ac   :  { %4211 = vmatprep.subr.bf16.mxu1 %v4210_v49  ;;  %v3678_v49 = vld [vmem:[%s7258_s3 + $0x5b8] sm:$0xff] }
 0x1ad   :  { %v4236_v54 = vpack.c.bf16 %v3678_v49, %v3675_v51 }
 0x1ae   :  { %1205 = vmatmul.mubr.f32.vlgmr.msra.gmra.mrb[0].mxu1 %v651_v33  ;;  %v3661_v33 = vld [vmem:[%s7258_s3 + $0x530] sm:$0xff] }
 0x1af   :  { %3620 = vmatprep.mubr.msk.f32.mxu1 %vm676_vm4, %v5332_v0  ;;  %4213 = vmatpush1.bf16.msra.mxu1 %v4212_v58  ;;  %v4220_v0 = vpack.c.bf16 %v3654_v10, %v3651_v28  ;;  %v4222_v14 = vpack.c.bf16 %v3661_v33, %v3658_v30  ;;  %v3681_v58 = vld [vmem:[%s7258_s3 + $0x5d0] sm:$0xff]  ;;  %v3694_v28 = vld [vmem:[%s7258_s3 + $0x638] sm:$0xff] }
 0x1b0   :  { %4215 = vmatprep.subr.bf16.mxu1 %v4214_v60  ;;  %v3684_v60 = vld [vmem:[%s7258_s3 + $0x5e8] sm:$0xff]  ;;  %v3697_v10 = vld [vmem:[%s7258_s3 + $0x650] sm:$0xff] }
 0x1b1   :  { %v4240_v27 = vpack.c.bf16 %v3684_v60, %v3681_v58  ;;  %v4246_v33 = vpack.c.bf16 %v3697_v10, %v3694_v28 }
 0x1b2   :  { %1211 = vmatmul.mubr.f32.gmra.mrb[2].mxu1 %v5289_v37  ;;  %v3667_v37 = vld [vmem:[%s7258_s3 + $0x560] sm:$0xff] }
 0x1b3   :  { %3621 = vmatprep.mubr.msk.f32.mxu1 %vm676_vm4, %v5358_v16  ;;  %4217 = vmatpush1.bf16.msra.mxu1 %v4216_v7  ;;  %v4226_v31 = vpack.c.bf16 %v3667_v37, %v3664_v22  ;;  %v3687_v7 = vld [vmem:[%s7258_s3 + $0x600] sm:$0xff]  ;;  %v4250_v37 = vpack.c.bf16 %v3703_v18, %v3700_v15  ;;  %v1785_v15 = vsub.s32 2, %v5266_v2 }
 0x1b4   :  { %4219 = vmatprep.subr.bf16.mxu1 %v4218_v8  ;;  %v3690_v8 = vld [vmem:[%s7258_s3 + $0x618] sm:$0xff] }
 0x1b5   :  { %v4244_v30 = vpack.c.bf16 %v3690_v8, %v3687_v7 }
 0x1b6   :  { %1217 = vmatmul.mubr.f32.gmra.mrb[4].mxu1 %v5300_v43 }
 0x1b7   :  { %3622 = vmatprep.mubr.msk.f32.mxu1 %vm676_vm4, %v5385_v21  ;;  %4221 = vmatpush1.bf16.msra.mxu1 %v4220_v0  ;;  %v3693_v0 = vld [vmem:[%s7258_s3 + $0x630] sm:$0xff] }
 0x1b8   :  { %4223 = vmatprep.subr.bf16.mxu1 %v4222_v14  ;;  %v3696_v14 = vld [vmem:[%s7258_s3 + $0x648] sm:$0xff] }
 0x1b9   :  { %v4248_v22 = vpack.c.bf16 %v3696_v14, %v3693_v0 }
 0x1ba   :  { %1223 = vmatmul.mubr.f32.gmra.mrb[6].mxu1 %v5321_v55 }
 0x1bb   :  { %3623 = vmatprep.mubr.msk.f32.mxu1 %vm676_vm4, %v5412_v50  ;;  %4225 = vmatpush1.bf16.msra.mxu1 %v4224_v23  ;;  %v3699_v23 = vld [vmem:[%s7258_s3 + $0x660] sm:$0xff] }
 0x1bc   :  { %4227 = vmatprep.subr.bf16.mxu1 %v4226_v31  ;;  %v3702_v31 = vld [vmem:[%s7258_s3 + $0x678] sm:$0xff] }
 0x1bd   :  { %v4252_v20 = vpack.c.bf16 %v3702_v31, %v3699_v23 }
 0x1be   :  { %1229 = vmatmul.mubr.f32.gmra.mrb[8].mxu1 %v5347_v6 }
 0x1bf   :  { %3624 = vmatprep.mubr.msk.f32.mxu1 %vm676_vm4, %v5439_v4  ;;  %4229 = vmatpush1.bf16.msra.mxu1 %v4228_v38  ;;  %v3705_v38 = vld [vmem:[%s7258_s3 + $0x690] sm:$0xff] }
 0x1c0   :  { %4231 = vmatprep.subr.bf16.mxu1 %v4230_v39  ;;  %v3708_v39 = vld [vmem:[%s7258_s3 + $0x6a8] sm:$0xff]  ;;  %s4740_s3 = smov 32  }
 0x1c1   :  { %v4256_v32 = vpack.c.bf16 %v3708_v39, %v3705_v38 }
 0x1c2   :  { %1235 = vmatmul.mubr.f32.gmra.mrb[10].mxu1 %v5374_v25 }
 0x1c3   :  { %3625 = vmatprep.mubr.msk.f32.mxu1 %vm676_vm4, %v5466_v29  ;;  %4233 = vmatpush1.bf16.msra.mxu1 %v4232_v46 }
 0x1c4   :  { %4235 = vmatprep.subr.bf16.mxu1 %v4234_v47 }
 0x1c6   :  { %1241 = vmatmul.mubr.f32.gmra.mrb[12].mxu1 %v5401_v40 }
 0x1c7   :  { %3626 = vmatprep.mubr.msk.f32.mxu1 %vm676_vm4, %v5493_v44  ;;  %4237 = vmatpush1.bf16.msra.mxu1 %v4236_v54 }
 0x1c8   :  { %4239 = vmatprep.subr.bf16.mxu1 %v4238_v57 }
 0x1ca   :  { %1247 = vmatmul.mubr.f32.gmra.mrb[14].mxu1 %v5428_v56 }
 0x1cb   :  { %3627 = vmatprep.mubr.msk.f32.mxu1 %vm676_vm4, %v5522_v61  ;;  %4241 = vmatpush1.bf16.msra.mxu1 %v4240_v27 }
 0x1cc   :  { %4243 = vmatprep.subr.bf16.mxu1 %v4242_v5 }
 0x1ce   :  { %1253 = vmatmul.mubr.f32.gmra.mrb[16].mxu1 %v5455_v9 }
 0x1cf   :  { %3628 = vmatprep.mubr.msk.f32.mxu1 %vm676_vm4, %v5547_v11  ;;  %4245 = vmatpush1.bf16.msra.mxu1 %v4244_v30 }
 0x1d0   :  { %4247 = vmatprep.subr.bf16.mxu1 %v4246_v33 }
 0x1d2   :  { %1259 = vmatmul.mubr.f32.gmra.mrb[18].mxu1 %v5482_v34 }
 0x1d3   :  { %4249 = vmatpush1.bf16.msra.mxu1 %v4248_v22  ;;  %3711 = vmatprep.mubr.msk.f32.mxu1 %vm676_vm4, %v5358_v16 }
 0x1d4   :  { %4251 = vmatprep.subr.bf16.mxu1 %v4250_v37  ;;  %v1773_v37 = vld [vmem:[%s7260_s4] sm:$0x7]  ;;  %s4738_s4 = smov 96  }
 0x1d7   :  { %4253 = vmatpush1.bf16.msra.mxu1 %v4252_v20  ;;  %v6023_v20 = vrot.slane %v1773_v37, %v1785_v15 }
 0x1d8   :  { %4255 = vmatprep.subr.bf16.mxu1 %v4254_v36 }
 0x1db   :  { %4257 = vmatpush1.bf16.msra.mxu1 %v4256_v32 }
 0x1dc   :  { %4294 = vmatprep.subr.bf16.mxu1 %v4737_v24 }
 0x1de   :  { %1568 = vmatmul.mubr.f32.vlgmr.msra.gmra.mrb[0].mxu1 %v5300_v43 }
 0x1df   :  { %3712 = vmatprep.mubr.msk.f32.mxu1 %vm676_vm4, %v5385_v21 }
 0x1e2   :  { %1574 = vmatmul.mubr.f32.gmra.mrb[2].mxu1 %v5321_v55 }
 0x1e3   :  { %3713 = vmatprep.mubr.msk.f32.mxu1 %vm676_vm4, %v5412_v50 }
 0x1e6   :  { %1580 = vmatmul.mubr.f32.gmra.mrb[4].mxu1 %v5347_v6 }
 0x1e7   :  { %3714 = vmatprep.mubr.msk.f32.mxu1 %vm676_vm4, %v5439_v4 }
 0x1ea   :  { %1586 = vmatmul.mubr.f32.gmra.mrb[6].mxu1 %v5374_v25 }
 0x1eb   :  { %3715 = vmatprep.mubr.msk.f32.mxu1 %vm676_vm4, %v5466_v29 }
 0x1ee   :  { %1592 = vmatmul.mubr.f32.gmra.mrb[8].mxu1 %v5401_v40 }
 0x1ef   :  { %3716 = vmatprep.mubr.msk.f32.mxu1 %vm676_vm4, %v5493_v44 }
 0x1f2   :  { %1598 = vmatmul.mubr.f32.gmra.mrb[10].mxu1 %v5428_v56 }
 0x1f3   :  { %3717 = vmatprep.mubr.msk.f32.mxu1 %vm676_vm4, %v5522_v61 }
 0x1f6   :  { %1604 = vmatmul.mubr.f32.gmra.mrb[12].mxu1 %v5455_v9 }
 0x1f7   :  { %3718 = vmatprep.mubr.msk.f32.mxu1 %vm676_vm4, %v5547_v11 }
 0x1fa   :  { %1610 = vmatmul.mubr.f32.gmra.mrb[14].mxu1 %v5482_v34 }
 0x1fb   :  { %3719 = vmatprep.mubr.msk.f32.mxu1 %vm676_vm4, %v5572_v17 }
 0x1fe   :  { %1616 = vmatmul.mubr.f32.gmra.mrb[16].mxu1 %v5509_v48 }
 0x1ff   :  { %3720 = vmatprep.mubr.msk.f32.mxu1 %vm676_vm4, %v5760_v12 }
 0x202   :  { %1622 = vmatmul.mubr.f32.gmra.mrb[18].mxu1 %v673_v1 }
 0x21d   :  { %v1331_v43 = vpop.f32.mrb[24].mxu0 }
 0x21e   :  { %v1333_v55 = vpop.f32.mrb[25].mxu0 }
 0x221   :  { %v1336_v6 = vpop.f32.mrb[26].mxu0 }
 0x222   :  { %v1338_v16 = vpop.f32.mrb[27].mxu0 }
 0x225   :  { %v1341_v25 = vpop.f32.mrb[28].mxu0 }
 0x226   :  { %v1343_v21 = vpop.f32.mrb[29].mxu0 }
 0x229   :  { %v1346_v40 = vpop.f32.mrb[30].mxu0 }
 0x22a   :  { %v1348_v50 = vpop.f32.mrb[31].mxu0 }
 0x22d   :  { %v1351_v56 = vpop.f32.mrb[32].mxu0 }
 0x22e   :  { %v1353_v4 = vpop.f32.mrb[33].mxu0 }
 0x231   :  { %v1356_v9 = vpop.f32.mrb[34].mxu0 }
 0x232   :  { %v1358_v29 = vpop.f32.mrb[35].mxu0 }
 0x235   :  { %v1361_v34 = vpop.f32.mrb[36].mxu0 }
 0x236   :  { %v1363_v44 = vpop.f32.mrb[37].mxu0 }
 0x239   :  { %v1366_v48 = vpop.f32.mrb[38].mxu0 }
 0x23a   :  { %v1368_v61 = vpop.f32.mrb[39].mxu0 }
 0x23d   :  { %v6007_v11 = vpop.f32.mrb[40].mxu0 }
 0x23e   :  { %v1373_v59 = vpop.f32.mrb[41].mxu0 }
 0x241   :  { %v6009_v1 = vpop.f32.mrb[42].mxu0 }
 0x242   :  { %v1378_v17 = vpop.f32.mrb[43].mxu0 }
 0x24d   :  { %v1694_v12 = vpop.f32.mrb[44].mxu0 }
 0x24e   :  { %v1696_v41 = vpop.f32.mrb[45].mxu0 }
 0x251   :  { %v1088_v42 = vpop.f32.mrb[20].mxu1  ;;  %v1699_v45 = vpop.f32.mrb[46].mxu0 }
 0x252   :  { %v1332_v46 = vadd.f32 %v1331_v43, %v1088_v42  ;;  %v1090_v47 = vpop.f32.mrb[21].mxu1  ;;  %v1701_v51 = vpop.f32.mrb[47].mxu0 }
 0x254   :  { %v6011_v49 = vadd.f32 %v1694_v12, %v1332_v46 }
 0x255   :  { %v1093_v52 = vpop.f32.mrb[22].mxu1  ;;  %v1704_v53 = vpop.f32.mrb[48].mxu0 }
 0x256   :  { %v1337_v54 = vadd.f32 %v1336_v6, %v1093_v52  ;;  %v1095_v57 = vpop.f32.mrb[23].mxu1  ;;  %v1706_v58 = vpop.f32.mrb[49].mxu0 }
 0x258   :  { %v6013_v60 = vadd.f32 %v1699_v45, %v1337_v54 }
 0x259   :  { %v1098_v62 = vpop.f32.mrb[24].mxu1  ;;  %v1709_v63 = vpop.f32.mrb[50].mxu0 }
 0x25a   :  { %v1342_v27 = vadd.f32 %v1341_v25, %v1098_v62  ;;  %v1100_v5 = vpop.f32.mrb[25].mxu1  ;;  %v1711_v7 = vpop.f32.mrb[51].mxu0 }
 0x25c   :  { %v6015_v8 = vadd.f32 %v1704_v53, %v1342_v27 }
 0x25d   :  { %v1103_v28 = vpop.f32.mrb[26].mxu1  ;;  %v1714_v10 = vpop.f32.mrb[52].mxu0 }
 0x25e   :  { %v1347_v30 = vadd.f32 %v1346_v40, %v1103_v28  ;;  %v1105_v33 = vpop.f32.mrb[27].mxu1  ;;  %v1716_v0 = vpop.f32.mrb[53].mxu0 }
 0x260   :  { %v6017_v14 = vadd.f32 %v1709_v63, %v1347_v30 }
 0x261   :  { %v1108_v18 = vpop.f32.mrb[28].mxu1  ;;  %v1719_v22 = vpop.f32.mrb[54].mxu0 }
 0x262   :  { %v1352_v23 = vadd.f32 %v1351_v56, %v1108_v18  ;;  %v1110_v31 = vpop.f32.mrb[29].mxu1  ;;  %v1721_v19 = vpop.f32.mrb[55].mxu0 }
 0x264   :  { %v1757_v35 = vadd.f32 %v1714_v10, %v1352_v23  ;;  %v6062_v10 = vrot.slane %v1773_v37, %v623_v26 }
 0x265   :  { %v1113_v36 = vpop.f32.mrb[30].mxu1  ;;  %v1724_v38 = vpop.f32.mrb[56].mxu0 }
 0x266   :  { %v1357_v39 = vadd.f32 %v1356_v9, %v1113_v36  ;;  %v1115_v32 = vpop.f32.mrb[31].mxu1  ;;  %v1726_v43 = vpop.f32.mrb[57].mxu0  ;;  %v6026_v55 = vadd.f32 %v6023_v20, %v1757_v35 }
 0x267   :  { %v6104_v43 = vadd.f32 %v6023_v20, %v6015_v8  ;;  %v6120_v8 = vadd.f32 %v6023_v20, %v6011_v49 }
 0x268   :  { %v1760_v6 = vadd.f32 %v1719_v22, %v1357_v39 }
 0x269   :  { %v1118_v16 = vpop.f32.mrb[32].mxu1  ;;  %v1729_v25 = vpop.f32.mrb[58].mxu0  ;;  %v1822_v49 = vmax.f32 %v6120_v8, 0.0  ;;  %v2186_v8 = vld [vmem:[%s7261_s5 + $0x90] sm:$0xff] }
 0x26a   :  { %v1362_v21 = vadd.f32 %v1361_v34, %v1118_v16  ;;  %v1120_v40 = vpop.f32.mrb[33].mxu1  ;;  %v1731_v50 = vpop.f32.mrb[59].mxu0  ;;  %v6029_v56 = vadd.f32 %v6023_v20, %v1760_v6 }
 0x26b   :  { %v1828_v40 = vmax.f32 %v6104_v43, 0.0 }
 0x26c   :  { %v1763_v4 = vadd.f32 %v1724_v38, %v1362_v21 }
 0x26d   :  { %v1123_v29 = vpop.f32.mrb[34].mxu1  ;;  %v1734_v44 = vpop.f32.mrb[60].mxu0 }
 0x26e   :  { %v1367_v61 = vadd.f32 %v1366_v48, %v1123_v29  ;;  %v1125_v59 = vpop.f32.mrb[35].mxu1  ;;  %v1736_v9 = vpop.f32.mrb[61].mxu0  ;;  %v6032_v17 = vadd.f32 %v6023_v20, %v1763_v4 }
 0x270   :  { %v1766_v12 = vadd.f32 %v1729_v25, %v1367_v61  ;;  %v6109_v25 = vadd.f32 %v6023_v20, %v6017_v14  ;;  %v6125_v14 = vadd.f32 %v6023_v20, %v6013_v60 }
 0x271   :  { %v1128_v41 = vpop.f32.mrb[36].mxu1  ;;  %v1739_v42 = vpop.f32.mrb[62].mxu0 }
 0x272   :  { %v1372_v45 = vadd.f32 %v6007_v11, %v1128_v41  ;;  %v1130_v34 = vpop.f32.mrb[37].mxu1  ;;  %v1741_v46 = vpop.f32.mrb[63].mxu0  ;;  %v6036_v47 = vadd.f32 %v6023_v20, %v1766_v12  ;;  %v6047_v11 = vrot.slane %v1773_v37, %v619_v13  ;;  %v1831_v4 = vmax.f32 %v6109_v25, 0.0  ;;  %v2184_v25 = vld [vmem:[%s7261_s5 + $0x80] sm:$0xff] }
 0x273   :  { %v1825_v60 = vmax.f32 %v6125_v14, 0.0 }
 0x274   :  { %v1769_v51 = vadd.f32 %v1734_v44, %v1372_v45 }
 0x275   :  { %v1133_v52 = vpop.f32.mrb[38].mxu1 }
 0x276   :  { %v1377_v53 = vadd.f32 %v6009_v1, %v1133_v52  ;;  %v1135_v48 = vpop.f32.mrb[39].mxu1  ;;  %v6040_v54 = vadd.f32 %v6023_v20, %v1769_v51 }
 0x278   :  { %v1772_v57 = vadd.f32 %v1739_v42, %v1377_v53 }
 0x27a   :  { %v6043_v58 = vadd.f32 %v6023_v20, %v1772_v57 }
 0x2b1   :  { %v1569_v62 = vpop.f32.mrb[0].mxu1 }
 0x2b2   :  { %v6050_v63 = vadd.f32 %v6047_v11, %v1569_v62  ;;  %v1571_v27 = vpop.f32.mrb[1].mxu1 }
 0x2b3   :  { %v6088_v31 = vadd.f32 %v6062_v10, %v1571_v27 }
 0x2b4   :  { %v1820_v5 = vmax.f32 %v6050_v63, 0.0  ;;  %v3740_v63 = vld [vmem:[%s7261_s5 + $0xe8] sm:$0xff] }
 0x2b5   :  { %v1575_v1 = vpop.f32.mrb[2].mxu1  ;;  %v1821_v32 = vmax.f32 %v6088_v31, 0.0 }
 0x2b6   :  { %v6054_v7 = vadd.f32 %v6047_v11, %v1575_v1  ;;  %1860 = vrot.lane.b32.xlu0 %v1820_v5, %s4738_s4  ;;  %v1577_v28 = vpop.f32.mrb[3].mxu1 }
 0x2b7   :  { %v6092_v35 = vadd.f32 %v6062_v10, %v1577_v28 }
 0x2b8   :  { %v1823_v13 = vmax.f32 %v6054_v7, 0.0  ;;  %v3741_v7 = vld [vmem:[%s7261_s5 + $0xf0] sm:$0xff] }
 0x2b9   :  { %v1581_v30 = vpop.f32.mrb[4].mxu1  ;;  %v1824_v6 = vmax.f32 %v6092_v35, 0.0  ;;  %v3748_v35 = vld [vmem:[%s7261_s5 + $0x128] sm:$0xff] }
 0x2ba   :  { %v6065_v33 = vadd.f32 %v6047_v11, %v1581_v30  ;;  %1862 = vrot.lane.b32.xlu1 %v1823_v13, %s4738_s4  ;;  %v1583_v0 = vpop.f32.mrb[5].mxu1 }
 0x2bb   :  { %v6071_v15 = vadd.f32 %v6062_v10, %v1583_v0 }
 0x2bc   :  { %v1826_v18 = vmax.f32 %v6065_v33, 0.0 }
 0x2bd   :  { %v1827_v22 = vmax.f32 %v6071_v15, 0.0  ;;  %v1587_v23 = vpop.f32.mrb[6].mxu1 }
 0x2be   :  { %v6076_v2 = vadd.f32 %v6047_v11, %v1587_v23  ;;  %1864 = vrot.lane.b32.xlu0 %v1826_v18, %s4738_s4  ;;  %v1589_v26 = vpop.f32.mrb[7].mxu1 }
 0x2bf   :  { %v6082_v37 = vadd.f32 %v6062_v10, %v1589_v26  ;;  %1914 = vrot.lane.b32.xlu1 %v1827_v22, %s4738_s4 }
 0x2c0   :  { %v1829_v19 = vmax.f32 %v6076_v2, 0.0  ;;  %v3749_v2 = vld [vmem:[%s7261_s5 + $0x130] sm:$0xff] }
 0x2c1   :  { %v1830_v36 = vmax.f32 %v6082_v37, 0.0  ;;  %v1593_v38 = vpop.f32.mrb[8].mxu1  ;;  %v2187_v37 = vld [vmem:[%s7261_s5 + $0x98] sm:$0xff] }
 0x2c2   :  { %1866 = vrot.lane.b32.xlu0 %v1829_v19, %s4738_s4  ;;  %v1595_v39 = vpop.f32.mrb[9].mxu1  ;;  %v6134_v44 = vadd.f32 %v6047_v11, %v1593_v38 }
 0x2c3   :  { %1916 = vrot.lane.b32.xlu1 %v1830_v36, %s4738_s4  ;;  %v6149_v12 = vadd.f32 %v6062_v10, %v1595_v39  ;;  %v3732_v39 = vld [vmem:[%s7261_s5 + $0xa8] sm:$0xff] }
 0x2c4   :  { %v1832_v9 = vmax.f32 %v6134_v44, 0.0 }
 0x2c5   :  { %v1599_v16 = vpop.f32.mrb[10].mxu1  ;;  %v1833_v52 = vmax.f32 %v6149_v12, 0.0 }
 0x2c6   :  { %1910 = vrot.lane.b32.xlu0 %v1821_v32, %s4738_s4  ;;  %v1601_v21 = vpop.f32.mrb[11].mxu1  ;;  %v6138_v61 = vadd.f32 %v6047_v11, %v1599_v16 }
 0x2c7   :  { %1912 = vrot.lane.b32.xlu1 %v1824_v6, %s4738_s4  ;;  %v6153_v42 = vadd.f32 %v6062_v10, %v1601_v21  ;;  %v3733_v21 = vld [vmem:[%s7261_s5 + $0xb0] sm:$0xff] }
 0x2c8   :  { %v1835_v41 = vmax.f32 %v6138_v61, 0.0 }
 0x2c9   :  { %v1605_v50 = vpop.f32.mrb[12].mxu1  ;;  %v1836_v48 = vmax.f32 %v6153_v42, 0.0 }
 0x2ca   :  { %v1607_v29 = vpop.f32.mrb[13].mxu1  ;;  %1964 = vrot.lane.b32.xlu0 %v1828_v40, %s4738_s4  ;;  %v6169_v53 = vadd.f32 %v6047_v11, %v1605_v50  ;;  %v3734_v50 = vld [vmem:[%s7261_s5 + $0xb8] sm:$0xff] }
 0x2cb   :  { %1966 = vrot.lane.b32.xlu1 %v1831_v4, %s4738_s4  ;;  %v6189_v0 = vadd.f32 %v6062_v10, %v1607_v29  ;;  %v2168_v29 = vld [vmem:[%s7261_s5] sm:$0xff] }
 0x2cc   :  { %v1838_v30 = vmax.f32 %v6169_v53, 0.0 }
 0x2cd   :  { %v1611_v59 = vpop.f32.mrb[14].mxu1  ;;  %v1839_v26 = vmax.f32 %v6189_v0, 0.0 }
 0x2ce   :  { %v1613_v20 = vpop.f32.mrb[15].mxu1  ;;  %1960 = vrot.lane.b32.xlu0 %v1822_v49, %s4738_s4  ;;  %v6173_v57 = vadd.f32 %v6047_v11, %v1611_v59  ;;  %v4298_v59 = vpack.c.bf16 %v3734_v50, %v3733_v21  ;;  %v3737_v21 = vld [vmem:[%s7261_s5 + $0xd0] sm:$0xff]  ;;  %v3738_v50 = vld [vmem:[%s7261_s5 + $0xd8] sm:$0xff] }
 0x2cf   :  { %1962 = vrot.lane.b32.xlu1 %v1825_v60, %s4738_s4  ;;  %v6193_v23 = vadd.f32 %v6062_v10, %v1613_v20  ;;  %v2169_v20 = vld [vmem:[%s7261_s5 + $0x8] sm:$0xff] }
 0x2d1   :  { %v1617_v45 = vpop.f32.mrb[16].mxu1  ;;  %v1842_v38 = vmax.f32 %v6193_v23, 0.0 }
 0x2d2   :  { %v6156_v34 = vadd.f32 %v6047_v11, %v1617_v45  ;;  %v1619_v46 = vpop.f32.mrb[17].mxu1  ;;  %1868 = vrot.lane.b32.xlu0 %v1832_v9, %s4738_s4  ;;  %v4325_v45 = vpack.c.bf16 %v2169_v20, %v2168_v29  ;;  %v2172_v29 = vld [vmem:[%s7261_s5 + $0x20] sm:$0xff]  ;;  %v4304_v20 = vpack.c.bf16 %v3738_v50, %v3737_v21  ;;  %v2175_v21 = vld [vmem:[%s7261_s5 + $0x38] sm:$0xff] }
 0x2d3   :  { %v6162_v51 = vadd.f32 %v6062_v10, %v1619_v46  ;;  %1870 = vrot.lane.b32.xlu1 %v1835_v41, %s4738_s4  ;;  %v3735_v46 = vld [vmem:[%s7261_s5 + $0xc0] sm:$0xff] }
 0x2d4   :  { %4326 = vmatpush1.bf16.msra.mxu0 %v4325_v45 }
 0x2d5   :  { %v1623_v62 = vpop.f32.mrb[18].mxu1  ;;  %4327 = vmatprep.subr.bf16.mxu0 %v4737_v24 }
 0x2d6   :  { %v6176_v27 = vadd.f32 %v6047_v11, %v1623_v62  ;;  %1918 = vrot.lane.b32.xlu0 %v1833_v52, %s4738_s4  ;;  %v1625_v1 = vpop.f32.mrb[19].mxu1  ;;  %v1841_v11 = vmax.f32 %v6173_v57, 0.0  ;;  %v3736_v62 = vld [vmem:[%s7261_s5 + $0xc8] sm:$0xff]  ;;  %v1846_v57 = vmax.f32 %v6040_v54, 0.0  ;;  %v3816_v54 = vld [vmem:[%s7261_s5 + $0x320] sm:$0xff] }
 0x2d7   :  { %v6182_v28 = vadd.f32 %v6062_v10, %v1625_v1  ;;  %1920 = vrot.lane.b32.xlu1 %v1836_v48, %s4738_s4  ;;  %v3731_v10 = vld [vmem:[%s7261_s5 + $0xa0] sm:$0xff]  ;;  %v2170_v1 = vld [vmem:[%s7261_s5 + $0x10] sm:$0xff] }
 0x2d8   :  { %v4295_v16 = vpack.c.bf16 %v3732_v39, %v3731_v10  ;;  %v4301_v10 = vpack.c.bf16 %v3736_v62, %v3735_v46  ;;  %v2171_v39 = vld [vmem:[%s7261_s5 + $0x18] sm:$0xff] }
 0x2da   :  { %1872 = vrot.lane.b32.xlu0 %v1838_v30, %s4738_s4  ;;  %4296 = vmatpush1.bf16.msra.mxu1 %v4295_v16  ;;  %v4328_v16 = vpack.c.bf16 %v2171_v39, %v2170_v1 }
 0x2db   :  { %1874 = vrot.lane.b32.xlu1 %v1841_v11, %s4738_s4  ;;  %4297 = vmatprep.subr.bf16.mxu1 %v4737_v24 }
 0x2dc   :  { %4329 = vmatpush1.bf16.msra.mxu0 %v4328_v16 }
 0x2dd   :  { %4330 = vmatprep.subr.bf16.mxu0 %v4737_v24 }
 0x2de   :  { %1922 = vrot.lane.b32.xlu0 %v1839_v26, %s4738_s4  ;;  %4299 = vmatpush1.bf16.msra.mxu1 %v4298_v59  ;;  %v2173_v59 = vld [vmem:[%s7261_s5 + $0x28] sm:$0xff] }
 0x2df   :  { %1924 = vrot.lane.b32.xlu1 %v1842_v38, %s4738_s4  ;;  %4300 = vmatprep.subr.bf16.mxu1 %v4737_v24  ;;  %v4331_v46 = vpack.c.bf16 %v2173_v59, %v2172_v29  ;;  %v2176_v59 = vld [vmem:[%s7261_s5 + $0x40] sm:$0xff] }
 0x2e1   :  { %4332 = vmatpush1.bf16.msra.mxu0 %v4331_v46  ;;  %v2177_v46 = vld [vmem:[%s7261_s5 + $0x48] sm:$0xff] }
 0x2e2   :  { %4302 = vmatpush1.bf16.msra.mxu1 %v4301_v10  ;;  %v3739_v10 = vld [vmem:[%s7261_s5 + $0xe0] sm:$0xff]  ;;  %4333 = vmatprep.subr.bf16.mxu0 %v4737_v24 }
 0x2e3   :  { %4303 = vmatprep.subr.bf16.mxu1 %v4737_v24  ;;  %v4307_v16 = vpack.c.bf16 %v3740_v63, %v3739_v10  ;;  %v3743_v63 = vld [vmem:[%s7261_s5 + $0x100] sm:$0xff] }
 0x2e6   :  { %4305 = vmatpush1.bf16.msra.mxu1 %v4304_v20 }
 0x2e7   :  { %4306 = vmatprep.subr.bf16.mxu1 %v4737_v24 }
 0x2ea   :  { %4308 = vmatpush1.bf16.msra.mxu1 %v4307_v16  ;;  %v2178_v16 = vld [vmem:[%s7261_s5 + $0x50] sm:$0xff] }
 0x2eb   :  { %4309 = vmatprep.subr.bf16.mxu1 %v4737_v24 }
 0x328   :  { %v1861_v45 = vpop.permute.xlu0 %1860 }
 0x329   :  { %v6257_v62 = vmax.f32 %v1820_v5, %v1861_v45  ;;  %v2174_v5 = vld [vmem:[%s7261_s5 + $0x30] sm:$0xff] }
 0x32a   :  { %v4334_v50 = vpack.c.bf16 %v2175_v21, %v2174_v5  ;;  %v3744_v5 = vld [vmem:[%s7261_s5 + $0x108] sm:$0xff] }
 0x32b   :  { %2010 = vrot.lane.b32.xlu0 %v6257_v62, %s4738_s4 }
 0x32c   :  { %v1863_v1 = vpop.permute.xlu1 %1862  ;;  %4335 = vmatpush1.bf16.msra.mxu0 %v4334_v50  ;;  %v4313_v50 = vpack.c.bf16 %v3744_v5, %v3743_v63 }
 0x32d   :  { %v6274_v39 = vmax.f32 %v1823_v13, %v1863_v1  ;;  %v3742_v13 = vld [vmem:[%s7261_s5 + $0xf8] sm:$0xff]  ;;  %4336 = vmatprep.subr.bf16.mxu0 %v4737_v24  ;;  %v4337_v1 = vpack.c.bf16 %v2177_v46, %v2176_v59 }
 0x32e   :  { %v4310_v45 = vpack.c.bf16 %v3742_v13, %v3741_v7  ;;  %v2179_v7 = vld [vmem:[%s7261_s5 + $0x58] sm:$0xff] }
 0x32f   :  { %2012 = vrot.lane.b32.xlu1 %v6274_v39, %s4738_s4  ;;  %v4340_v13 = vpack.c.bf16 %v2179_v7, %v2178_v16  ;;  %v3746_v46 = vld [vmem:[%s7261_s5 + $0x118] sm:$0xff] }
 0x330   :  { %v1865_v29 = vpop.permute.xlu0 %1864  ;;  %4311 = vmatpush1.bf16.msra.mxu1 %v4310_v45  ;;  %4338 = vmatpush1.bf16.msra.mxu0 %v4337_v1  ;;  %v3745_v45 = vld [vmem:[%s7261_s5 + $0x110] sm:$0xff]  ;;  %v2180_v1 = vld [vmem:[%s7261_s5 + $0x60] sm:$0xff] }
 0x331   :  { %v1915_v20 = vpop.permute.xlu1 %1914  ;;  %4312 = vmatprep.subr.bf16.mxu1 %v4737_v24  ;;  %4339 = vmatprep.subr.bf16.mxu0 %v4737_v24  ;;  %v4316_v16 = vpack.c.bf16 %v3746_v46, %v3745_v45 }
 0x334   :  { %v1867_v10 = vpop.permute.xlu0 %1866  ;;  %4314 = vmatpush1.bf16.msra.mxu1 %v4313_v50  ;;  %4341 = vmatpush1.bf16.msra.mxu0 %v4340_v13  ;;  %v2181_v50 = vld [vmem:[%s7261_s5 + $0x68] sm:$0xff] }
 0x335   :  { %v1917_v21 = vpop.permute.xlu1 %1916  ;;  %4315 = vmatprep.subr.bf16.mxu1 %v4737_v24  ;;  %4342 = vmatprep.subr.bf16.mxu0 %v4737_v24  ;;  %v4343_v13 = vpack.c.bf16 %v2181_v50, %v2180_v1  ;;  %v2185_v50 = vld [vmem:[%s7261_s5 + $0x88] sm:$0xff] }
 0x338   :  { %v1911_v59 = vpop.permute.xlu0 %1910  ;;  %4317 = vmatpush1.bf16.msra.mxu1 %v4316_v16  ;;  %4344 = vmatpush1.bf16.msra.mxu0 %v4343_v13  ;;  %v6358_v16 = vmax.f32 %v1829_v19, %v1867_v10  ;;  %v3750_v19 = vld [vmem:[%s7261_s5 + $0x138] sm:$0xff]  ;;  %v1943_v13 = vmax.f32 %v1830_v36, %v1917_v21  ;;  %v4352_v36 = vpack.c.bf16 %v2187_v37, %v2186_v8 }
 0x339   :  { %v6322_v63 = vmax.f32 %v1821_v32, %v1911_v59  ;;  %v1913_v5 = vpop.permute.xlu1 %1912  ;;  %v3747_v32 = vld [vmem:[%s7261_s5 + $0x120] sm:$0xff]  ;;  %v6347_v59 = vmax.f32 %v1826_v18, %v1865_v29  ;;  %4318 = vmatprep.subr.bf16.mxu1 %v4737_v24  ;;  %4345 = vmatprep.subr.bf16.mxu0 %v4737_v24  ;;  %v4322_v10 = vpack.c.bf16 %v3750_v19, %v3749_v2 }
 0x33a   :  { %v6330_v7 = vmax.f32 %v1824_v6, %v1913_v5  ;;  %v2182_v6 = vld [vmem:[%s7261_s5 + $0x70] sm:$0xff]  ;;  %v4319_v1 = vpack.c.bf16 %v3748_v35, %v3747_v32  ;;  %v2183_v5 = vld [vmem:[%s7261_s5 + $0x78] sm:$0xff]  ;;  %v1844_v32 = vmax.f32 %v6156_v34, 0.0  ;;  %v1847_v35 = vmax.f32 %v6176_v27, 0.0  ;;  %v3774_v27 = vld [vmem:[%s7261_s5 + $0x1e0] sm:$0xff] }
 0x33b   :  { %2050 = vrot.lane.b32.xlu0 %v6322_v63, %s4739_s17  ;;  %v4346_v18 = vpack.c.bf16 %v2183_v5, %v2182_v6  ;;  %v1848_v6 = vmax.f32 %v6182_v28, 0.0  ;;  %v1840_v5 = vmax.f32 %v6032_v17, 0.0  ;;  %v3756_v34 = vld [vmem:[%s7261_s5 + $0x158] sm:$0xff]  ;;  %v3776_v28 = vld [vmem:[%s7261_s5 + $0x1f0] sm:$0xff]  ;;  %v3762_v17 = vld [vmem:[%s7261_s5 + $0x188] sm:$0xff] }
 0x33c   :  { %v1965_v31 = vpop.permute.xlu0 %1964  ;;  %2052 = vrot.lane.b32.xlu1 %v6330_v7, %s4739_s17  ;;  %4320 = vmatpush1.bf16.msra.mxu1 %v4319_v1 }
 0x33d   :  { %v1992_v45 = vmax.f32 %v1828_v40, %v1965_v31  ;;  %v1967_v46 = vpop.permute.xlu1 %1966  ;;  %4347 = vmatpush1.bf16.msra.mxu0 %v4346_v18  ;;  %v1942_v40 = vmax.f32 %v1827_v22, %v1915_v20  ;;  %4321 = vmatprep.subr.bf16.mxu1 %v4737_v24  ;;  %v4349_v22 = vpack.c.bf16 %v2185_v50, %v2184_v25 }
 0x33e   :  { %v1993_v33 = vmax.f32 %v1831_v4, %v1967_v46  ;;  %4348 = vmatprep.subr.bf16.mxu0 %v4737_v24 }
 0x33f   :  { %2147 = vst.msk [vmem:[#allocation3 + $0x28] sm:$0xff] %vm2110_vm5, %v1992_v45  ;;  %2014 = vrot.lane.b32.xlu0 %v6347_v59, %s4738_s4  ;;  %v1837_v45 = vmax.f32 %v6029_v56, 0.0  ;;  %v3778_v56 = vld [vmem:[%s7261_s5 + $0x200] sm:$0xff] }
 0x340   :  { %2149 = vst.msk [vmem:[#allocation3 + $0x38] sm:$0xff] %vm2110_vm5, %v1993_v33  ;;  %2016 = vrot.lane.b32.xlu1 %v6358_v16, %s4738_s4  ;;  %v1961_v43 = vpop.permute.xlu0 %1960  ;;  %4323 = vmatpush1.bf16.msra.mxu1 %v4322_v10  ;;  %v1843_v33 = vmax.f32 %v6036_v47, 0.0  ;;  %v3780_v47 = vld [vmem:[%s7261_s5 + $0x210] sm:$0xff] }
 0x341   :  { %v1990_v4 = vmax.f32 %v1822_v49, %v1961_v43  ;;  %v1963_v29 = vpop.permute.xlu1 %1962  ;;  %4350 = vmatpush1.bf16.msra.mxu0 %v4349_v22  ;;  %4354 = vmatprep.subr.bf16.mxu1 %v4737_v24 }
 0x342   :  { %v1991_v15 = vmax.f32 %v1825_v60, %v1963_v29  ;;  %4351 = vmatprep.subr.bf16.mxu0 %v4737_v24 }
 0x343   :  { %2143 = vst.msk [vmem:[#allocation3 + $0x8] sm:$0xff] %vm2110_vm5, %v1990_v4  ;;  %2054 = vrot.lane.b32.xlu0 %v1942_v40, %s4739_s17 }
 0x344   :  { %2145 = vst.msk [vmem:[#allocation3 + $0x18] sm:$0xff] %vm2110_vm5, %v1991_v15  ;;  %2056 = vrot.lane.b32.xlu1 %v1943_v13, %s4739_s17  ;;  %v1869_v46 = vpop.permute.xlu0 %1868 }
 0x345   :  { %4353 = vmatpush1.bf16.msra.mxu0 %v4352_v36  ;;  %v1871_v1 = vpop.permute.xlu1 %1870  ;;  %v6445_v18 = vmax.f32 %v1832_v9, %v1869_v46 }
 0x346   :  { %v2189_v14 = vld [vmem:[#allocation3 + $0x28] sm:$0xf]  ;;  %4384 = vmatprep.subr.bf16.mxu0 %v4737_v24  ;;  %v6449_v43 = vmax.f32 %v1835_v41, %v1871_v1 }
 0x347   :  { %2084 = vrot.lane.b32.xlu0 %v1942_v40, %s4740_s3  ;;  %v2191_v49 = vld [vmem:[#allocation3 + $0x38] sm:$0xf] }
 0x348   :  { %2086 = vrot.lane.b32.xlu1 %v1943_v13, %s4740_s3  ;;  %v2193_v60 = vmax.f32 %v2189_v14, %v2191_v49  ;;  %v1919_v2 = vpop.permute.xlu0 %1918 }
 0x349   :  { %v1921_v19 = vpop.permute.xlu1 %1920  ;;  %v1944_v25 = vmax.f32 %v1833_v52, %v1919_v2 }
 0x34a   :  { %3751 = vmatprep.mubr.msk.f32.mxu1 %vm2110_vm5, %v2193_v60  ;;  %v2163_v20 = vld [vmem:[#allocation3 + $0x8] sm:$0xf]  ;;  %v1945_v44 = vmax.f32 %v1836_v48, %v1921_v19 }
 0x34b   :  { %2080 = vrot.lane.b32.xlu0 %v6322_v63, %s4740_s3  ;;  %v2165_v21 = vld [vmem:[#allocation3 + $0x18] sm:$0xf]  ;;  %v1845_v63 = vmax.f32 %v6162_v51, 0.0 }
 0x34c   :  { %2082 = vrot.lane.b32.xlu1 %v6330_v7, %s4740_s3  ;;  %v2167_v31 = vmax.f32 %v2163_v20, %v2165_v21  ;;  %v1834_v7 = vmax.f32 %v6026_v55, 0.0  ;;  %v1873_v9 = vpop.permute.xlu0 %1872  ;;  %v3760_v55 = vld [vmem:[%s7261_s5 + $0x178] sm:$0xff] }
 0x34d   :  { %v1875_v61 = vpop.permute.xlu1 %1874  ;;  %v6465_v41 = vmax.f32 %v1838_v30, %v1873_v9  ;;  %v1849_v30 = vmax.f32 %v6043_v58, 0.0 }
 0x34e   :  { %3752 = vmatprep.mubr.msk.f32.mxu0 %vm2110_vm5, %v2167_v31  ;;  %v6469_v12 = vmax.f32 %v1841_v11, %v1875_v61  ;;  %v3755_v61 = vld [vmem:[%s7261_s5 + $0x150] sm:$0xff] }
 0x34f   :  { %1876 = vrot.lane.b32.xlu0 %v1844_v32, %s4738_s4 }
 0x350   :  { %1878 = vrot.lane.b32.xlu1 %v1847_v35, %s4738_s4  ;;  %v1923_v42 = vpop.permute.xlu0 %1922 }
 0x351   :  { %v1925_v52 = vpop.permute.xlu1 %1924  ;;  %v1946_v48 = vmax.f32 %v1839_v26, %v1923_v42 }
 0x352   :  { %v1947_v53 = vmax.f32 %v1842_v38, %v1925_v52 }
 0x353   :  { %1926 = vrot.lane.b32.xlu0 %v1845_v63, %s4738_s4 }
 0x354   :  { %1928 = vrot.lane.b32.xlu1 %v1848_v6, %s4738_s4 }
 0x357   :  { %1968 = vrot.lane.b32.xlu0 %v1834_v7, %s4738_s4 }
 0x358   :  { %1970 = vrot.lane.b32.xlu1 %v1837_v45, %s4738_s4 }
 0x35b   :  { %1972 = vrot.lane.b32.xlu0 %v1840_v5, %s4738_s4 }
 0x35c   :  { %1974 = vrot.lane.b32.xlu1 %v1843_v33, %s4738_s4 }
 0x35f   :  { %2018 = vrot.lane.b32.xlu0 %v6445_v18, %s4738_s4 }
 0x360   :  { %2020 = vrot.lane.b32.xlu1 %v6449_v43, %s4738_s4 }
 0x363   :  { %2058 = vrot.lane.b32.xlu0 %v1944_v25, %s4739_s17 }
 0x364   :  { %2060 = vrot.lane.b32.xlu1 %v1945_v44, %s4739_s17 }
 0x367   :  { %2088 = vrot.lane.b32.xlu0 %v1944_v25, %s4740_s3 }
 0x368   :  { %2090 = vrot.lane.b32.xlu1 %v1945_v44, %s4740_s3 }
 0x36b   :  { %2022 = vrot.lane.b32.xlu0 %v6465_v41, %s4738_s4 }
 0x36c   :  { %2024 = vrot.lane.b32.xlu1 %v6469_v12, %s4738_s4 }
 0x36f   :  { %2062 = vrot.lane.b32.xlu0 %v1946_v48, %s4739_s17 }
 0x370   :  { %2064 = vrot.lane.b32.xlu1 %v1947_v53, %s4739_s17 }
 0x373   :  { %2092 = vrot.lane.b32.xlu0 %v1946_v48, %s4740_s3 }
 0x374   :  { %2094 = vrot.lane.b32.xlu1 %v1947_v53, %s4740_s3 }
 0x377   :  { %1976 = vrot.lane.b32.xlu0 %v1846_v57, %s4738_s4 }
 0x378   :  { %1978 = vrot.lane.b32.xlu1 %v1849_v30, %s4738_s4 }
 0x39d   :  { %v2011_v0 = vpop.permute.xlu0 %2010 }
 0x39e   :  { %v2111_v14 = vsel %vm2110_vm5, %v6257_v62, %v2011_v0  ;;  %v3753_v62 = vld [vmem:[%s7261_s5 + $0x140] sm:$0xff] }
 0x3a1   :  { %v2013_v11 = vpop.permute.xlu1 %2012 }
 0x3ad   :  { %v2051_v23 = vpop.permute.xlu0 %2050 }
 0x3ae   :  { %v2053_v26 = vpop.permute.xlu1 %2052 }
 0x3b1   :  { %v2015_v38 = vpop.permute.xlu0 %2014 }
 0x3b2   :  { %v2017_v40 = vpop.permute.xlu1 %2016  ;;  %v2113_v10 = vsel %vm2110_vm5, %v6347_v59, %v2015_v38  ;;  %v2112_v59 = vsel %vm2110_vm5, %v6274_v39, %v2013_v11  ;;  %v3754_v39 = vld [vmem:[%s7261_s5 + $0x148] sm:$0xff]  ;;  %v3757_v38 = vld [vmem:[%s7261_s5 + $0x160] sm:$0xff] }
 0x3b3   :  { %v2114_v50 = vsel %vm2110_vm5, %v6358_v16, %v2017_v40  ;;  %v2121_v16 = vsel %vm676_vm4, %v2111_v14, %v2051_v23  ;;  %v2122_v60 = vsel %vm676_vm4, %v2112_v59, %v2053_v26  ;;  %v4355_v9 = vpack.c.bf16 %v3754_v39, %v3753_v62  ;;  %v3761_v59 = vld [vmem:[%s7261_s5 + $0x180] sm:$0xff] }
 0x3b4   :  { %v4358_v23 = vpack.c.bf16 %v3756_v34, %v3755_v61  ;;  %v3782_v39 = vld [vmem:[%s7261_s5 + $0x220] sm:$0xff] }
 0x3b5   :  { %v2055_v4 = vpop.permute.xlu0 %2054  ;;  %v3765_v34 = vld [vmem:[%s7261_s5 + $0x1a0] sm:$0xff] }
 0x3b6   :  { %v2057_v29 = vpop.permute.xlu1 %2056  ;;  %v2123_v13 = vsel %vm676_vm4, %v2113_v10, %v2055_v4 }
 0x3b7   :  { %v2124_v22 = vsel %vm676_vm4, %v2114_v50, %v2057_v29 }
 0x3b9   :  { %v2085_v15 = vpop.permute.xlu0 %2084 }
 0x3ba   :  { %v2134_v8 = vsel %vm2131_vm6, %v2123_v13, %v2085_v15  ;;  %v2087_v37 = vpop.permute.xlu1 %2086  ;;  %v3759_v15 = vld [vmem:[%s7261_s5 + $0x170] sm:$0xff] }
 0x3bb   :  { %2146 = vst [vmem:[#allocation3 + $0x20] sm:$0xff] %v2134_v8  ;;  %v2135_v36 = vsel %vm2131_vm6, %v2124_v22, %v2087_v37 }
 0x3bc   :  { %2148 = vst [vmem:[#allocation3 + $0x30] sm:$0xff] %v2135_v36  ;;  %v4364_v36 = vpack.c.bf16 %v3760_v55, %v3759_v15  ;;  %v3769_v15 = vld [vmem:[%s7261_s5 + $0x1c0] sm:$0xff]  ;;  %v3770_v55 = vld [vmem:[%s7261_s5 + $0x1c8] sm:$0xff] }
 0x3bd   :  { %v2081_v49 = vpop.permute.xlu0 %2080 }
 0x3be   :  { %v2132_v20 = vsel %vm2131_vm6, %v2121_v16, %v2081_v49  ;;  %v2083_v21 = vpop.permute.xlu1 %2082  ;;  %v4367_v49 = vpack.c.bf16 %v3762_v17, %v3761_v59  ;;  %v3772_v59 = vld [vmem:[%s7261_s5 + $0x1d8] sm:$0xff]  ;;  %v3790_v17 = vld [vmem:[%s7261_s5 + $0x260] sm:$0xff] }
 0x3bf   :  { %2142 = vst [vmem:[#allocation3] sm:$0xff] %v2132_v20  ;;  %v2133_v31 = vsel %vm2131_vm6, %v2122_v60, %v2083_v21  ;;  %v3763_v21 = vld [vmem:[%s7261_s5 + $0x190] sm:$0xff] }
 0x3c0   :  { %2144 = vst [vmem:[#allocation3 + $0x10] sm:$0xff] %v2133_v31  ;;  %v3764_v31 = vld [vmem:[%s7261_s5 + $0x198] sm:$0xff] }
 0x3c1   :  { %v1877_v46 = vpop.permute.xlu0 %1876 }
 0x3c2   :  { %v6515_v1 = vmax.f32 %v1844_v32, %v1877_v46  ;;  %v1879_v2 = vpop.permute.xlu1 %1878  ;;  %v2188_v19 = vld [vmem:[#allocation3 + $0x20] sm:$0xf]  ;;  %v3775_v32 = vld [vmem:[%s7261_s5 + $0x1e8] sm:$0xff] }
 0x3c3   :  { %v6519_v25 = vmax.f32 %v1847_v35, %v1879_v2  ;;  %v2190_v44 = vld [vmem:[#allocation3 + $0x30] sm:$0xf]  ;;  %v4385_v26 = vpack.c.bf16 %v3775_v32, %v3774_v27  ;;  %v3783_v46 = vld [vmem:[%s7261_s5 + $0x228] sm:$0xff] }
 0x3c4   :  { %2026 = vrot.lane.b32.xlu0 %v6515_v1, %s4738_s4  ;;  %v2192_v42 = vmax.f32 %v2188_v19, %v2190_v44  ;;  %v4397_v61 = vpack.c.bf16 %v3783_v46, %v3782_v39  ;;  %v3766_v27 = vld [vmem:[%s7261_s5 + $0x1a8] sm:$0xff]  ;;  %v3795_v39 = vld [vmem:[%s7261_s5 + $0x280] sm:$0xff] }
 0x3c5   :  { %v1927_v35 = vpop.permute.xlu0 %1926  ;;  %2028 = vrot.lane.b32.xlu1 %v6519_v25, %s4738_s4  ;;  %v3796_v46 = vld [vmem:[%s7261_s5 + $0x288] sm:$0xff] }
 0x3c6   :  { %v1948_v52 = vmax.f32 %v1845_v63, %v1927_v35  ;;  %2283 = vmatmul.mubr.f32.vlgmr.msra.gmra.mrb[40].mxu1 %v2192_v42  ;;  %v1929_v48 = vpop.permute.xlu1 %1928  ;;  %v2162_v53 = vld [vmem:[#allocation3] sm:$0xf]  ;;  %v3758_v63 = vld [vmem:[%s7261_s5 + $0x168] sm:$0xff] }
 0x3c7   :  { %4356 = vmatpush1.bf16.msra.mxu1 %v4355_v9  ;;  %v1949_v0 = vmax.f32 %v1848_v6, %v1929_v48  ;;  %v2164_v11 = vld [vmem:[#allocation3 + $0x10] sm:$0xf]  ;;  %v3777_v6 = vld [vmem:[%s7261_s5 + $0x1f8] sm:$0xff]  ;;  %v4361_v50 = vpack.c.bf16 %v3758_v63, %v3757_v38  ;;  %v4370_v9 = vpack.c.bf16 %v3764_v31, %v3763_v21  ;;  %v4373_v63 = vpack.c.bf16 %v3766_v27, %v3765_v34 }
 0x3c8   :  { %2066 = vrot.lane.b32.xlu0 %v1948_v52, %s4739_s17  ;;  %4357 = vmatprep.subr.bf16.mxu1 %v4737_v24  ;;  %v2166_v51 = vmax.f32 %v2162_v53, %v2164_v11  ;;  %v4388_v13 = vpack.c.bf16 %v3777_v6, %v3776_v28  ;;  %v3785_v48 = vld [vmem:[%s7261_s5 + $0x238] sm:$0xff] }
 0x3c9   :  { %v1969_v40 = vpop.permute.xlu0 %1968  ;;  %2068 = vrot.lane.b32.xlu1 %v1949_v0, %s4739_s17  ;;  %v3768_v6 = vld [vmem:[%s7261_s5 + $0x1b8] sm:$0xff] }
 0x3ca   :  { %v1994_v4 = vmax.f32 %v1834_v7, %v1969_v40  ;;  %2356 = vmatmul.mubr.f32.vlgmr.msra.gmra.mrb[64].mxu0 %v2166_v51  ;;  %v1971_v29 = vpop.permute.xlu1 %1970  ;;  %v3779_v7 = vld [vmem:[%s7261_s5 + $0x208] sm:$0xff]  ;;  %v3786_v40 = vld [vmem:[%s7261_s5 + $0x240] sm:$0xff]  ;;  %v2667_v34 = vld [vmem:[#allocation3 + $0x18] sm:$0xf0] }
 0x3cb   :  { %4359 = vmatpush1.bf16.msra.mxu1 %v4358_v23  ;;  %4386 = vmatpush1.bf16.msra.mxu0 %v4385_v26  ;;  %v1995_v10 = vmax.f32 %v1837_v45, %v1971_v29  ;;  %v4391_v14 = vpack.c.bf16 %v3779_v7, %v3778_v56  ;;  %v3788_v56 = vld [vmem:[%s7261_s5 + $0x250] sm:$0xff]  ;;  %v3789_v7 = vld [vmem:[%s7261_s5 + $0x258] sm:$0xff] }
 0x3cc   :  { %2151 = vst.msk [vmem:[#allocation3 + $0x48] sm:$0xff] %vm2110_vm5, %v1994_v4  ;;  %2096 = vrot.lane.b32.xlu0 %v1948_v52, %s4740_s3  ;;  %4360 = vmatprep.subr.bf16.mxu1 %v4737_v24  ;;  %v3784_v52 = vld [vmem:[%s7261_s5 + $0x230] sm:$0xff]  ;;  %v3787_v4 = vld [vmem:[%s7261_s5 + $0x248] sm:$0xff] }
 0x3cd   :  { %2153 = vst.msk [vmem:[#allocation3 + $0x58] sm:$0xff] %vm2110_vm5, %v1995_v10  ;;  %v1973_v45 = vpop.permute.xlu0 %1972  ;;  %4387 = vmatprep.subr.bf16.mxu0 %v4737_v24  ;;  %2098 = vrot.lane.b32.xlu1 %v1949_v0, %s4740_s3  ;;  %v4400_v28 = vpack.c.bf16 %v3785_v48, %v3784_v52  ;;  %v3798_v48 = vld [vmem:[%s7261_s5 + $0x298] sm:$0xff] }
 0x3ce   :  { %v1996_v22 = vmax.f32 %v1840_v5, %v1973_v45  ;;  %v1975_v8 = vpop.permute.xlu1 %1974  ;;  %v3781_v5 = vld [vmem:[%s7261_s5 + $0x218] sm:$0xff] }
 0x3cf   :  { %4362 = vmatpush1.bf16.msra.mxu1 %v4361_v50  ;;  %4389 = vmatpush1.bf16.msra.mxu0 %v4388_v13  ;;  %v1997_v37 = vmax.f32 %v1843_v33, %v1975_v8  ;;  %v4394_v60 = vpack.c.bf16 %v3781_v5, %v3780_v47  ;;  %v4403_v13 = vpack.c.bf16 %v3787_v4, %v3786_v40  ;;  %v3791_v47 = vld [vmem:[%s7261_s5 + $0x268] sm:$0xff]  ;;  %v3820_v4 = vld [vmem:[%s7261_s5 + $0x340] sm:$0xff] }
 0x3d0   :  { %2155 = vst.msk [vmem:[#allocation3 + $0x68] sm:$0xff] %vm2110_vm5, %v1996_v22  ;;  %4363 = vmatprep.subr.bf16.mxu1 %v4737_v24  ;;  %4390 = vmatprep.subr.bf16.mxu0 %v4737_v24  ;;  %v4379_v8 = vpack.c.bf16 %v3770_v55, %v3769_v15  ;;  %v4409_v31 = vpack.c.bf16 %v3791_v47, %v3790_v17  ;;  %v3802_v15 = vld [vmem:[%s7261_s5 + $0x2b8] sm:$0xff]  ;;  %v3805_v17 = vld [vmem:[%s7261_s5 + $0x2d0] sm:$0xff] }
 0x3d1   :  { %2157 = vst.msk [vmem:[#allocation3 + $0x78] sm:$0xff] %vm2110_vm5, %v1997_v37  ;;  %v2019_v33 = vpop.permute.xlu0 %2018  ;;  %v4406_v37 = vpack.c.bf16 %v3789_v7, %v3788_v56  ;;  %v3822_v56 = vld [vmem:[%s7261_s5 + $0x350] sm:$0xff]  ;;  %v3823_v7 = vld [vmem:[%s7261_s5 + $0x358] sm:$0xff] }
 0x3d2   :  { %v2021_v16 = vpop.permute.xlu1 %2020  ;;  %v2115_v32 = vsel %vm2110_vm5, %v6445_v18, %v2019_v33  ;;  %v3806_v47 = vld [vmem:[%s7261_s5 + $0x2d8] sm:$0xff] }
 0x3d3   :  { %4365 = vmatpush1.bf16.msra.mxu1 %v4364_v36  ;;  %4392 = vmatpush1.bf16.msra.mxu0 %v4391_v14  ;;  %v2362_v20 = vld [vmem:[#allocation3 + $0x48] sm:$0xf]  ;;  %v2116_v53 = vsel %vm2110_vm5, %v6449_v43, %v2021_v16  ;;  %v3767_v43 = vld [vmem:[%s7261_s5 + $0x1b0] sm:$0xff] }
 0x3d4   :  { %4366 = vmatprep.subr.bf16.mxu1 %v4737_v24  ;;  %4393 = vmatprep.subr.bf16.mxu0 %v4737_v24  ;;  %v2364_v62 = vld [vmem:[#allocation3 + $0x58] sm:$0xf]  ;;  %v4376_v50 = vpack.c.bf16 %v3768_v6, %v3767_v43  ;;  %v3771_v36 = vld [vmem:[%s7261_s5 + $0x1d0] sm:$0xff] }
 0x3d5   :  { %v2059_v2 = vpop.permute.xlu0 %2058  ;;  %v2366_v19 = vmax.f32 %v2362_v20, %v2364_v62  ;;  %v4382_v21 = vpack.c.bf16 %v3772_v59, %v3771_v36  ;;  %v3792_v62 = vld [vmem:[%s7261_s5 + $0x270] sm:$0xff]  ;;  %v3824_v36 = vld [vmem:[%s7261_s5 + $0x360] sm:$0xff] }
 0x3d6   :  { %v2061_v44 = vpop.permute.xlu1 %2060  ;;  %v2125_v0 = vsel %vm676_vm4, %v2115_v32, %v2059_v2 }
 0x3d7   :  { %4368 = vmatpush1.bf16.msra.mxu1 %v4367_v49  ;;  %4395 = vmatpush1.bf16.msra.mxu0 %v4394_v60  ;;  %v2463_v42 = vld [vmem:[#allocation3 + $0x68] sm:$0xf]  ;;  %v2126_v23 = vsel %vm676_vm4, %v2116_v53, %v2061_v44 }
 0x3d8   :  { %3773 = vmatprep.mubr.msk.f32.mxu1 %vm2110_vm5, %v2366_v19  ;;  %4369 = vmatprep.subr.bf16.mxu1 %v4737_v24  ;;  %v2465_v35 = vld [vmem:[#allocation3 + $0x78] sm:$0xf] }
 0x3d9   :  { %v2089_v11 = vpop.permute.xlu0 %2088  ;;  %4396 = vmatprep.subr.bf16.mxu0 %v4737_v24  ;;  %v2467_v18 = vmax.f32 %v2463_v42, %v2465_v35  ;;  %v2665_v42 = vld [vmem:[#allocation3 + $0x8] sm:$0xf0]  ;;  %v4415_v35 = vpack.c.bf16 %v3796_v46, %v3795_v39  ;;  %v3810_v39 = vld [vmem:[%s7261_s5 + $0x2f8] sm:$0xff] }
 0x3da   :  { %v2136_v26 = vsel %vm2131_vm6, %v2125_v0, %v2089_v11  ;;  %v2091_v38 = vpop.permute.xlu1 %2090  ;;  %v2669_v58 = vmax.f32 %v2665_v42, %v2667_v34  ;;  %v3832_v34 = vld [vmem:[%s7261_s5 + $0x3a0] sm:$0xff] }
 0x3db   :  { %2150 = vst [vmem:[#allocation3 + $0x40] sm:$0xff] %v2136_v26  ;;  %4371 = vmatpush1.bf16.msra.mxu1 %v4370_v9  ;;  %4398 = vmatpush1.bf16.msra.mxu0 %v4397_v61  ;;  %v2137_v51 = vsel %vm2131_vm6, %v2126_v23, %v2091_v38  ;;  %v3818_v23 = vld [vmem:[%s7261_s5 + $0x330] sm:$0xff]  ;;  %v3819_v26 = vld [vmem:[%s7261_s5 + $0x338] sm:$0xff] }
 0x3dc   :  { %2152 = vst [vmem:[#allocation3 + $0x50] sm:$0xff] %v2137_v51  ;;  %3794 = vmatprep.mubr.msk.f32.mxu0 %vm2110_vm5, %v2467_v18  ;;  %4372 = vmatprep.subr.bf16.mxu1 %v4737_v24  ;;  %v2694_v51 = vrot.slane %v2669_v58, 4  ;;  %v4448_v43 = vpack.c.bf16 %v3819_v26, %v3818_v23  ;;  %v3835_v58 = vld [vmem:[%s7261_s5 + $0x3b8] sm:$0xff]  ;;  %v3858_v26 = vld [vmem:[%s7261_s5 + $0x460] sm:$0xff] }
 0x3dd   :  { %v2023_v29 = vpop.permute.xlu0 %2022  ;;  %4399 = vmatprep.subr.bf16.mxu0 %v4737_v24 }
 0x3de   :  { %v2025_v10 = vpop.permute.xlu1 %2024  ;;  %v2117_v14 = vsel %vm2110_vm5, %v6465_v41, %v2023_v29  ;;  %v3821_v29 = vld [vmem:[%s7261_s5 + $0x348] sm:$0xff] }
 0x3df   :  { %4374 = vmatpush1.bf16.msra.mxu1 %v4373_v63  ;;  %4401 = vmatpush1.bf16.msra.mxu0 %v4400_v28  ;;  %v2118_v5 = vsel %vm2110_vm5, %v6469_v12, %v2025_v10  ;;  %v3793_v12 = vld [vmem:[%s7261_s5 + $0x278] sm:$0xff]  ;;  %v3799_v63 = vld [vmem:[%s7261_s5 + $0x2a0] sm:$0xff]  ;;  %v3800_v28 = vld [vmem:[%s7261_s5 + $0x2a8] sm:$0xff]  ;;  %v4451_v55 = vpack.c.bf16 %v3821_v29, %v3820_v4 }
 0x3e0   :  { %4375 = vmatprep.subr.bf16.mxu1 %v4737_v24  ;;  %4402 = vmatprep.subr.bf16.mxu0 %v4737_v24  ;;  %v4412_v32 = vpack.c.bf16 %v3793_v12, %v3792_v62  ;;  %v4421_v10 = vpack.c.bf16 %v3800_v28, %v3799_v63  ;;  %v3809_v12 = vld [vmem:[%s7261_s5 + $0x2f0] sm:$0xff]  ;;  %v3862_v29 = vld [vmem:[%s7261_s5 + $0x480] sm:$0xff] }
 0x3e1   :  { %v2063_v45 = vpop.permute.xlu0 %2062 }
 0x3e2   :  { %v2065_v22 = vpop.permute.xlu1 %2064  ;;  %v2127_v41 = vsel %vm676_vm4, %v2117_v14, %v2063_v45  ;;  %v2361_v19 = vld [vmem:[#allocation3 + $0x40] sm:$0xf]  ;;  %v3825_v14 = vld [vmem:[%s7261_s5 + $0x368] sm:$0xff] }
 0x3e3   :  { %4377 = vmatpush1.bf16.msra.mxu1 %v4376_v50  ;;  %4404 = vmatpush1.bf16.msra.mxu0 %v4403_v13  ;;  %v2128_v16 = vsel %vm676_vm4, %v2118_v5, %v2065_v22  ;;  %v2363_v44 = vld [vmem:[#allocation3 + $0x50] sm:$0xf]  ;;  %v3803_v22 = vld [vmem:[%s7261_s5 + $0x2c0] sm:$0xff]  ;;  %v4457_v5 = vpack.c.bf16 %v3825_v14, %v3824_v36  ;;  %v3871_v14 = vld [vmem:[%s7261_s5 + $0x4c8] sm:$0xff] }
 0x3e4   :  { %4378 = vmatprep.subr.bf16.mxu1 %v4737_v24  ;;  %4405 = vmatprep.subr.bf16.mxu0 %v4737_v24  ;;  %v2365_v52 = vmax.f32 %v2361_v19, %v2363_v44  ;;  %v3801_v13 = vld [vmem:[%s7261_s5 + $0x2b0] sm:$0xff]  ;;  %v3831_v19 = vld [vmem:[%s7261_s5 + $0x398] sm:$0xff]  ;;  %v4436_v44 = vpack.c.bf16 %v3810_v39, %v3809_v12  ;;  %v3870_v36 = vld [vmem:[%s7261_s5 + $0x4c0] sm:$0xff] }
 0x3e5   :  { %v2093_v33 = vpop.permute.xlu0 %2092  ;;  %v4424_v45 = vpack.c.bf16 %v3802_v15, %v3801_v13  ;;  %v3864_v13 = vld [vmem:[%s7261_s5 + $0x490] sm:$0xff]  ;;  %v3865_v15 = vld [vmem:[%s7261_s5 + $0x498] sm:$0xff] }
 0x3e6   :  { %v2138_v49 = vsel %vm2131_vm6, %v2127_v41, %v2093_v33  ;;  %v2095_v60 = vpop.permute.xlu1 %2094  ;;  %v3826_v41 = vld [vmem:[%s7261_s5 + $0x370] sm:$0xff]  ;;  %v3827_v33 = vld [vmem:[%s7261_s5 + $0x378] sm:$0xff] }
 0x3e7   :  { %2154 = vst [vmem:[#allocation3 + $0x60] sm:$0xff] %v2138_v49  ;;  %4380 = vmatpush1.bf16.msra.mxu1 %v4379_v8  ;;  %4407 = vmatpush1.bf16.msra.mxu0 %v4406_v37  ;;  %v2139_v20 = vsel %vm2131_vm6, %v2128_v16, %v2095_v60  ;;  %v3804_v8 = vld [vmem:[%s7261_s5 + $0x2c8] sm:$0xff]  ;;  %v4454_v37 = vpack.c.bf16 %v3823_v7, %v3822_v56  ;;  %v3807_v49 = vld [vmem:[%s7261_s5 + $0x2e0] sm:$0xff] }
 0x3e8   :  { %2156 = vst [vmem:[#allocation3 + $0x70] sm:$0xff] %v2139_v20  ;;  %4381 = vmatprep.subr.bf16.mxu1 %v4737_v24  ;;  %4408 = vmatprep.subr.bf16.mxu0 %v4737_v24  ;;  %v4427_v59 = vpack.c.bf16 %v3804_v8, %v3803_v22  ;;  %v4430_v16 = vpack.c.bf16 %v3806_v47, %v3805_v17  ;;  %v3808_v60 = vld [vmem:[%s7261_s5 + $0x2e8] sm:$0xff]  ;;  %v3866_v56 = vld [vmem:[%s7261_s5 + $0x4a0] sm:$0xff]  ;;  %v3868_v22 = vld [vmem:[%s7261_s5 + $0x4b0] sm:$0xff] }
 0x3e9   :  { %v1977_v2 = vpop.permute.xlu0 %1976  ;;  %v4460_v20 = vpack.c.bf16 %v3827_v33, %v3826_v41  ;;  %v4433_v62 = vpack.c.bf16 %v3808_v60, %v3807_v49  ;;  %v3867_v7 = vld [vmem:[%s7261_s5 + $0x4a8] sm:$0xff]  ;;  %v3869_v8 = vld [vmem:[%s7261_s5 + $0x4b8] sm:$0xff]  ;;  %v3872_v17 = vld [vmem:[%s7261_s5 + $0x4d0] sm:$0xff] }
 0x3ea   :  { %v1998_v9 = vmax.f32 %v1846_v57, %v1977_v2  ;;  %v1979_v61 = vpop.permute.xlu1 %1978  ;;  %v3817_v57 = vld [vmem:[%s7261_s5 + $0x328] sm:$0xff]  ;;  %v3830_v2 = vld [vmem:[%s7261_s5 + $0x390] sm:$0xff]  ;;  %v3873_v47 = vld [vmem:[%s7261_s5 + $0x4d8] sm:$0xff] }
 0x3eb   :  { %4383 = vmatpush1.bf16.msra.mxu1 %v4382_v21  ;;  %4410 = vmatpush1.bf16.msra.mxu0 %v4409_v31  ;;  %v1999_v27 = vmax.f32 %v1849_v30, %v1979_v61  ;;  %v3797_v30 = vld [vmem:[%s7261_s5 + $0x290] sm:$0xff]  ;;  %v4445_v11 = vpack.c.bf16 %v3817_v57, %v3816_v54  ;;  %v3828_v21 = vld [vmem:[%s7261_s5 + $0x380] sm:$0xff]  ;;  %v3829_v31 = vld [vmem:[%s7261_s5 + $0x388] sm:$0xff]  ;;  %v4466_v42 = vpack.c.bf16 %v3831_v19, %v3830_v2 }
 0x3ec   :  { %2159 = vst.msk [vmem:[#allocation3 + $0x88] sm:$0xff] %vm2110_vm5, %v1998_v9  ;;  %4411 = vmatprep.subr.bf16.mxu0 %v4737_v24  ;;  %4414 = vmatprep.subr.bf16.mxu1 %v4737_v24  ;;  %v4418_v38 = vpack.c.bf16 %v3798_v48, %v3797_v30  ;;  %v4463_v46 = vpack.c.bf16 %v3829_v31, %v3828_v21  ;;  %v3811_v9 = vld [vmem:[%s7261_s5 + $0x300] sm:$0xff]  ;;  %v3812_v61 = vld [vmem:[%s7261_s5 + $0x308] sm:$0xff]  ;;  %v3834_v57 = vld [vmem:[%s7261_s5 + $0x3b0] sm:$0xff] }
 0x3ed   :  { %2161 = vst.msk [vmem:[#allocation3 + $0x98] sm:$0xff] %vm2110_vm5, %v1999_v27  ;;  %v3833_v27 = vld [vmem:[%s7261_s5 + $0x3a8] sm:$0xff]  ;;  %v2664_v48 = vld [vmem:[#allocation3] sm:$0xf0]  ;;  %v3877_v21 = vld [vmem:[%s7261_s5 + $0x4f8] sm:$0xff] }
 0x3ee   :  { %2456 = vmatmul.mubr.f32.vlgmr.msra.gmra.mrb[42].mxu1 %v2365_v52  ;;  %v2462_v53 = vld [vmem:[#allocation3 + $0x60] sm:$0xf]  ;;  %v3814_v52 = vld [vmem:[%s7261_s5 + $0x318] sm:$0xff]  ;;  %v4469_v54 = vpack.c.bf16 %v3833_v27, %v3832_v34  ;;  %v3875_v33 = vld [vmem:[%s7261_s5 + $0x4e8] sm:$0xff] }
 0x3ef   :  { %4413 = vmatpush1.bf16.msra.mxu0 %v4412_v32  ;;  %v2464_v0 = vld [vmem:[#allocation3 + $0x70] sm:$0xf]  ;;  %4416 = vmatpush1.bf16.msra.mxu1 %v4415_v35  ;;  %v4439_v32 = vpack.c.bf16 %v3812_v61, %v3811_v9  ;;  %v3874_v41 = vld [vmem:[%s7261_s5 + $0x4e0] sm:$0xff]  ;;  %v3901_v61 = vld [vmem:[%s7261_s5 + $0x5a8] sm:$0xff] }
 0x3f0   :  { %4444 = vmatprep.subr.bf16.mxu0 %v4737_v24  ;;  %v2466_v18 = vmax.f32 %v2462_v53, %v2464_v0  ;;  %4417 = vmatprep.subr.bf16.mxu1 %v4737_v24  ;;  %v3813_v35 = vld [vmem:[%s7261_s5 + $0x310] sm:$0xff]  ;;  %v2875_v0 = vld [vmem:[#allocation3 + $0x48] sm:$0xf0]  ;;  %v4529_v60 = vpack.c.bf16 %v3875_v33, %v3874_v41  ;;  %v2874_v31 = vld [vmem:[#allocation3 + $0x40] sm:$0xf0] }
 0x3f1   :  { %v4442_v30 = vpack.c.bf16 %v3814_v52, %v3813_v35  ;;  %v2666_v53 = vld [vmem:[#allocation3 + $0x10] sm:$0xf0]  ;;  %v3900_v9 = vld [vmem:[%s7261_s5 + $0x5a0] sm:$0xff] }
 0x3f2   :  { %2557 = vmatmul.mubr.f32.vlgmr.msra.gmra.mrb[66].mxu0 %v2466_v18  ;;  %v4472_v18 = vpack.c.bf16 %v3835_v58, %v3834_v57  ;;  %v2668_v23 = vmax.f32 %v2664_v48, %v2666_v53  ;;  %v4565_v58 = vpack.c.bf16 %v3901_v61, %v3900_v9  ;;  %v3912_v33 = vld [vmem:[%s7261_s5 + $0x600] sm:$0xff]  ;;  %v3850_v61 = vld [vmem:[%s7261_s5 + $0x428] sm:$0xff] }
 0x3f3   :  { %4446 = vmatpush1.bf16.msra.mxu0 %v4445_v11  ;;  %3836 = vmatprep.mubr.msk.f32.mxu0 %vm2110_vm5, %v2694_v51  ;;  %v2564_v6 = vld [vmem:[#allocation3 + $0x88] sm:$0xf]  ;;  %v2877_v11 = vld [vmem:[#allocation3 + $0x58] sm:$0xf0]  ;;  %v3085_v39 = vld [vmem:[#allocation3 + $0x88] sm:$0xf0] }
 0x3f4   :  { %4447 = vmatprep.subr.bf16.mxu0 %v4737_v24  ;;  %v2566_v40 = vld [vmem:[#allocation3 + $0x98] sm:$0xf]  ;;  %4419 = vmatpush1.bf16.msra.mxu1 %v4418_v38  ;;  %v3859_v38 = vld [vmem:[%s7261_s5 + $0x468] sm:$0xff]  ;;  %v2879_v51 = vmax.f32 %v2875_v0, %v2877_v11  ;;  %v2693_v28 = vrot.slane %v2668_v23, 4  ;;  %v3904_v23 = vld [vmem:[%s7261_s5 + $0x5c0] sm:$0xff] }
 0x3f5   :  { %v2568_v50 = vmax.f32 %v2564_v6, %v2566_v40  ;;  %4420 = vmatprep.subr.bf16.mxu1 %v4737_v24  ;;  %v4505_v63 = vpack.c.bf16 %v3859_v38, %v3858_v26  ;;  %v3861_v6 = vld [vmem:[%s7261_s5 + $0x478] sm:$0xff]  ;;  %v2770_v11 = vld [vmem:[#allocation3 + $0x28] sm:$0xf0]  ;;  %v3837_v38 = vld [vmem:[%s7261_s5 + $0x3c0] sm:$0xff] }
 0x3f6   :  { %v2904_v40 = vrot.slane %v2879_v51, 4  ;;  %v3905_v26 = vld [vmem:[%s7261_s5 + $0x5c8] sm:$0xff]  ;;  %v3849_v9 = vld [vmem:[%s7261_s5 + $0x420] sm:$0xff] }
 0x3f7   :  { %4449 = vmatpush1.bf16.msra.mxu0 %v4448_v43  ;;  %3815 = vmatprep.mubr.msk.f32.mxu1 %vm2110_vm5, %v2568_v50  ;;  %v3860_v43 = vld [vmem:[%s7261_s5 + $0x470] sm:$0xff]  ;;  %v3838_v51 = vld [vmem:[%s7261_s5 + $0x3c8] sm:$0xff] }
 0x3f8   :  { %4450 = vmatprep.subr.bf16.mxu0 %v4737_v24  ;;  %4422 = vmatpush1.bf16.msra.mxu1 %v4421_v10  ;;  %v4508_v4 = vpack.c.bf16 %v3861_v6, %v3860_v43  ;;  %v3863_v10 = vld [vmem:[%s7261_s5 + $0x488] sm:$0xff] }
 0x3f9   :  { %4423 = vmatprep.subr.bf16.mxu1 %v4737_v24  ;;  %v4511_v50 = vpack.c.bf16 %v3863_v10, %v3862_v29  ;;  %v3907_v29 = vld [vmem:[%s7261_s5 + $0x5d8] sm:$0xff] }
 0x3fb   :  { %4452 = vmatpush1.bf16.msra.mxu0 %v4451_v55  ;;  %v4514_v55 = vpack.c.bf16 %v3865_v15, %v3864_v13  ;;  %v3840_v13 = vld [vmem:[%s7261_s5 + $0x3d8] sm:$0xff] }
 0x3fc   :  { %4453 = vmatprep.subr.bf16.mxu0 %v4737_v24  ;;  %4425 = vmatpush1.bf16.msra.mxu1 %v4424_v45  ;;  %v4517_v45 = vpack.c.bf16 %v3867_v7, %v3866_v56  ;;  %v3908_v7 = vld [vmem:[%s7261_s5 + $0x5e0] sm:$0xff] }
 0x3fd   :  { %4426 = vmatprep.subr.bf16.mxu1 %v4737_v24 }
 0x3ff   :  { %4455 = vmatpush1.bf16.msra.mxu0 %v4454_v37  ;;  %v4520_v37 = vpack.c.bf16 %v3869_v8, %v3868_v22  ;;  %v3841_v22 = vld [vmem:[%s7261_s5 + $0x3e0] sm:$0xff]  ;;  %v3842_v8 = vld [vmem:[%s7261_s5 + $0x3e8] sm:$0xff] }
 0x400   :  { %4456 = vmatprep.subr.bf16.mxu0 %v4737_v24  ;;  %4428 = vmatpush1.bf16.msra.mxu1 %v4427_v59  ;;  %v4523_v59 = vpack.c.bf16 %v3871_v14, %v3870_v36  ;;  %v4481_v36 = vpack.c.bf16 %v3842_v8, %v3841_v22  ;;  %v3910_v14 = vld [vmem:[%s7261_s5 + $0x5f0] sm:$0xff]  ;;  %v3886_v22 = vld [vmem:[%s7261_s5 + $0x538] sm:$0xff] }
 0x401   :  { %4429 = vmatprep.subr.bf16.mxu1 %v4737_v24 }
 0x403   :  { %4458 = vmatpush1.bf16.msra.mxu0 %v4457_v5  ;;  %v4526_v5 = vpack.c.bf16 %v3873_v47, %v3872_v17  ;;  %v3843_v17 = vld [vmem:[%s7261_s5 + $0x3f0] sm:$0xff]  ;;  %v3844_v47 = vld [vmem:[%s7261_s5 + $0x3f8] sm:$0xff] }
 0x404   :  { %4459 = vmatprep.subr.bf16.mxu0 %v4737_v24  ;;  %4431 = vmatpush1.bf16.msra.mxu1 %v4430_v16  ;;  %v4484_v41 = vpack.c.bf16 %v3844_v47, %v3843_v17  ;;  %v3890_v17 = vld [vmem:[%s7261_s5 + $0x558] sm:$0xff] }
 0x405   :  { %4432 = vmatprep.subr.bf16.mxu1 %v4737_v24 }
 0x407   :  { %4461 = vmatpush1.bf16.msra.mxu0 %v4460_v20  ;;  %v3876_v20 = vld [vmem:[%s7261_s5 + $0x4f0] sm:$0xff] }
 0x408   :  { %4462 = vmatprep.subr.bf16.mxu0 %v4737_v24  ;;  %4434 = vmatpush1.bf16.msra.mxu1 %v4433_v62  ;;  %v2876_v62 = vld [vmem:[#allocation3 + $0x50] sm:$0xf0]  ;;  %v4532_v19 = vpack.c.bf16 %v3877_v21, %v3876_v20 }
 0x409   :  { %4435 = vmatprep.subr.bf16.mxu1 %v4737_v24 }
 0x40b   :  { %4464 = vmatpush1.bf16.msra.mxu0 %v4463_v46  ;;  %v3087_v46 = vld [vmem:[#allocation3 + $0x98] sm:$0xf0] }
 0x40c   :  { %4465 = vmatprep.subr.bf16.mxu0 %v4737_v24  ;;  %4437 = vmatpush1.bf16.msra.mxu1 %v4436_v44  ;;  %v2878_v44 = vmax.f32 %v2874_v31, %v2876_v62  ;;  %v3089_v34 = vmax.f32 %v3085_v39, %v3087_v46  ;;  %v3914_v31 = vld [vmem:[%s7261_s5 + $0x610] sm:$0xff]  ;;  %v3915_v62 = vld [vmem:[%s7261_s5 + $0x618] sm:$0xff] }
 0x40d   :  { %4438 = vmatprep.subr.bf16.mxu1 %v4737_v24  ;;  %v3848_v39 = vld [vmem:[%s7261_s5 + $0x418] sm:$0xff]  ;;  %v4586_v46 = vpack.c.bf16 %v3915_v62, %v3914_v31  ;;  %v3897_v62 = vld [vmem:[%s7261_s5 + $0x590] sm:$0xff] }
 0x40e   :  { %v2903_v48 = vrot.slane %v2878_v44, 4  ;;  %v3114_v53 = vrot.slane %v3089_v34, 4  ;;  %v3917_v44 = vld [vmem:[%s7261_s5 + $0x628] sm:$0xff]  ;;  %v4493_v34 = vpack.c.bf16 %v3850_v61, %v3849_v9 }
 0x40f   :  { %4467 = vmatpush1.bf16.msra.mxu0 %v4466_v42 }
 0x410   :  { %4468 = vmatprep.subr.bf16.mxu0 %v4737_v24  ;;  %4440 = vmatpush1.bf16.msra.mxu1 %v4439_v32 }
 0x411   :  { %4441 = vmatprep.subr.bf16.mxu1 %v4737_v24 }
 0x413   :  { %4470 = vmatpush1.bf16.msra.mxu0 %v4469_v54 }
 0x414   :  { %4471 = vmatprep.subr.bf16.mxu0 %v4737_v24  ;;  %4443 = vmatpush1.bf16.msra.mxu1 %v4442_v30 }
 0x415   :  { %4474 = vmatprep.subr.bf16.mxu1 %v4737_v24 }
 0x417   :  { %4473 = vmatpush1.bf16.msra.mxu0 %v4472_v18  ;;  %v2772_v18 = vld [vmem:[#allocation3 + $0x38] sm:$0xf0] }
 0x418   :  { %4504 = vmatprep.subr.bf16.mxu0 %v4737_v24 }
 0x41a   :  { %2763 = vmatmul.mubr.f32.vlgmr.msra.gmra.mrb[68].mxu0 %v2693_v28  ;;  %v4571_v28 = vpack.c.bf16 %v3905_v26, %v3904_v23  ;;  %v2769_v23 = vld [vmem:[#allocation3 + $0x20] sm:$0xf0]  ;;  %v2771_v26 = vld [vmem:[#allocation3 + $0x30] sm:$0xf0] }
 0x41b   :  { %4506 = vmatpush1.bf16.msra.mxu0 %v4505_v63  ;;  %3878 = vmatprep.mubr.msk.f32.mxu0 %vm2110_vm5, %v2904_v40  ;;  %v2774_v63 = vmax.f32 %v2770_v11, %v2772_v18  ;;  %v4475_v40 = vpack.c.bf16 %v3838_v51, %v3837_v38  ;;  %v3855_v11 = vld [vmem:[%s7261_s5 + $0x450] sm:$0xff]  ;;  %v3856_v18 = vld [vmem:[%s7261_s5 + $0x458] sm:$0xff]  ;;  %v2980_v38 = vld [vmem:[#allocation3 + $0x68] sm:$0xf0] }
 0x41c   :  { %4507 = vmatprep.subr.bf16.mxu0 %v4737_v24  ;;  %v2982_v51 = vld [vmem:[#allocation3 + $0x78] sm:$0xf0] }
 0x41d   :  { %v2799_v15 = vrot.slane %v2774_v63, 4  ;;  %v4502_v63 = vpack.c.bf16 %v3856_v18, %v3855_v11  ;;  %v3201_v11 = vld [vmem:[%s7262_s7 + $0x18] sm:$0xff] }
 0x41f   :  { %4509 = vmatpush1.bf16.msra.mxu0 %v4508_v4  ;;  %v3906_v4 = vld [vmem:[%s7261_s5 + $0x5d0] sm:$0xff] }
 0x420   :  { %4510 = vmatprep.subr.bf16.mxu0 %v4737_v24 }
 0x423   :  { %4512 = vmatpush1.bf16.msra.mxu0 %v4511_v50  ;;  %v3839_v50 = vld [vmem:[%s7261_s5 + $0x3d0] sm:$0xff] }
 0x424   :  { %4513 = vmatprep.subr.bf16.mxu0 %v4737_v24  ;;  %v4478_v56 = vpack.c.bf16 %v3840_v13, %v3839_v50  ;;  %v3882_v50 = vld [vmem:[%s7261_s5 + $0x518] sm:$0xff] }
 0x427   :  { %4515 = vmatpush1.bf16.msra.mxu0 %v4514_v55  ;;  %v4574_v55 = vpack.c.bf16 %v3907_v29, %v3906_v4 }
 0x428   :  { %4516 = vmatprep.subr.bf16.mxu0 %v4737_v24 }
 0x42b   :  { %4518 = vmatpush1.bf16.msra.mxu0 %v4517_v45  ;;  %v3909_v45 = vld [vmem:[%s7261_s5 + $0x5e8] sm:$0xff] }
 0x42c   :  { %4519 = vmatprep.subr.bf16.mxu0 %v4737_v24 }
 0x42f   :  { %4521 = vmatpush1.bf16.msra.mxu0 %v4520_v37  ;;  %v4577_v37 = vpack.c.bf16 %v3909_v45, %v3908_v7  ;;  %v3885_v45 = vld [vmem:[%s7261_s5 + $0x530] sm:$0xff] }
 0x430   :  { %4522 = vmatprep.subr.bf16.mxu0 %v4737_v24  ;;  %v4544_v8 = vpack.c.bf16 %v3886_v22, %v3885_v45  ;;  %v3284_v45 = vld [vmem:[%s7264_s9 + $0x8] sm:$0xff] }
 0x433   :  { %4524 = vmatpush1.bf16.msra.mxu0 %v4523_v59  ;;  %v3911_v59 = vld [vmem:[%s7261_s5 + $0x5f8] sm:$0xff] }
 0x434   :  { %4525 = vmatprep.subr.bf16.mxu0 %v4737_v24 }
 0x436   :  { %v2027_v16 = vpop.permute.xlu0 %2026 }
 0x437   :  { %4527 = vmatpush1.bf16.msra.mxu0 %v4526_v5  ;;  %v2029_v49 = vpop.permute.xlu1 %2028  ;;  %v2119_v42 = vsel %vm2110_vm5, %v6515_v1, %v2027_v16  ;;  %v3902_v1 = vld [vmem:[%s7261_s5 + $0x5b0] sm:$0xff]  ;;  %v4580_v5 = vpack.c.bf16 %v3911_v59, %v3910_v14  ;;  %v3913_v16 = vld [vmem:[%s7261_s5 + $0x608] sm:$0xff] }
 0x438   :  { %4528 = vmatprep.subr.bf16.mxu0 %v4737_v24  ;;  %v2120_v27 = vsel %vm2110_vm5, %v6519_v25, %v2029_v49  ;;  %v3903_v25 = vld [vmem:[%s7261_s5 + $0x5b8] sm:$0xff]  ;;  %v3845_v49 = vld [vmem:[%s7261_s5 + $0x400] sm:$0xff]  ;;  %v4583_v20 = vpack.c.bf16 %v3913_v16, %v3912_v33  ;;  %v3889_v59 = vld [vmem:[%s7261_s5 + $0x550] sm:$0xff] }
 0x439   :  { %v4568_v0 = vpack.c.bf16 %v3903_v25, %v3902_v1  ;;  %v3853_v1 = vld [vmem:[%s7261_s5 + $0x440] sm:$0xff]  ;;  %v3854_v25 = vld [vmem:[%s7261_s5 + $0x448] sm:$0xff]  ;;  %v4550_v47 = vpack.c.bf16 %v3890_v17, %v3889_v59  ;;  %v3893_v16 = vld [vmem:[%s7261_s5 + $0x570] sm:$0xff] }
 0x43a   :  { %v2067_v12 = vpop.permute.xlu0 %2066  ;;  %v3287_v17 = vld [vmem:[%s7264_s9 + $0x20] sm:$0xff] }
 0x43b   :  { %4530 = vmatpush1.bf16.msra.mxu0 %v4529_v60  ;;  %v2069_v2 = vpop.permute.xlu1 %2068  ;;  %v2129_v32 = vsel %vm676_vm4, %v2119_v42, %v2067_v12  ;;  %v3846_v60 = vld [vmem:[%s7261_s5 + $0x408] sm:$0xff]  ;;  %v3847_v12 = vld [vmem:[%s7261_s5 + $0x410] sm:$0xff] }
 0x43c   :  { %4531 = vmatprep.subr.bf16.mxu0 %v4737_v24  ;;  %v2130_v52 = vsel %vm676_vm4, %v2120_v27, %v2069_v2  ;;  %v4487_v21 = vpack.c.bf16 %v3846_v60, %v3845_v49  ;;  %v4490_v2 = vpack.c.bf16 %v3848_v39, %v3847_v12  ;;  %v3918_v27 = vld [vmem:[%s7261_s5 + $0x630] sm:$0xff]  ;;  %v3894_v49 = vld [vmem:[%s7261_s5 + $0x578] sm:$0xff]  ;;  %v2979_v39 = vld [vmem:[#allocation3 + $0x60] sm:$0xf0] }
 0x43d   :  { %v4556_v60 = vpack.c.bf16 %v3894_v49, %v3893_v16  ;;  %v3898_v12 = vld [vmem:[%s7261_s5 + $0x598] sm:$0xff]  ;;  %v3372_v16 = vld [vmem:[%s7265_s11] sm:$0xff]  ;;  %v3373_v49 = vld [vmem:[%s7265_s11 + $0x8] sm:$0xff] }
 0x43e   :  { %v2097_v35 = vpop.permute.xlu0 %2096 }
 0x43f   :  { %v2140_v54 = vsel %vm2131_vm6, %v2129_v32, %v2097_v35  ;;  %4533 = vmatpush1.bf16.msra.mxu0 %v4532_v19  ;;  %v2099_v57 = vpop.permute.xlu1 %2098  ;;  %v3916_v19 = vld [vmem:[%s7261_s5 + $0x620] sm:$0xff]  ;;  %v3919_v32 = vld [vmem:[%s7261_s5 + $0x638] sm:$0xff]  ;;  %v3851_v35 = vld [vmem:[%s7261_s5 + $0x430] sm:$0xff] }
 0x440   :  { %2158 = vst [vmem:[#allocation3 + $0x80] sm:$0xff] %v2140_v54  ;;  %v2141_v30 = vsel %vm2131_vm6, %v2130_v52, %v2099_v57  ;;  %4564 = vmatprep.subr.bf16.mxu0 %v4737_v24  ;;  %v4589_v42 = vpack.c.bf16 %v3917_v44, %v3916_v19  ;;  %v3852_v52 = vld [vmem:[%s7261_s5 + $0x438] sm:$0xff] }
 0x441   :  { %2160 = vst [vmem:[#allocation3 + $0x90] sm:$0xff] %v2141_v30  ;;  %v4496_v30 = vpack.c.bf16 %v3852_v52, %v3851_v35 }
 0x442   :  { %2973 = vmatmul.mubr.f32.vlgmr.msra.gmra.mrb[70].mxu0 %v2903_v48 }
 0x443   :  { %4566 = vmatpush1.bf16.msra.mxu0 %v4565_v58  ;;  %3920 = vmatprep.mubr.msk.f32.mxu0 %vm2110_vm5, %v3114_v53  ;;  %v4592_v58 = vpack.c.bf16 %v3919_v32, %v3918_v27 }
 0x444   :  { %4567 = vmatprep.subr.bf16.mxu0 %v4737_v24 }
 0x447   :  { %4569 = vmatpush1.bf16.msra.mxu0 %v4568_v0  ;;  %v2563_v43 = vld [vmem:[#allocation3 + $0x80] sm:$0xf]  ;;  %v3084_v54 = vld [vmem:[#allocation3 + $0x80] sm:$0xf0]  ;;  %v4499_v0 = vpack.c.bf16 %v3854_v25, %v3853_v1  ;;  %v3199_v1 = vld [vmem:[%s7262_s7 + $0x8] sm:$0xff] }
 0x448   :  { %4570 = vmatprep.subr.bf16.mxu0 %v4737_v24  ;;  %v2565_v6 = vld [vmem:[#allocation3 + $0x90] sm:$0xf]  ;;  %v3086_v57 = vld [vmem:[#allocation3 + $0x90] sm:$0xf0] }
 0x449   :  { %v2567_v10 = vmax.f32 %v2563_v43, %v2565_v6  ;;  %v3088_v48 = vmax.f32 %v3084_v54, %v3086_v57  ;;  %v3879_v43 = vld [vmem:[%s7261_s5 + $0x500] sm:$0xff]  ;;  %v3880_v6 = vld [vmem:[%s7261_s5 + $0x508] sm:$0xff] }
 0x44a   :  { %v4535_v4 = vpack.c.bf16 %v3880_v6, %v3879_v43 }
 0x44b   :  { %4572 = vmatpush1.bf16.msra.mxu0 %v4571_v28  ;;  %2658 = vmatmul.mubr.f32.vlgmr.msra.gmra.mrb[44].mxu1 %v2567_v10  ;;  %v3113_v53 = vrot.slane %v3088_v48, 4  ;;  %v2773_v28 = vmax.f32 %v2769_v23, %v2771_v26  ;;  %v3881_v10 = vld [vmem:[%s7261_s5 + $0x510] sm:$0xff]  ;;  %v3198_v48 = vld [vmem:[%s7262_s7] sm:$0xff] }
 0x44c   :  { %4476 = vmatpush1.bf16.msra.mxu1 %v4475_v40  ;;  %3857 = vmatprep.mubr.msk.f32.mxu1 %vm2110_vm5, %v2799_v15  ;;  %v2984_v40 = vmax.f32 %v2980_v38, %v2982_v51  ;;  %v4538_v15 = vpack.c.bf16 %v3882_v50, %v3881_v10 }
 0x44d   :  { %4573 = vmatprep.subr.bf16.mxu0 %v4737_v24  ;;  %4477 = vmatprep.subr.bf16.mxu1 %v4737_v24  ;;  %v2798_v29 = vrot.slane %v2773_v28, 4 }
 0x44e   :  { %v3009_v13 = vrot.slane %v2984_v40, 4 }
 0x44f   :  { %4575 = vmatpush1.bf16.msra.mxu0 %v4574_v55  ;;  %v3883_v55 = vld [vmem:[%s7261_s5 + $0x520] sm:$0xff] }
 0x450   :  { %4479 = vmatpush1.bf16.msra.mxu1 %v4478_v56  ;;  %4576 = vmatprep.subr.bf16.mxu0 %v4737_v24  ;;  %v3884_v56 = vld [vmem:[%s7261_s5 + $0x528] sm:$0xff] }
 0x451   :  { %4480 = vmatprep.subr.bf16.mxu1 %v4737_v24  ;;  %v4541_v7 = vpack.c.bf16 %v3884_v56, %v3883_v55  ;;  %v3921_v55 = vld [vmem:[%s7263_s6] ss:$0 sm:$0xff] }
 0x453   :  { %4578 = vmatpush1.bf16.msra.mxu0 %v4577_v37  ;;  %v3887_v37 = vld [vmem:[%s7261_s5 + $0x540] sm:$0xff] }
 0x454   :  { %4482 = vmatpush1.bf16.msra.mxu1 %v4481_v36  ;;  %4579 = vmatprep.subr.bf16.mxu0 %v4737_v24  ;;  %v3888_v36 = vld [vmem:[%s7261_s5 + $0x548] sm:$0xff] }
 0x455   :  { %4483 = vmatprep.subr.bf16.mxu1 %v4737_v24  ;;  %v4547_v14 = vpack.c.bf16 %v3888_v36, %v3887_v37  ;;  %v3285_v36 = vld [vmem:[%s7264_s9 + $0x10] sm:$0xff] }
 0x457   :  { %4581 = vmatpush1.bf16.msra.mxu0 %v4580_v5  ;;  %v3891_v5 = vld [vmem:[%s7261_s5 + $0x560] sm:$0xff] }
 0x458   :  { %4485 = vmatpush1.bf16.msra.mxu1 %v4484_v41  ;;  %4582 = vmatprep.subr.bf16.mxu0 %v4737_v24  ;;  %v3892_v41 = vld [vmem:[%s7261_s5 + $0x568] sm:$0xff] }
 0x459   :  { %4486 = vmatprep.subr.bf16.mxu1 %v4737_v24  ;;  %v4553_v33 = vpack.c.bf16 %v3892_v41, %v3891_v5  ;;  %v3290_v41 = vld [vmem:[%s7264_s9 + $0x38] sm:$0xff] }
 0x45b   :  { %4584 = vmatpush1.bf16.msra.mxu0 %v4583_v20  ;;  %v3895_v20 = vld [vmem:[%s7261_s5 + $0x580] sm:$0xff] }
 0x45c   :  { %4488 = vmatpush1.bf16.msra.mxu1 %v4487_v21  ;;  %4585 = vmatprep.subr.bf16.mxu0 %v4737_v24  ;;  %v3896_v21 = vld [vmem:[%s7261_s5 + $0x588] sm:$0xff] }
 0x45d   :  { %4489 = vmatprep.subr.bf16.mxu1 %v4737_v24  ;;  %v4559_v31 = vpack.c.bf16 %v3896_v21, %v3895_v20  ;;  %v4613_v20 = vpack.c.bf16 %v3373_v49, %v3372_v16  ;;  %v3375_v21 = vld [vmem:[%s7265_s11 + $0x18] sm:$0xff] }
 0x45f   :  { %4587 = vmatpush1.bf16.msra.mxu0 %v4586_v46  ;;  %v2981_v46 = vld [vmem:[#allocation3 + $0x70] sm:$0xf0] }
 0x460   :  { %4491 = vmatpush1.bf16.msra.mxu1 %v4490_v2  ;;  %4588 = vmatprep.subr.bf16.mxu0 %v4737_v24  ;;  %v4562_v2 = vpack.c.bf16 %v3898_v12, %v3897_v62  ;;  %v2983_v19 = vmax.f32 %v2979_v39, %v2981_v46  ;;  %v3376_v62 = vld [vmem:[%s7265_s11 + $0x20] sm:$0xff]  ;;  %v3377_v12 = vld [vmem:[%s7265_s11 + $0x28] sm:$0xff]  ;;  %v3378_v46 = vld [vmem:[%s7265_s11 + $0x30] sm:$0xff] }
 0x461   :  { %4492 = vmatprep.subr.bf16.mxu1 %v4737_v24  ;;  %v4619_v39 = vpack.c.bf16 %v3377_v12, %v3376_v62 }
 0x462   :  { %v3008_v9 = vrot.slane %v2983_v19, 4 }
 0x463   :  { %4590 = vmatpush1.bf16.msra.mxu0 %v4589_v42 }
 0x464   :  { %4494 = vmatpush1.bf16.msra.mxu1 %v4493_v34  ;;  %4591 = vmatprep.subr.bf16.mxu0 %v4737_v24 }
 0x465   :  { %4495 = vmatprep.subr.bf16.mxu1 %v4737_v24 }
 0x467   :  { %4593 = vmatpush1.bf16.msra.mxu0 %v4592_v58 }
 0x468   :  { %4497 = vmatpush1.bf16.msra.mxu1 %v4496_v30  ;;  %4594 = vmatprep.subr.bf16.mxu0 %v4737_v24 }
 0x469   :  { %4498 = vmatprep.subr.bf16.mxu1 %v4737_v24 }
 0x46a   :  { %3183 = vmatmul.mubr.f32.vlgmr.msra.gmra.mrb[72].mxu0 %v3113_v53  ;;  %v4595_v53 = vpack.c.bf16 %v3199_v1, %v3198_v48  ;;  %v3386_v1 = vld [vmem:[%s7265_s11 + $0x70] sm:$0xff] }
 0x46b   :  { %3967 = vmatprep.mubr.msk.f32.mxu0 %vm4741_vm7, %v4736_v3 }
 0x46c   :  { %4500 = vmatpush1.bf16.msra.mxu1 %v4499_v0  ;;  %4596 = vmatpush3.bf16.msra.mxu0 %v4595_v53  ;;  %v3200_v0 = vld [vmem:[%s7262_s7 + $0x10] sm:$0xff] }
 0x46d   :  { %4501 = vmatprep.subr.bf16.mxu1 %v4737_v24  ;;  %4597 = vmatprep.subr.bf16.mxu0 %v4737_v24  ;;  %v4598_v18 = vpack.c.bf16 %v3201_v11, %v3200_v0  ;;  %v3924_v0 = vld [vmem:[%s7268_s10] ss:$0 sm:$0xff] }
 0x470   :  { %4503 = vmatpush1.bf16.msra.mxu1 %v4502_v63  ;;  %4599 = vmatpush3.bf16.msra.mxu0 %v4598_v18 }
 0x471   :  { %4534 = vmatprep.subr.bf16.mxu1 %v4737_v24  ;;  %4600 = vmatprep.subr.bf16.mxu0 %v4737_v24 }
 0x473   :  { %2868 = vmatmul.mubr.f32.vlgmr.msra.gmra.mrb[46].mxu1 %v2798_v29 }
 0x474   :  { %4536 = vmatpush1.bf16.msra.mxu1 %v4535_v4  ;;  %3899 = vmatprep.mubr.msk.f32.mxu1 %vm2110_vm5, %v3009_v13 }
 0x475   :  { %4537 = vmatprep.subr.bf16.mxu1 %v4737_v24 }
 0x478   :  { %4539 = vmatpush1.bf16.msra.mxu1 %v4538_v15 }
 0x479   :  { %4540 = vmatprep.subr.bf16.mxu1 %v4737_v24 }
 0x47c   :  { %4542 = vmatpush1.bf16.msra.mxu1 %v4541_v7  ;;  %v3283_v7 = vld [vmem:[%s7264_s9] sm:$0xff] }
 0x47d   :  { %4543 = vmatprep.subr.bf16.mxu1 %v4737_v24 }
 0x480   :  { %4545 = vmatpush1.bf16.msra.mxu1 %v4544_v8  ;;  %v4601_v8 = vpack.c.bf16 %v3284_v45, %v3283_v7 }
 0x481   :  { %4546 = vmatprep.subr.bf16.mxu1 %v4737_v24 }
 0x484   :  { %4548 = vmatpush1.bf16.msra.mxu1 %v4547_v14  ;;  %v3286_v14 = vld [vmem:[%s7264_s9 + $0x18] sm:$0xff] }
 0x485   :  { %4549 = vmatprep.subr.bf16.mxu1 %v4737_v24  ;;  %v4604_v59 = vpack.c.bf16 %v3286_v14, %v3285_v36 }
 0x488   :  { %4551 = vmatpush1.bf16.msra.mxu1 %v4550_v47  ;;  %v3288_v47 = vld [vmem:[%s7264_s9 + $0x28] sm:$0xff] }
 0x489   :  { %4552 = vmatprep.subr.bf16.mxu1 %v4737_v24  ;;  %v4607_v5 = vpack.c.bf16 %v3288_v47, %v3287_v17 }
 0x48c   :  { %4554 = vmatpush1.bf16.msra.mxu1 %v4553_v33 }
 0x48d   :  { %4555 = vmatprep.subr.bf16.mxu1 %v4737_v24 }
 0x490   :  { %4557 = vmatpush1.bf16.msra.mxu1 %v4556_v60  ;;  %v3374_v60 = vld [vmem:[%s7265_s11 + $0x10] sm:$0xff] }
 0x491   :  { %4558 = vmatprep.subr.bf16.mxu1 %v4737_v24 }
 0x494   :  { %4560 = vmatpush1.bf16.msra.mxu1 %v4559_v31  ;;  %v4616_v31 = vpack.c.bf16 %v3375_v21, %v3374_v60 }
 0x495   :  { %4561 = vmatprep.subr.bf16.mxu1 %v4737_v24 }
 0x498   :  { %4563 = vmatpush1.bf16.msra.mxu1 %v4562_v2  ;;  %v3379_v2 = vld [vmem:[%s7265_s11 + $0x38] sm:$0xff] }
 0x499   :  { %v2284_v44 = vpop.f32.mrb[40].mxu1  ;;  %4612 = vmatprep.subr.bf16.mxu1 %v4737_v24  ;;  %v4622_v19 = vpack.c.bf16 %v3379_v2, %v3378_v46 }
 0x49a   :  { %v2286_v61 = vpop.f32.mrb[41].mxu1 }
 0x49b   :  { %3078 = vmatmul.mubr.f32.vlgmr.msra.gmra.mrb[48].mxu1 %v3008_v9  ;;  %v3381_v9 = vld [vmem:[%s7265_s11 + $0x48] sm:$0xff] }
 0x49c   :  { %4021 = vmatprep.mubr.msk.f32.mxu1 %vm4741_vm7, %v4736_v3  ;;  %4614 = vmatpush3.bf16.msra.mxu1 %v4613_v20 }
 0x49d   :  { %v2357_v42 = vpop.f32.mrb[64].mxu0  ;;  %4615 = vmatprep.subr.bf16.mxu1 %v4737_v24 }
 0x49e   :  { %v2358_v34 = vadd.f32 %v2357_v42, %v2284_v44  ;;  %v2359_v27 = vpop.f32.mrb[65].mxu0  ;;  %v3380_v44 = vld [vmem:[%s7265_s11 + $0x40] sm:$0xff]  ;;  %v3382_v42 = vld [vmem:[%s7265_s11 + $0x50] sm:$0xff] }
 0x49f   :  { %v4625_v61 = vpack.c.bf16 %v3381_v9, %v3380_v44 }
 0x4a0   :  { %4617 = vmatpush3.bf16.msra.mxu1 %v4616_v31 }
 0x4a1   :  { %4618 = vmatprep.subr.bf16.mxu1 %v4737_v24 }
 0x4a4   :  { %4620 = vmatpush3.bf16.msra.mxu1 %v4619_v39 }
 0x4a5   :  { %4621 = vmatprep.subr.bf16.mxu1 %v4737_v24 }
 0x4a8   :  { %4623 = vmatpush3.bf16.msra.mxu1 %v4622_v19 }
 0x4a9   :  { %4624 = vmatprep.subr.bf16.mxu1 %v4737_v24 }
 0x4ac   :  { %4626 = vmatpush3.bf16.msra.mxu1 %v4625_v61 }
 0x4ad   :  { %4627 = vmatprep.subr.bf16.mxu1 %v4737_v24 }
 0x4c1   :  { %v2457_v32 = vpop.f32.mrb[42].mxu1 }
 0x4c2   :  { %v2461_v35 = vadd.f32 %v2457_v32, %v2358_v34  ;;  %v2459_v52 = vpop.f32.mrb[43].mxu1  ;;  %v3383_v34 = vld [vmem:[%s7265_s11 + $0x58] sm:$0xff]  ;;  %v3384_v32 = vld [vmem:[%s7265_s11 + $0x60] sm:$0xff] }
 0x4c3   :  { %v4628_v27 = vpack.c.bf16 %v3383_v34, %v3382_v42 }
 0x4c5   :  { %v2558_v54 = vpop.f32.mrb[66].mxu0  ;;  %4629 = vmatpush3.bf16.msra.mxu1 %v4628_v27 }
 0x4c6   :  { %v2562_v57 = vadd.f32 %v2558_v54, %v2461_v35  ;;  %v2560_v58 = vpop.f32.mrb[67].mxu0  ;;  %v3385_v35 = vld [vmem:[%s7265_s11 + $0x68] sm:$0xff]  ;;  %4630 = vmatprep.subr.bf16.mxu1 %v4737_v24  ;;  %v3922_v54 = vld [vmem:[%s7266_s8] ss:$0 sm:$0xff] }
 0x4c7   :  { %v4631_v52 = vpack.c.bf16 %v3385_v35, %v3384_v32 }
 0x4c9   :  { %4632 = vmatpush3.bf16.msra.mxu1 %v4631_v52 }
 0x4ca   :  { %4633 = vmatprep.subr.bf16.mxu1 %v4737_v24 }
 0x4ed   :  { %v2764_v30 = vpop.f32.mrb[68].mxu0 }
 0x4ee   :  { %v2766_v25 = vpop.f32.mrb[69].mxu0 }
 0x4ef   :  { %v3387_v25 = vld [vmem:[%s7265_s11 + $0x78] sm:$0xff] }
 0x4f0   :  { %v4634_v53 = vpack.c.bf16 %v3387_v25, %v3386_v1 }
 0x4f2   :  { %4635 = vmatpush3.bf16.msra.mxu1 %v4634_v53 }
 0x515   :  { %v2974_v23 = vpop.f32.mrb[70].mxu0 }
 0x516   :  { %v2976_v26 = vpop.f32.mrb[71].mxu0 }
 0x51e   :  { %v2659_v38 = vpop.f32.mrb[44].mxu1 }
 0x51f   :  { %v2663_v51 = vadd.f32 %v2659_v38, %v2562_v57  ;;  %v2661_v63 = vpop.f32.mrb[45].mxu1 }
 0x521   :  { %v2768_v28 = vadd.f32 %v2764_v30, %v2663_v51 }
 0x53d   :  { %v3184_v43 = vpop.f32.mrb[72].mxu0 }
 0x53e   :  { %v3186_v6 = vpop.f32.mrb[73].mxu0 }
 0x546   :  { %v2869_v40 = vpop.f32.mrb[46].mxu1 }
 0x547   :  { %v2873_v4 = vadd.f32 %v2869_v40, %v2768_v28  ;;  %v2871_v29 = vpop.f32.mrb[47].mxu1 }
 0x549   :  { %v2978_v10 = vadd.f32 %v2974_v23, %v2873_v4 }
 0x56e   :  { %v3079_v50 = vpop.f32.mrb[48].mxu1 }
 0x56f   :  { %v3083_v13 = vadd.f32 %v3079_v50, %v2978_v10  ;;  %v3081_v15 = vpop.f32.mrb[49].mxu1 }
 0x571   :  { %v3188_v56 = vadd.f32 %v3184_v43, %v3083_v13 }
 0x573   :  { %v3196_v22 = vadd.f32 %v3921_v55, %v3188_v56 }
 0x575   :  { %v3197_v37 = vmax.f32 %v3196_v22, 0.0 }
 0x577   :  { %3968 = vmatmul.mubr.msk.f32.vlgmr.msra.gmra.mrb[74].mxu0 %vm2110_vm5, %v3197_v37 }
 0x578   :  { %4602 = vmatpush3.bf16.msra.mxu0 %v4601_v8  ;;  %3986 = vmatprep.mubr.msk.f32.mxu0 %vm4741_vm7, %v4736_v3  ;;  %v3289_v3 = vld [vmem:[%s7264_s9 + $0x30] sm:$0xff] }
 0x579   :  { %4603 = vmatprep.subr.bf16.mxu0 %v4737_v24  ;;  %v4610_v33 = vpack.c.bf16 %v3290_v41, %v3289_v3 }
 0x57c   :  { %4605 = vmatpush3.bf16.msra.mxu0 %v4604_v59 }
 0x57d   :  { %4606 = vmatprep.subr.bf16.mxu0 %v4737_v24 }
 0x580   :  { %4608 = vmatpush3.bf16.msra.mxu0 %v4607_v5 }
 0x581   :  { %4609 = vmatprep.subr.bf16.mxu0 %v4737_v24  ;;  %v18_v24 = vstv %s7267_s12 }
 0x582   :  { %19 = vst [vmem:[#allocation4] sm:$0x1] %v18_v24 }
 0x584   :  { %4611 = vmatpush3.bf16.msra.mxu0 %v4610_v33 }
 0x589   :  { %v3926_v38 = vld [vmem:[#allocation4] ss:$0 sm:$0xff] }
 0x64a   :  { %v3278_v57 = vpop.f32.mrb[74].mxu0 }
 0x64b   :  { %v3279_v58 = vadd.f32 %v3922_v54, %v3278_v57  ;;  %v3969_v30 = vpop.f32.mrb[75].mxu0 }
 0x64d   :  { %v3282_v48 = vmax.f32 %v3279_v58, 0.0 }
 0x64f   :  { %3987 = vmatmul.mubr.msk.f32.vlgmr.msra.gmra.mrb[76].mxu0 %vm676_vm4, %v3282_v48 }
 0x722   :  { %v3367_v11 = vpop.f32.mrb[76].mxu0 }
 0x723   :  { %v3368_v18 = vadd.f32 %v3924_v0, %v3367_v11  ;;  %v3988_v23 = vpop.f32.mrb[77].mxu0 }
 0x725   :  { %v3371_v26 = vmax.f32 %v3368_v18, 0.0 }
 0x727   :  { %4022 = vmatmul.mubr.f32.vlgmr.msra.gmra.mrb[50].mxu1 %v3371_v26 }
 0x7fa   :  { %v3461_v51 = vpop.f32.mrb[50].mxu1 }
 0x7fb   :  { %v3462_v63 = vadd.f32 %v3926_v38, %v3461_v51  ;;  %v4023_v28 = vpop.f32.mrb[51].mxu1 }
 0x7fd   :  { %v3927_v43 = vmul.f32 -1.442695, %v3462_v63 }
 0x7ff   :  { %4731 = vpow2.f32 %v3927_v43 }
 0x809   :  { %v4732_v6 = vpop.eup %4731 }
 0x80a   :  { %v3468_v40 = vadd.f32 1.0, %v4732_v6 }
 0x80c   :  { %4733 = vrcp.f32 %v3468_v40 }
 0x816   :  { %v4734_v4 = vpop.eup %4733 }
 0x817   :  { %3472 = vst.msk [vmem:[%s7269_s13] sm:$0xf] %vm3471_vm8, %v4734_v4 }

</bundles_post_ra>
